<compile_context>
chip_gen: v7x
topology: tpu7x:2x2x1
jax: 0.10.0
libtpu: 0.0.40
codegen_flags: <defaults>
</compile_context>

<pallas_src>
import functools

import jax
import jax.numpy as jnp
import numpy as np
from jax import lax
from jax.experimental import pallas as pl
from jax.experimental.pallas import tpu as pltpu

EPS = 1e-5  # nn.InstanceNorm2d default eps


def _rows_per_chunk(h, w, target_cols=1024):
    """Largest divisor R of h such that the im2col chunk R*w stays <= target."""
    best = 1
    for r in range(1, h + 1):
        if h % r == 0 and r * w <= target_cols:
            best = r
    return best


def residual_block_kernel(xp_ref, w1_ref, w2_ref, o_ref, patch_ref, y1_ref,
                          *, H, W, C, rows_per_chunk):
    """One batch element, channel-last layout.

    xp_ref   : (1, H+2, W+2, C) f32   reflection-padded input (pad #1 in wrapper)
    w*_ref   : (9C, C)          bf16  im2col weights, row (kh*3+kw)*C + ci
    o_ref    : (1, H*W, C)      f32   output (also stages the raw conv2 result)
    patch_ref: (R*W, 9C)        bf16  scratch: im2col block for one row chunk
    y1_ref   : (H+2, W+2, C)    f32   scratch: conv1 output, later normalised,
                                      ReLU'd and reflection-padded for conv2
    """
    R = rows_per_chunk
    n_chunks = H // R
    HW = H * W
    inv_hw = 1.0 / float(HW)
    f32, bf16 = jnp.float32, jnp.bfloat16

    xp = xp_ref[0]                       # (H+2, W+2, C) f32, kept for residual
    xb = xp.astype(bf16)                 # bf16 copy feeding the MXU patches

    def conv_chunks(src_bf16, w_ref, store_chunk):
        """Chunked im2col conv; returns per-channel (sum, sum_of_squares)."""
        s = jnp.zeros((1, C), f32)
        ss = jnp.zeros((1, C), f32)
        for c in range(n_chunks):
            h0 = c * R
            for t in range(9):
                kh, kw = divmod(t, 3)
                tap = src_bf16[h0 + kh:h0 + kh + R, kw:kw + W, :]
                patch_ref[:, t * C:(t + 1) * C] = tap.reshape(R * W, C)
            raw = jnp.dot(patch_ref[...], w_ref[...],
                          preferred_element_type=f32)        # (R*W, C) f32
            s = s + jnp.sum(raw, axis=0, keepdims=True)
            ss = ss + jnp.sum(raw * raw, axis=0, keepdims=True)
            store_chunk(h0, raw)
        return s, ss

    def inv_std(s, ss):
        mean = s * inv_hw
        var = jnp.maximum(ss * inv_hw - mean * mean, 0.0)    # clamp: no NaN from
        return (mean.reshape(1, 1, C),                       # E[x^2]-mean^2 < 0
                lax.rsqrt(var + EPS).reshape(1, 1, C))

    # ---- conv1 (raw result into the interior of the padded scratch) --------
    def store1(h0, raw):
        y1_ref[h0 + 1:h0 + 1 + R, 1:W + 1, :] = raw.reshape(R, W, C)

    s1, ss1 = conv_chunks(xb, w1_ref, store1)

    # ---- instance norm #1 + ReLU + reflection pad #2 ------------------------
    mean1, rs1 = inv_std(s1, ss1)
    yn = jnp.maximum((y1_ref[...] - mean1) * rs1, 0.0)       # (H+2, W+2, C)
    y1_ref[...] = yn                      # interior correct; border fixed below
    # Border is built from the in-register value `yn` (no scratch read-back).
    y1_ref[1:H + 1, 0:1, :] = yn[1:H + 1, 2:3, :]                    # left col
    y1_ref[1:H + 1, W + 1:W + 2, :] = yn[1:H + 1, W - 1:W, :]        # right col
    y1_ref[0:1, 1:W + 1, :] = yn[2:3, 1:W + 1, :]                    # top row
    y1_ref[H + 1:H + 2, 1:W + 1, :] = yn[H - 1:H, 1:W + 1, :]        # bottom row
    y1_ref[0:1, 0:1, :] = yn[2:3, 2:3, :]                            # corners
    y1_ref[0:1, W + 1:W + 2, :] = yn[2:3, W - 1:W, :]
    y1_ref[H + 1:H + 2, 0:1, :] = yn[H - 1:H, 2:3, :]
    y1_ref[H + 1:H + 2, W + 1:W + 2, :] = yn[H - 1:H, W - 1:W, :]

    # ---- conv2 (raw result staged in o_ref) ---------------------------------
    y1b = y1_ref[...].astype(bf16)

    def store2(h0, raw):
        o_ref[0:1, h0 * W:(h0 + R) * W, :] = (
            raw.reshape(1, R * W, C).astype(o_ref.dtype))

    s2, ss2 = conv_chunks(y1b, w2_ref, store2)

    # ---- instance norm #2 + residual ----------------------------------------
    mean2, rs2 = inv_std(s2, ss2)
    y2 = o_ref[...].astype(f32)                                      # (1, HW, C)
    x_res = xp[1:H + 1, 1:W + 1, :].reshape(1, HW, C)
    o_ref[...] = (x_res + (y2 - mean2) * rs2).astype(o_ref.dtype)


@jax.jit
def residual_block(x_nchw, w1, b1, w2, b2):
    """x_nchw: (N, C, H, W) f32; weights in PyTorch layout (Cout, Cin, 3, 3).

    b1/b2 are accepted for parity with the nn.Module but are provably no-ops:
    a per-channel bias immediately followed by InstanceNorm2d(affine=False)
    is absorbed exactly (the mean shifts by the bias, the variance is
    unchanged), so they are not passed to the kernel.
    """
    del b1, b2
    N, C, H, W = x_nchw.shape
    HW = H * W

    # Layout plumbing on HBM (XLA): NCHW -> NHWC + reflection pad #1.
    x_nhwc = jnp.transpose(x_nchw, (0, 2, 3, 1))
    xp = jnp.pad(x_nhwc, ((0, 0), (1, 1), (1, 1), (0, 0)), mode="reflect")

    # im2col weights: (Cout,Cin,3,3) -> (kh,kw,Cin,Cout) -> (9*Cin, Cout), bf16.
    w1f = jnp.transpose(w1, (2, 3, 1, 0)).reshape(9 * C, C).astype(jnp.bfloat16)
    w2f = jnp.transpose(w2, (2, 3, 1, 0)).reshape(9 * C, C).astype(jnp.bfloat16)

    R = _rows_per_chunk(H, W)            # im2col chunk = R*W columns

    # VMEM budget: double-buffered pipeline blocks + scratch + temp headroom,
    # capped at 75% of physical VMEM (v7x only has 64 MiB).
    try:
        phys_vmem = pltpu.get_tpu_info().vmem_capacity_bytes
    except Exception:  # conservative fallback
        phys_vmem = 64 * 2 ** 20
    pad_img_b = (H + 2) * (W + 2) * C * 4
    out_b = HW * C * 4
    needed = (2 * pad_img_b + 2 * out_b + 4 * 9 * C * C * 2   # pipeline buffers
              + R * W * 9 * C * 2 + pad_img_b                 # scratch
              + 4 * max(pad_img_b, out_b))                    # in-kernel temps
    vmem_limit = int(min((phys_vmem * 3) // 4, max(16 * 2 ** 20, needed)))

    kernel = functools.partial(residual_block_kernel,
                               H=H, W=W, C=C, rows_per_chunk=R)

    out_flat = pl.pallas_call(
        kernel,
        out_shape=jax.ShapeDtypeStruct((N, HW, C), x_nchw.dtype),
        grid_spec=pltpu.PrefetchScalarGridSpec(
            num_scalar_prefetch=0,
            grid=(N,),
            in_specs=[
                pl.BlockSpec((1, H + 2, W + 2, C), lambda n: (n, 0, 0, 0)),
                # Constant-index weight blocks (whole array per grid step).
                pl.BlockSpec((9 * C, C), lambda n: (0, 0)),
                pl.BlockSpec((9 * C, C), lambda n: (0, 0)),
            ],
            out_specs=pl.BlockSpec((1, HW, C), lambda n: (n, 0, 0)),
            scratch_shapes=[
                pltpu.VMEM((R * W, 9 * C), jnp.bfloat16),      # im2col chunk
                pltpu.VMEM((H + 2, W + 2, C), jnp.float32),    # conv1 / pad #2
            ],
        ),
        compiler_params=pltpu.CompilerParams(
            dimension_semantics=("parallel",),
            vmem_limit_bytes=vmem_limit),
    )(xp, w1f, w2f)

    return jnp.transpose(out_flat.reshape(N, H, W, C), (0, 3, 1, 2))


def _reference(x_nchw, w1, b1, w2, b2):
    """Pure-JAX reference (lax.conv) mirroring the PyTorch module (with biases)."""
    x = jnp.transpose(x_nchw, (0, 2, 3, 1))
    dn = ("NHWC", "HWIO", "NHWC")

    def conv(y, w, b):
        yp = jnp.pad(y, ((0, 0), (1, 1), (1, 1), (0, 0)), mode="reflect")
        out = lax.conv_general_dilated(
            yp, jnp.transpose(w, (2, 3, 1, 0)),
            window_strides=(1, 1), padding="VALID", dimension_numbers=dn)
        return out + b.reshape(1, 1, 1, -1)

    def inorm(y):
        m = jnp.mean(y, axis=(1, 2), keepdims=True)
        v = jnp.mean((y - m) ** 2, axis=(1, 2), keepdims=True)
        return (y - m) * lax.rsqrt(v + EPS)

    h = jnp.maximum(inorm(conv(x, w1, b1)), 0.0)
    h = inorm(conv(h, w2, b2))
    return jnp.transpose(x + h, (0, 3, 1, 2))


if __name__ == "__main__":
    N, C, H, W = 2, 4, 16, 16
    key = jax.random.PRNGKey(0)
    kx, kw1, kb1, kw2, kb2 = jax.random.split(key, 5)

    x = jax.random.normal(kx, (N, C, H, W), jnp.float32)
    # Deterministic parameter init (shapes from nn.Conv2d(C, C, 3))
    fan_in = C * 3 * 3
    bound = 1.0 / np.sqrt(fan_in)
    w1 = jax.random.uniform(kw1, (C, C, 3, 3), jnp.float32, -bound, bound)
    b1 = jax.random.uniform(kb1, (C,), jnp.float32, -bound, bound)
    w2 = jax.random.uniform(kw2, (C, C, 3, 3), jnp.float32, -bound, bound)
    b2 = jax.random.uniform(kb2, (C,), jnp.float32, -bound, bound)

    out = residual_block(x, w1, b1, w2, b2)
    out = jax.block_until_ready(out)

    ref = _reference(x, w1, b1, w2, b2)
    # bf16 MXU operands (f32 accumulation) -> expect ~1e-2-level agreement.
    np.testing.assert_allclose(np.asarray(out), np.asarray(ref),
                               rtol=3e-2, atol=3e-2)
    print("KERNEL_OK")
</pallas_src>

<mosaic_0001>
module attributes {stable_mosaic.version = 11 : i64} {
  func.func @residual_block_kernel(%arg0: i32, %arg1: memref<1x18x18x4xf32, #tpu.memory_space<vmem>>, %arg2: memref<36x4xbf16, #tpu.memory_space<vmem>>, %arg3: memref<36x4xbf16, #tpu.memory_space<vmem>>, %arg4: memref<1x256x4xf32, #tpu.memory_space<vmem>>, %arg5: memref<256x36xbf16, #tpu.memory_space<vmem>>, %arg6: memref<18x18x4xf32, #tpu.memory_space<vmem>>) attributes {dimension_semantics = [#tpu.dimension_semantics<parallel>], iteration_bounds = array<i64: 2>, scalar_prefetch = 0 : i64, scratch_operands = 2 : i64, tpu.core_type = #tpu.core_type<tc>, window_params = [{transform_indices = @transform_0, window_bounds = array<i64: 1, 18, 18, 4>}, {pipeline_mode = #tpu.pipeline_mode<synchronous>, transform_indices = @transform_1, window_bounds = array<i64: 36, 4>}, {pipeline_mode = #tpu.pipeline_mode<synchronous>, transform_indices = @transform_2, window_bounds = array<i64: 36, 4>}, {transform_indices = @transform_3, window_bounds = array<i64: 1, 256, 4>}]} {
    %c0 = arith.constant 0 : index
    %c0_0 = arith.constant 0 : index
    %c0_1 = arith.constant 0 : index
    %c0_2 = arith.constant 0 : index
    %0 = vector.load %arg1[%c0, %c0_0, %c0_1, %c0_2] : memref<1x18x18x4xf32, #tpu.memory_space<vmem>>, vector<1x18x18x4xf32>
    %1 = vector.shape_cast %0 : vector<1x18x18x4xf32> to vector<18x18x4xf32>
    %2 = arith.truncf %1 : vector<18x18x4xf32> to vector<18x18x4xbf16>
    %cst = arith.constant 0.000000e+00 : f32
    %3 = vector.broadcast %cst : f32 to vector<1x4xf32>
    %cst_3 = arith.constant 0.000000e+00 : f32
    %4 = vector.broadcast %cst_3 : f32 to vector<1x4xf32>
    %5 = vector.extract_strided_slice %2 {offsets = [0, 0, 0], sizes = [16, 16, 4], strides = [1, 1, 1]} : vector<18x18x4xbf16> to vector<16x16x4xbf16>
    %6 = vector.shape_cast %5 : vector<16x16x4xbf16> to vector<256x4xbf16>
    %c0_4 = arith.constant 0 : index
    %c0_5 = arith.constant 0 : index
    %7 = vector.load %arg5[%c0_4, %c0_5] : memref<256x36xbf16, #tpu.memory_space<vmem>>, vector<256x4xbf16>
    tpu.vector_store %arg5[%c0_4, %c0_5], %6 {strides = array<i32>} : memref<256x36xbf16, #tpu.memory_space<vmem>>, vector<256x4xbf16>,
    %8 = vector.extract_strided_slice %2 {offsets = [0, 1, 0], sizes = [16, 16, 4], strides = [1, 1, 1]} : vector<18x18x4xbf16> to vector<16x16x4xbf16>
    %9 = vector.shape_cast %8 : vector<16x16x4xbf16> to vector<256x4xbf16>
    %c0_6 = arith.constant 0 : index
    %c4 = arith.constant 4 : index
    %10 = vector.load %arg5[%c0_6, %c4] : memref<256x36xbf16, #tpu.memory_space<vmem>>, vector<256x4xbf16>
    tpu.vector_store %arg5[%c0_6, %c4], %9 {strides = array<i32>} : memref<256x36xbf16, #tpu.memory_space<vmem>>, vector<256x4xbf16>,
    %11 = vector.extract_strided_slice %2 {offsets = [0, 2, 0], sizes = [16, 16, 4], strides = [1, 1, 1]} : vector<18x18x4xbf16> to vector<16x16x4xbf16>
    %12 = vector.shape_cast %11 : vector<16x16x4xbf16> to vector<256x4xbf16>
    %c0_7 = arith.constant 0 : index
    %c8 = arith.constant 8 : index
    %13 = vector.load %arg5[%c0_7, %c8] : memref<256x36xbf16, #tpu.memory_space<vmem>>, vector<256x4xbf16>
    tpu.vector_store %arg5[%c0_7, %c8], %12 {strides = array<i32>} : memref<256x36xbf16, #tpu.memory_space<vmem>>, vector<256x4xbf16>,
    %14 = vector.extract_strided_slice %2 {offsets = [1, 0, 0], sizes = [16, 16, 4], strides = [1, 1, 1]} : vector<18x18x4xbf16> to vector<16x16x4xbf16>
    %15 = vector.shape_cast %14 : vector<16x16x4xbf16> to vector<256x4xbf16>
    %c0_8 = arith.constant 0 : index
    %c12 = arith.constant 12 : index
    %16 = vector.load %arg5[%c0_8, %c12] : memref<256x36xbf16, #tpu.memory_space<vmem>>, vector<256x4xbf16>
    tpu.vector_store %arg5[%c0_8, %c12], %15 {strides = array<i32>} : memref<256x36xbf16, #tpu.memory_space<vmem>>, vector<256x4xbf16>,
    %17 = vector.extract_strided_slice %2 {offsets = [1, 1, 0], sizes = [16, 16, 4], strides = [1, 1, 1]} : vector<18x18x4xbf16> to vector<16x16x4xbf16>
    %18 = vector.shape_cast %17 : vector<16x16x4xbf16> to vector<256x4xbf16>
    %c0_9 = arith.constant 0 : index
    %c16 = arith.constant 16 : index
    %19 = vector.load %arg5[%c0_9, %c16] : memref<256x36xbf16, #tpu.memory_space<vmem>>, vector<256x4xbf16>
    tpu.vector_store %arg5[%c0_9, %c16], %18 {strides = array<i32>} : memref<256x36xbf16, #tpu.memory_space<vmem>>, vector<256x4xbf16>,
    %20 = vector.extract_strided_slice %2 {offsets = [1, 2, 0], sizes = [16, 16, 4], strides = [1, 1, 1]} : vector<18x18x4xbf16> to vector<16x16x4xbf16>
    %21 = vector.shape_cast %20 : vector<16x16x4xbf16> to vector<256x4xbf16>
    %c0_10 = arith.constant 0 : index
    %c20 = arith.constant 20 : index
    %22 = vector.load %arg5[%c0_10, %c20] : memref<256x36xbf16, #tpu.memory_space<vmem>>, vector<256x4xbf16>
    tpu.vector_store %arg5[%c0_10, %c20], %21 {strides = array<i32>} : memref<256x36xbf16, #tpu.memory_space<vmem>>, vector<256x4xbf16>,
    %23 = vector.extract_strided_slice %2 {offsets = [2, 0, 0], sizes = [16, 16, 4], strides = [1, 1, 1]} : vector<18x18x4xbf16> to vector<16x16x4xbf16>
    %24 = vector.shape_cast %23 : vector<16x16x4xbf16> to vector<256x4xbf16>
    %c0_11 = arith.constant 0 : index
    %c24 = arith.constant 24 : index
    %25 = vector.load %arg5[%c0_11, %c24] : memref<256x36xbf16, #tpu.memory_space<vmem>>, vector<256x4xbf16>
    tpu.vector_store %arg5[%c0_11, %c24], %24 {strides = array<i32>} : memref<256x36xbf16, #tpu.memory_space<vmem>>, vector<256x4xbf16>,
    %26 = vector.extract_strided_slice %2 {offsets = [2, 1, 0], sizes = [16, 16, 4], strides = [1, 1, 1]} : vector<18x18x4xbf16> to vector<16x16x4xbf16>
    %27 = vector.shape_cast %26 : vector<16x16x4xbf16> to vector<256x4xbf16>
    %c0_12 = arith.constant 0 : index
    %c28 = arith.constant 28 : index
    %28 = vector.load %arg5[%c0_12, %c28] : memref<256x36xbf16, #tpu.memory_space<vmem>>, vector<256x4xbf16>
    tpu.vector_store %arg5[%c0_12, %c28], %27 {strides = array<i32>} : memref<256x36xbf16, #tpu.memory_space<vmem>>, vector<256x4xbf16>,
    %29 = vector.extract_strided_slice %2 {offsets = [2, 2, 0], sizes = [16, 16, 4], strides = [1, 1, 1]} : vector<18x18x4xbf16> to vector<16x16x4xbf16>
    %30 = vector.shape_cast %29 : vector<16x16x4xbf16> to vector<256x4xbf16>
    %c0_13 = arith.constant 0 : index
    %c32 = arith.constant 32 : index
    %31 = vector.load %arg5[%c0_13, %c32] : memref<256x36xbf16, #tpu.memory_space<vmem>>, vector<256x4xbf16>
    tpu.vector_store %arg5[%c0_13, %c32], %30 {strides = array<i32>} : memref<256x36xbf16, #tpu.memory_space<vmem>>, vector<256x4xbf16>,
    %c0_14 = arith.constant 0 : index
    %c0_15 = arith.constant 0 : index
    %32 = vector.load %arg5[%c0_14, %c0_15] : memref<256x36xbf16, #tpu.memory_space<vmem>>, vector<256x36xbf16>
    %c0_16 = arith.constant 0 : index
    %c0_17 = arith.constant 0 : index
    %33 = vector.load %arg2[%c0_16, %c0_17] : memref<36x4xbf16, #tpu.memory_space<vmem>>, vector<36x4xbf16>
    %cst_18 = arith.constant dense<0.000000e+00> : vector<256x4xf32>
    %34 = tpu.matmul %32, %33, %cst_18 {dimension_numbers = #tpu.dot_dimension_numbers<[1], [0], [0], [1], [0, 0, 1, 1], [], []>} : vector<256x36xbf16>, vector<36x4xbf16>, vector<256x4xf32> -> vector<256x4xf32>
    %cst_19 = arith.constant dense<0.000000e+00> : vector<4xf32>
    %35 = vector.multi_reduction <add>, %34, %cst_19 [0] : vector<256x4xf32> to vector<4xf32>
    %36 = vector.shape_cast %35 : vector<4xf32> to vector<1x4xf32>
    %37 = arith.addf %3, %36 : vector<1x4xf32>
    %38 = arith.mulf %34, %34 : vector<256x4xf32>
    %cst_20 = arith.constant dense<0.000000e+00> : vector<4xf32>
    %39 = vector.multi_reduction <add>, %38, %cst_20 [0] : vector<256x4xf32> to vector<4xf32>
    %40 = vector.shape_cast %39 : vector<4xf32> to vector<1x4xf32>
    %41 = arith.addf %4, %40 : vector<1x4xf32>
    %42 = vector.shape_cast %34 : vector<256x4xf32> to vector<16x16x4xf32>
    %c1 = arith.constant 1 : index
    %c1_21 = arith.constant 1 : index
    %c0_22 = arith.constant 0 : index
    %43 = vector.load %arg6[%c1, %c1_21, %c0_22] : memref<18x18x4xf32, #tpu.memory_space<vmem>>, vector<16x16x4xf32>
    tpu.vector_store %arg6[%c1, %c1_21, %c0_22], %42 {strides = array<i32>} : memref<18x18x4xf32, #tpu.memory_space<vmem>>, vector<16x16x4xf32>,
    %cst_23 = arith.constant 3.906250e-03 : f32
    %44 = vector.broadcast %cst_23 : f32 to vector<1x4xf32>
    %45 = arith.mulf %37, %44 : vector<1x4xf32>
    %cst_24 = arith.constant 3.906250e-03 : f32
    %46 = vector.broadcast %cst_24 : f32 to vector<1x4xf32>
    %47 = arith.mulf %41, %46 : vector<1x4xf32>
    %48 = arith.mulf %45, %45 : vector<1x4xf32>
    %49 = arith.subf %47, %48 : vector<1x4xf32>
    %cst_25 = arith.constant 0.000000e+00 : f32
    %50 = vector.broadcast %cst_25 : f32 to vector<1x4xf32>
    %51 = arith.maximumf %49, %50 : vector<1x4xf32>
    %52 = vector.shape_cast %45 : vector<1x4xf32> to vector<1x1x4xf32>
    %cst_26 = arith.constant 9.99999974E-6 : f32
    %53 = vector.broadcast %cst_26 : f32 to vector<1x4xf32>
    %54 = arith.addf %51, %53 : vector<1x4xf32>
    %55 = math.rsqrt %54 : vector<1x4xf32>
    %56 = vector.shape_cast %55 : vector<1x4xf32> to vector<1x1x4xf32>
    %c0_27 = arith.constant 0 : index
    %c0_28 = arith.constant 0 : index
    %c0_29 = arith.constant 0 : index
    %57 = vector.load %arg6[%c0_27, %c0_28, %c0_29] : memref<18x18x4xf32, #tpu.memory_space<vmem>>, vector<18x18x4xf32>
    %58 = vector.broadcast %52 : vector<1x1x4xf32> to vector<18x18x4xf32>
    %59 = arith.subf %57, %58 : vector<18x18x4xf32>
    %60 = vector.broadcast %56 : vector<1x1x4xf32> to vector<18x18x4xf32>
    %61 = arith.mulf %59, %60 : vector<18x18x4xf32>
    %cst_30 = arith.constant 0.000000e+00 : f32
    %62 = vector.broadcast %cst_30 : f32 to vector<18x18x4xf32>
    %63 = arith.maximumf %61, %62 : vector<18x18x4xf32>
    %c0_31 = arith.constant 0 : index
    %c0_32 = arith.constant 0 : index
    %c0_33 = arith.constant 0 : index
    %64 = vector.load %arg6[%c0_31, %c0_32, %c0_33] : memref<18x18x4xf32, #tpu.memory_space<vmem>>, vector<18x18x4xf32>
    tpu.vector_store %arg6[%c0_31, %c0_32, %c0_33], %63 {strides = array<i32>} : memref<18x18x4xf32, #tpu.memory_space<vmem>>, vector<18x18x4xf32>,
    %65 = vector.extract_strided_slice %63 {offsets = [1, 2, 0], sizes = [16, 1, 4], strides = [1, 1, 1]} : vector<18x18x4xf32> to vector<16x1x4xf32>
    %c1_34 = arith.constant 1 : index
    %c0_35 = arith.constant 0 : index
    %c0_36 = arith.constant 0 : index
    %66 = vector.load %arg6[%c1_34, %c0_35, %c0_36] : memref<18x18x4xf32, #tpu.memory_space<vmem>>, vector<16x1x4xf32>
    tpu.vector_store %arg6[%c1_34, %c0_35, %c0_36], %65 {strides = array<i32>} : memref<18x18x4xf32, #tpu.memory_space<vmem>>, vector<16x1x4xf32>,
    %67 = vector.extract_strided_slice %63 {offsets = [1, 15, 0], sizes = [16, 1, 4], strides = [1, 1, 1]} : vector<18x18x4xf32> to vector<16x1x4xf32>
    %c1_37 = arith.constant 1 : index
    %c17 = arith.constant 17 : index
    %c0_38 = arith.constant 0 : index
    %68 = vector.load %arg6[%c1_37, %c17, %c0_38] : memref<18x18x4xf32, #tpu.memory_space<vmem>>, vector<16x1x4xf32>
    tpu.vector_store %arg6[%c1_37, %c17, %c0_38], %67 {strides = array<i32>} : memref<18x18x4xf32, #tpu.memory_space<vmem>>, vector<16x1x4xf32>,
    %69 = vector.extract_strided_slice %63 {offsets = [2, 1, 0], sizes = [1, 16, 4], strides = [1, 1, 1]} : vector<18x18x4xf32> to vector<1x16x4xf32>
    %c0_39 = arith.constant 0 : index
    %c1_40 = arith.constant 1 : index
    %c0_41 = arith.constant 0 : index
    %70 = vector.load %arg6[%c0_39, %c1_40, %c0_41] : memref<18x18x4xf32, #tpu.memory_space<vmem>>, vector<1x16x4xf32>
    tpu.vector_store %arg6[%c0_39, %c1_40, %c0_41], %69 {strides = array<i32>} : memref<18x18x4xf32, #tpu.memory_space<vmem>>, vector<1x16x4xf32>,
    %71 = vector.extract_strided_slice %63 {offsets = [15, 1, 0], sizes = [1, 16, 4], strides = [1, 1, 1]} : vector<18x18x4xf32> to vector<1x16x4xf32>
    %c17_42 = arith.constant 17 : index
    %c1_43 = arith.constant 1 : index
    %c0_44 = arith.constant 0 : index
    %72 = vector.load %arg6[%c17_42, %c1_43, %c0_44] : memref<18x18x4xf32, #tpu.memory_space<vmem>>, vector<1x16x4xf32>
    tpu.vector_store %arg6[%c17_42, %c1_43, %c0_44], %71 {strides = array<i32>} : memref<18x18x4xf32, #tpu.memory_space<vmem>>, vector<1x16x4xf32>,
    %73 = vector.extract_strided_slice %63 {offsets = [2, 2, 0], sizes = [1, 1, 4], strides = [1, 1, 1]} : vector<18x18x4xf32> to vector<1x1x4xf32>
    %c0_45 = arith.constant 0 : index
    %c0_46 = arith.constant 0 : index
    %c0_47 = arith.constant 0 : index
    %74 = vector.load %arg6[%c0_45, %c0_46, %c0_47] : memref<18x18x4xf32, #tpu.memory_space<vmem>>, vector<1x1x4xf32>
    tpu.vector_store %arg6[%c0_45, %c0_46, %c0_47], %73 {strides = array<i32>} : memref<18x18x4xf32, #tpu.memory_space<vmem>>, vector<1x1x4xf32>,
    %75 = vector.extract_strided_slice %63 {offsets = [2, 15, 0], sizes = [1, 1, 4], strides = [1, 1, 1]} : vector<18x18x4xf32> to vector<1x1x4xf32>
    %c0_48 = arith.constant 0 : index
    %c17_49 = arith.constant 17 : index
    %c0_50 = arith.constant 0 : index
    %76 = vector.load %arg6[%c0_48, %c17_49, %c0_50] : memref<18x18x4xf32, #tpu.memory_space<vmem>>, vector<1x1x4xf32>
    tpu.vector_store %arg6[%c0_48, %c17_49, %c0_50], %75 {strides = array<i32>} : memref<18x18x4xf32, #tpu.memory_space<vmem>>, vector<1x1x4xf32>,
    %77 = vector.extract_strided_slice %63 {offsets = [15, 2, 0], sizes = [1, 1, 4], strides = [1, 1, 1]} : vector<18x18x4xf32> to vector<1x1x4xf32>
    %c17_51 = arith.constant 17 : index
    %c0_52 = arith.constant 0 : index
    %c0_53 = arith.constant 0 : index
    %78 = vector.load %arg6[%c17_51, %c0_52, %c0_53] : memref<18x18x4xf32, #tpu.memory_space<vmem>>, vector<1x1x4xf32>
    tpu.vector_store %arg6[%c17_51, %c0_52, %c0_53], %77 {strides = array<i32>} : memref<18x18x4xf32, #tpu.memory_space<vmem>>, vector<1x1x4xf32>,
    %79 = vector.extract_strided_slice %63 {offsets = [15, 15, 0], sizes = [1, 1, 4], strides = [1, 1, 1]} : vector<18x18x4xf32> to vector<1x1x4xf32>
    %c17_54 = arith.constant 17 : index
    %c17_55 = arith.constant 17 : index
    %c0_56 = arith.constant 0 : index
    %80 = vector.load %arg6[%c17_54, %c17_55, %c0_56] : memref<18x18x4xf32, #tpu.memory_space<vmem>>, vector<1x1x4xf32>
    tpu.vector_store %arg6[%c17_54, %c17_55, %c0_56], %79 {strides = array<i32>} : memref<18x18x4xf32, #tpu.memory_space<vmem>>, vector<1x1x4xf32>,
    %c0_57 = arith.constant 0 : index
    %c0_58 = arith.constant 0 : index
    %c0_59 = arith.constant 0 : index
    %81 = vector.load %arg6[%c0_57, %c0_58, %c0_59] : memref<18x18x4xf32, #tpu.memory_space<vmem>>, vector<18x18x4xf32>
    %82 = arith.truncf %81 : vector<18x18x4xf32> to vector<18x18x4xbf16>
    %cst_60 = arith.constant 0.000000e+00 : f32
    %83 = vector.broadcast %cst_60 : f32 to vector<1x4xf32>
    %cst_61 = arith.constant 0.000000e+00 : f32
    %84 = vector.broadcast %cst_61 : f32 to vector<1x4xf32>
    %85 = vector.extract_strided_slice %82 {offsets = [0, 0, 0], sizes = [16, 16, 4], strides = [1, 1, 1]} : vector<18x18x4xbf16> to vector<16x16x4xbf16>
    %86 = vector.shape_cast %85 : vector<16x16x4xbf16> to vector<256x4xbf16>
    %c0_62 = arith.constant 0 : index
    %c0_63 = arith.constant 0 : index
    %87 = vector.load %arg5[%c0_62, %c0_63] : memref<256x36xbf16, #tpu.memory_space<vmem>>, vector<256x4xbf16>
    tpu.vector_store %arg5[%c0_62, %c0_63], %86 {strides = array<i32>} : memref<256x36xbf16, #tpu.memory_space<vmem>>, vector<256x4xbf16>,
    %88 = vector.extract_strided_slice %82 {offsets = [0, 1, 0], sizes = [16, 16, 4], strides = [1, 1, 1]} : vector<18x18x4xbf16> to vector<16x16x4xbf16>
    %89 = vector.shape_cast %88 : vector<16x16x4xbf16> to vector<256x4xbf16>
    %c0_64 = arith.constant 0 : index
    %c4_65 = arith.constant 4 : index
    %90 = vector.load %arg5[%c0_64, %c4_65] : memref<256x36xbf16, #tpu.memory_space<vmem>>, vector<256x4xbf16>
    tpu.vector_store %arg5[%c0_64, %c4_65], %89 {strides = array<i32>} : memref<256x36xbf16, #tpu.memory_space<vmem>>, vector<256x4xbf16>,
    %91 = vector.extract_strided_slice %82 {offsets = [0, 2, 0], sizes = [16, 16, 4], strides = [1, 1, 1]} : vector<18x18x4xbf16> to vector<16x16x4xbf16>
    %92 = vector.shape_cast %91 : vector<16x16x4xbf16> to vector<256x4xbf16>
    %c0_66 = arith.constant 0 : index
    %c8_67 = arith.constant 8 : index
    %93 = vector.load %arg5[%c0_66, %c8_67] : memref<256x36xbf16, #tpu.memory_space<vmem>>, vector<256x4xbf16>
    tpu.vector_store %arg5[%c0_66, %c8_67], %92 {strides = array<i32>} : memref<256x36xbf16, #tpu.memory_space<vmem>>, vector<256x4xbf16>,
    %94 = vector.extract_strided_slice %82 {offsets = [1, 0, 0], sizes = [16, 16, 4], strides = [1, 1, 1]} : vector<18x18x4xbf16> to vector<16x16x4xbf16>
    %95 = vector.shape_cast %94 : vector<16x16x4xbf16> to vector<256x4xbf16>
    %c0_68 = arith.constant 0 : index
    %c12_69 = arith.constant 12 : index
    %96 = vector.load %arg5[%c0_68, %c12_69] : memref<256x36xbf16, #tpu.memory_space<vmem>>, vector<256x4xbf16>
    tpu.vector_store %arg5[%c0_68, %c12_69], %95 {strides = array<i32>} : memref<256x36xbf16, #tpu.memory_space<vmem>>, vector<256x4xbf16>,
    %97 = vector.extract_strided_slice %82 {offsets = [1, 1, 0], sizes = [16, 16, 4], strides = [1, 1, 1]} : vector<18x18x4xbf16> to vector<16x16x4xbf16>
    %98 = vector.shape_cast %97 : vector<16x16x4xbf16> to vector<256x4xbf16>
    %c0_70 = arith.constant 0 : index
    %c16_71 = arith.constant 16 : index
    %99 = vector.load %arg5[%c0_70, %c16_71] : memref<256x36xbf16, #tpu.memory_space<vmem>>, vector<256x4xbf16>
    tpu.vector_store %arg5[%c0_70, %c16_71], %98 {strides = array<i32>} : memref<256x36xbf16, #tpu.memory_space<vmem>>, vector<256x4xbf16>,
    %100 = vector.extract_strided_slice %82 {offsets = [1, 2, 0], sizes = [16, 16, 4], strides = [1, 1, 1]} : vector<18x18x4xbf16> to vector<16x16x4xbf16>
    %101 = vector.shape_cast %100 : vector<16x16x4xbf16> to vector<256x4xbf16>
    %c0_72 = arith.constant 0 : index
    %c20_73 = arith.constant 20 : index
    %102 = vector.load %arg5[%c0_72, %c20_73] : memref<256x36xbf16, #tpu.memory_space<vmem>>, vector<256x4xbf16>
    tpu.vector_store %arg5[%c0_72, %c20_73], %101 {strides = array<i32>} : memref<256x36xbf16, #tpu.memory_space<vmem>>, vector<256x4xbf16>,
    %103 = vector.extract_strided_slice %82 {offsets = [2, 0, 0], sizes = [16, 16, 4], strides = [1, 1, 1]} : vector<18x18x4xbf16> to vector<16x16x4xbf16>
    %104 = vector.shape_cast %103 : vector<16x16x4xbf16> to vector<256x4xbf16>
    %c0_74 = arith.constant 0 : index
    %c24_75 = arith.constant 24 : index
    %105 = vector.load %arg5[%c0_74, %c24_75] : memref<256x36xbf16, #tpu.memory_space<vmem>>, vector<256x4xbf16>
    tpu.vector_store %arg5[%c0_74, %c24_75], %104 {strides = array<i32>} : memref<256x36xbf16, #tpu.memory_space<vmem>>, vector<256x4xbf16>,
    %106 = vector.extract_strided_slice %82 {offsets = [2, 1, 0], sizes = [16, 16, 4], strides = [1, 1, 1]} : vector<18x18x4xbf16> to vector<16x16x4xbf16>
    %107 = vector.shape_cast %106 : vector<16x16x4xbf16> to vector<256x4xbf16>
    %c0_76 = arith.constant 0 : index
    %c28_77 = arith.constant 28 : index
    %108 = vector.load %arg5[%c0_76, %c28_77] : memref<256x36xbf16, #tpu.memory_space<vmem>>, vector<256x4xbf16>
    tpu.vector_store %arg5[%c0_76, %c28_77], %107 {strides = array<i32>} : memref<256x36xbf16, #tpu.memory_space<vmem>>, vector<256x4xbf16>,
    %109 = vector.extract_strided_slice %82 {offsets = [2, 2, 0], sizes = [16, 16, 4], strides = [1, 1, 1]} : vector<18x18x4xbf16> to vector<16x16x4xbf16>
    %110 = vector.shape_cast %109 : vector<16x16x4xbf16> to vector<256x4xbf16>
    %c0_78 = arith.constant 0 : index
    %c32_79 = arith.constant 32 : index
    %111 = vector.load %arg5[%c0_78, %c32_79] : memref<256x36xbf16, #tpu.memory_space<vmem>>, vector<256x4xbf16>
    tpu.vector_store %arg5[%c0_78, %c32_79], %110 {strides = array<i32>} : memref<256x36xbf16, #tpu.memory_space<vmem>>, vector<256x4xbf16>,
    %c0_80 = arith.constant 0 : index
    %c0_81 = arith.constant 0 : index
    %112 = vector.load %arg5[%c0_80, %c0_81] : memref<256x36xbf16, #tpu.memory_space<vmem>>, vector<256x36xbf16>
    %c0_82 = arith.constant 0 : index
    %c0_83 = arith.constant 0 : index
    %113 = vector.load %arg3[%c0_82, %c0_83] : memref<36x4xbf16, #tpu.memory_space<vmem>>, vector<36x4xbf16>
    %cst_84 = arith.constant dense<0.000000e+00> : vector<256x4xf32>
    %114 = tpu.matmul %112, %113, %cst_84 {dimension_numbers = #tpu.dot_dimension_numbers<[1], [0], [0], [1], [0, 0, 1, 1], [], []>} : vector<256x36xbf16>, vector<36x4xbf16>, vector<256x4xf32> -> vector<256x4xf32>
    %cst_85 = arith.constant dense<0.000000e+00> : vector<4xf32>
    %115 = vector.multi_reduction <add>, %114, %cst_85 [0] : vector<256x4xf32> to vector<4xf32>
    %116 = vector.shape_cast %115 : vector<4xf32> to vector<1x4xf32>
    %117 = arith.addf %83, %116 : vector<1x4xf32>
    %118 = arith.mulf %114, %114 : vector<256x4xf32>
    %cst_86 = arith.constant dense<0.000000e+00> : vector<4xf32>
    %119 = vector.multi_reduction <add>, %118, %cst_86 [0] : vector<256x4xf32> to vector<4xf32>
    %120 = vector.shape_cast %119 : vector<4xf32> to vector<1x4xf32>
    %121 = arith.addf %84, %120 : vector<1x4xf32>
    %122 = vector.shape_cast %114 : vector<256x4xf32> to vector<1x256x4xf32>
    %c0_87 = arith.constant 0 : index
    %c0_88 = arith.constant 0 : index
    %c0_89 = arith.constant 0 : index
    %123 = vector.load %arg4[%c0_87, %c0_88, %c0_89] : memref<1x256x4xf32, #tpu.memory_space<vmem>>, vector<1x256x4xf32>
    tpu.vector_store %arg4[%c0_87, %c0_88, %c0_89], %122 {strides = array<i32>} : memref<1x256x4xf32, #tpu.memory_space<vmem>>, vector<1x256x4xf32>,
    %cst_90 = arith.constant 3.906250e-03 : f32
    %124 = vector.broadcast %cst_90 : f32 to vector<1x4xf32>
    %125 = arith.mulf %117, %124 : vector<1x4xf32>
    %cst_91 = arith.constant 3.906250e-03 : f32
    %126 = vector.broadcast %cst_91 : f32 to vector<1x4xf32>
    %127 = arith.mulf %121, %126 : vector<1x4xf32>
    %128 = arith.mulf %125, %125 : vector<1x4xf32>
    %129 = arith.subf %127, %128 : vector<1x4xf32>
    %cst_92 = arith.constant 0.000000e+00 : f32
    %130 = vector.broadcast %cst_92 : f32 to vector<1x4xf32>
    %131 = arith.maximumf %129, %130 : vector<1x4xf32>
    %132 = vector.shape_cast %125 : vector<1x4xf32> to vector<1x1x4xf32>
    %cst_93 = arith.constant 9.99999974E-6 : f32
    %133 = vector.broadcast %cst_93 : f32 to vector<1x4xf32>
    %134 = arith.addf %131, %133 : vector<1x4xf32>
    %135 = math.rsqrt %134 : vector<1x4xf32>
    %136 = vector.shape_cast %135 : vector<1x4xf32> to vector<1x1x4xf32>
    %c0_94 = arith.constant 0 : index
    %c0_95 = arith.constant 0 : index
    %c0_96 = arith.constant 0 : index
    %137 = vector.load %arg4[%c0_94, %c0_95, %c0_96] : memref<1x256x4xf32, #tpu.memory_space<vmem>>, vector<1x256x4xf32>
    %138 = vector.extract_strided_slice %1 {offsets = [1, 1, 0], sizes = [16, 16, 4], strides = [1, 1, 1]} : vector<18x18x4xf32> to vector<16x16x4xf32>
    %139 = vector.shape_cast %138 : vector<16x16x4xf32> to vector<1x256x4xf32>
    %140 = vector.broadcast %132 : vector<1x1x4xf32> to vector<1x256x4xf32>
    %141 = arith.subf %137, %140 : vector<1x256x4xf32>
    %142 = vector.broadcast %136 : vector<1x1x4xf32> to vector<1x256x4xf32>
    %143 = arith.mulf %141, %142 : vector<1x256x4xf32>
    %144 = arith.addf %139, %143 : vector<1x256x4xf32>
    %c0_97 = arith.constant 0 : index
    %c0_98 = arith.constant 0 : index
    %c0_99 = arith.constant 0 : index
    %145 = vector.load %arg4[%c0_97, %c0_98, %c0_99] : memref<1x256x4xf32, #tpu.memory_space<vmem>>, vector<1x256x4xf32>
    tpu.vector_store %arg4[%c0_97, %c0_98, %c0_99], %144 {strides = array<i32>} : memref<1x256x4xf32, #tpu.memory_space<vmem>>, vector<1x256x4xf32>,
    return
  }
  func.func @transform_0(%arg0: i32) -> (i32, i32, i32, i32) {
    %c0_i32 = arith.constant 0 : i32
    %c0_i32_0 = arith.constant 0 : i32
    %c0_i32_1 = arith.constant 0 : i32
    %c0_i32_2 = arith.constant 0 : i32
    return %arg0, %c0_i32, %c0_i32_0, %c0_i32_1 : i32, i32, i32, i32
  }
  func.func @transform_1(%arg0: i32) -> (i32, i32) {
    %c0_i32 = arith.constant 0 : i32
    %c0_i32_0 = arith.constant 0 : i32
    %c0_i32_1 = arith.constant 0 : i32
    return %c0_i32, %c0_i32_0 : i32, i32
  }
  func.func @transform_2(%arg0: i32) -> (i32, i32) {
    %c0_i32 = arith.constant 0 : i32
    %c0_i32_0 = arith.constant 0 : i32
    %c0_i32_1 = arith.constant 0 : i32
    return %c0_i32, %c0_i32_0 : i32, i32
  }
  func.func @transform_3(%arg0: i32) -> (i32, i32, i32) {
    %c0_i32 = arith.constant 0 : i32
    %c0_i32_0 = arith.constant 0 : i32
    %c0_i32_1 = arith.constant 0 : i32
    return %arg0, %c0_i32, %c0_i32_0 : i32, i32, i32
  }
}

</mosaic_0001>

<bundles_post_ra>
// kernel: residual_block.1
= control target key start
LH: loop header
LB: loop body
LE: loop exit
PB: predicated region body
PF: predicated region fallthrough
CT: control target
= control target key end

     0   :  { %s3874_s12 = smov 0   ;;  %s6574_s0 = inlined_call_operand.vmem [shape: f32[2,18,18,4], index: 0, kind: input, shape index: {}]   ;;  %s6575_s1 = inlined_call_operand.vmem [shape: bf16[36,4], index: 1, kind: input, shape index: {}]   ;;  %s6576_s2 = inlined_call_operand.vmem [shape: bf16[36,4], index: 2, kind: input, shape index: {}]   ;;  %s6577_s3 = inlined_call_operand.vmem [shape: f32[2,256,4], index: 3, kind: output, shape index: {}]  }
   0x1 LB: > { %s3646_s13 = sadd.s32 4294967295, %s3844_s12   ;;  %p3650_p0 = scmp.ge.s32.totalorder %s3844_s12, 1  ;;  %s3844_s12 = sphi %s3874_s12, %s13_s12  }
   0x2   : > { %p137_p1 = scmp.lt.s32.totalorder %s3844_s12, 3 }
   0x4   : > { %p138_p2 = pnand %p3650_p0, %p137_p1 }
   0x6   : > { %141 = sbr.rel (%p138_p2) target bundleno = 1358 (0x54e), region = 32 }
   0xd   : > { %p161_p3 = scmp.lt.s32.totalorder %s3646_s13, 1  ;;  %vm569_vm0 = vcmask 1046528   ;;  %vm279_vm1 = vsmask.f32 7424  ;;  %vm262_vm2 = vcmask 31744   ;;  %s3846_s18 = smov 12  }
   0xe   : > { %s3847_s19 = smov 20   ;;  %s3848_s20 = smov 8   ;;  %vm1192_vm3 = vcmask 1041408   ;;  %vm520_vm4 = vcmask 64544   ;;  %vm666_vm5 = vcmask 97344   ;;  %vm732_vm6 = vcmask 130144  }
   0xf   : > { %s6754_s13 = smov (!%p161_p3, %s3646_s13), 1  ;;  %s3849_s21 = smov 4   ;;  %vm809_vm7 = vcmask 162944   ;;  %vm878_vm8 = vcmask 195744   ;;  %vm944_vm9 = vcmask 228544   ;;  %vm1021_vm10 = vcmask 261344  }
  0x10   : > { %s3811_s14 = smul.u32 432, %s6754_s13  ;;  %s3850_s24 = smov 16   ;;  %vm6582_vm11 = vcmask 294144   ;;  %vm6578_vm12 = vcmask 293888   ;;  %vm1787_vm13 = vcmask 25600   ;;  %vm1857_vm14 = vcmask 31751  }
  0x11   : > { %s3851_s27 = smov 24   ;;  %s3852_s28 = smov 28   ;;  %vm1877_vm15 = vcmask 24576  }
  0x12   : > { %s3888_s17 = scalar_lea.vmem %s6574_s0, %s3811_s14  ;;  %s3853_s29 = smov 32  }
  0x13   : > { %v178_v0 = vld [vmem:[%s3888_s17 + $0x30] sm:$0xff]  ;;  %v179_v1 = vld [vmem:[%s3888_s17 + $0x38] sm:$0xff]  ;;  %v176_v5 = vld [vmem:[%s3888_s17 + $0x20] sm:$0xff]  ;;  %s3694_s11 = sshll.u32 %s6754_s13, 8 }
  0x14   : > { %v175_v2 = vld [vmem:[%s3888_s17 + $0x18] sm:$0xff]  ;;  %v3893_v3 = vpack.c.bf16 %v179_v1, %v178_v0  ;;  %v3356_v4 = vrot.slane %v178_v0, 1  ;;  %v177_v7 = vld [vmem:[%s3888_s17 + $0x28] sm:$0x3]  ;;  %v172_v8 = vld [vmem:[%s3888_s17] sm:$0xff]  ;;  %v3352_v10 = vrot.slane %v176_v5, 1  ;;  %s6229_s16 = scalar_lea.vmem %s6577_s3, %s3694_s11 }
  0x15   : > { %v3351_v6 = vrot.slane %v175_v2, 1  ;;  %v228_v9 = vpack.c.bf16 %v176_v5, %v175_v2  ;;  %v229_v11 = vpack.c.bf16 %v177_v7, %v177_v7  ;;  %v3354_v12 = vrot.slane %v177_v7, 1  ;;  %v173_v13 = vld [vmem:[%s3888_s17 + $0x8] sm:$0xff]  ;;  %v174_v14 = vld [vmem:[%s3888_s17 + $0x10] sm:$0x3]  ;;  %v184_v62 = vld [vmem:[%s3888_s17 + $0x60] sm:$0xff] }
  0x16   : > { %686 = vrot.lane.b32.xlu1 %v3893_v3, %s3846_s18  ;;  %v226_v15 = vpack.c.bf16 %v173_v13, %v172_v8  ;;  %v227_v16 = vpack.c.bf16 %v174_v14, %v174_v14  ;;  %v180_v17 = vld [vmem:[%s3888_s17 + $0x40] sm:$0x3]  ;;  %v576_v18 = vrot.slane %v3893_v3, 1  ;;  %v3357_v19 = vrot.slane %v179_v1, 1  ;;  %265 = vst.msk [vmem:[#allocation2 + $0x10] sm:$0xff] %vm262_vm2, %v3893_v3  ;;  %v181_v40 = vld [vmem:[%s3888_s17 + $0x48] sm:$0xff] }
  0x17   : > { %v3907_v20 = vsel %vm569_vm0, %v3351_v6, %v3352_v10  ;;  %684 = vrot.lane.b32.xlu0 %v228_v9, %s3846_s18  ;;  %v573_v21 = vrot.slane %v228_v9, 1  ;;  %v574_v22 = vrot.slane %v229_v11, 1  ;;  %v3911_v23 = vsel %vm569_vm0, %v3352_v10, %v3354_v12  ;;  %264 = vst.msk [vmem:[#allocation2 + $0x8] sm:$0xff] %vm262_vm2, %v228_v9  ;;  %v182_v41 = vld [vmem:[%s3888_s17 + $0x50] sm:$0xff]  ;;  %v183_v49 = vld [vmem:[%s3888_s17 + $0x58] sm:$0x3] }
  0x18   : > { %6583 = vst [vmem:[#allocation4_spill] sm:$0xff] %v3907_v20  ;;  %6584 = vst [vmem:[#allocation5_spill] sm:$0xff] %v3911_v23  ;;  %v570_v24 = vrot.slane %v226_v15, 1  ;;  %v571_v25 = vrot.slane %v227_v16, 1  ;;  %v281_v26 = vshrl.u32 %v226_v15, 16  ;;  %v283_v27 = vshll.u32 %v226_v15, 16 }
  0x19   : > { %263 = vst.msk [vmem:[#allocation2] sm:$0xff] %vm262_vm2, %v226_v15  ;;  %v575_v28 = vsel %vm569_vm0, %v573_v21, %v574_v22  ;;  %v288_v29 = vshll.u32 %v227_v16, 16  ;;  %v231_v30 = vpack.c.bf16 %v180_v17, %v180_v17  ;;  %v3917_v31 = vsel %vm569_vm0, %v3356_v4, %v3357_v19  ;;  %v185_v63 = vld [vmem:[%s3888_s17 + $0x68] sm:$0xff]  ;;  %v3959_v8 = vld [vmem:[%s3888_s17 + $0x70] sm:$0x3]  ;;  %v187_v13 = vld [vmem:[%s3888_s17 + $0x78] sm:$0xff] }
  0x1a   : > { %6585 = vst [vmem:[#allocation6_spill] sm:$0xff] %v3917_v31  ;;  %v572_v32 = vsel %vm569_vm0, %v570_v24, %v571_v25  ;;  %v285_v33 = vrot.slane %v283_v27, 1  ;;  %v3359_v34 = vrot.slane %v180_v17, 1  ;;  %v293_v35 = vshrl.u32 %v228_v9, 16  ;;  %v188_v14 = vld [vmem:[%s3888_s17 + $0x80] sm:$0xff]  ;;  %v190_v27 = vld [vmem:[%s3888_s17 + $0x90] sm:$0xff] }
  0x1b   : > { %830 = vrot.lane.b32.xlu0 %v575_v28, %s3847_s19  ;;  %618 = vrot.lane.b32.xlu1 %v572_v32, %s3848_s20  ;;  %v290_v36 = vrot.slane %v288_v29, 1  ;;  %v577_v37 = vrot.slane %v231_v30, 1  ;;  %v295_v38 = vshll.u32 %v228_v9, 16  ;;  %v300_v39 = vshll.u32 %v229_v11, 16  ;;  %v3828_v15 = vld [vmem:[%s6575_s1] sm:$0xff]   ;;  %v3829_v29 = vld [vmem:[%s6575_s1 + $0x8] sm:$0xff]  }
  0x1c   : > { %v286_v42 = vor.u32 %v285_v33, %v281_v26  ;;  %v3925_v43 = vsel %vm569_vm0, %v3357_v19, %v3359_v34  ;;  %v305_v44 = vshrl.u32 %v3893_v3, 16  ;;  %v307_v45 = vshll.u32 %v3893_v3, 16  ;;  %3733 = vmatprep.subr.bf16.mxu0 %v3828_v15  ;;  %v3982_v22 = vld [vmem:[%s3888_s17 + $0x88] sm:$0x3] }
  0x1d   : > { %6586 = vst [vmem:[#allocation7_spill] sm:$0xff] %v3925_v43  ;;  %v297_v46 = vrot.slane %v295_v38, 1  ;;  %v302_v47 = vrot.slane %v300_v39, 1  ;;  %v312_v48 = vshll.u32 %v231_v30, 16  ;;  %v3931_v52 = vpack.c.bf16 %v182_v41, %v181_v40  ;;  %3734 = vmatpush3.bf16.msra.mxu0 %v3828_v15  ;;  %v193_v38 = vld [vmem:[%s3888_s17 + $0xa8] sm:$0xff]  ;;  %v194_v39 = vld [vmem:[%s3888_s17 + $0xb0] sm:$0xff] }
  0x1e   : > { %v291_v50 = vsel %vm279_vm1, %v286_v42, %v290_v36  ;;  %v309_v51 = vrot.slane %v307_v45, 1  ;;  %v3361_v53 = vrot.slane %v181_v40, 1  ;;  %v3936_v54 = vsel %vm569_vm0, %v576_v18, %v577_v37  ;;  %3735 = vmatprep.subr.bf16.mxu0 %v3829_v29  ;;  %v4008_v37 = vld [vmem:[%s3888_s17 + $0xa0] sm:$0x3] }
  0x1f   : > { %620 = vrot.lane.b32.xlu1 %v575_v28, %s3848_s20  ;;  %472 = vrot.lane.b32.xlu0 %v291_v50, %s3849_s21  ;;  %v298_v55 = vor.u32 %v297_v46, %v293_v35  ;;  %v314_v56 = vrot.slane %v312_v48, 1  ;;  %v3362_v57 = vrot.slane %v182_v41, 1  ;;  %v3938_v59 = vpack.c.bf16 %v183_v49, %v183_v49  ;;  %266 = vst.msk [vmem:[#allocation2 + $0x18] sm:$0xff] %vm262_vm2, %v3931_v52  ;;  %v191_v28 = vld [vmem:[%s3888_s17 + $0x98] sm:$0xff]  ;;  %v196_v46 = vld [vmem:[%s3888_s17 + $0xc0] sm:$0xff] }
  0x20   : > { %v310_v58 = vor.u32 %v309_v51, %v305_v44  ;;  %v319_v60 = vshll.u32 %v3931_v52, 16  ;;  %v3364_v61 = vrot.slane %v183_v49, 1  ;;  %v317_v4 = vshrl.u32 %v3931_v52, 16  ;;  %v4031_v50 = vld [vmem:[%s3888_s17 + $0xb8] sm:$0x3] }
  0x21   : > { %v303_v0 = vsel %vm279_vm1, %v298_v55, %v302_v47  ;;  %v3947_v1 = vsel %vm569_vm0, %v3361_v53, %v3362_v57  ;;  %v3956_v5 = vpack.c.bf16 %v185_v63, %v184_v62  ;;  %v3366_v6 = vrot.slane %v184_v62, 1  ;;  %3736 = vmatpush3.bf16.msra.mxu0 %v3829_v29  ;;  %v197_v47 = vld [vmem:[%s3888_s17 + $0xc8] sm:$0xff]  ;;  %v199_v62 = vld [vmem:[%s3888_s17 + $0xd8] sm:$0xff] }
  0x22   : > { %6587 = vst [vmem:[#allocation8_spill] sm:$0xff] %v3947_v1  ;;  %v3950_v2 = vsel %vm569_vm0, %v3362_v57, %v3364_v61  ;;  %v3367_v7 = vrot.slane %v185_v63, 1  ;;  %v315_v9 = vsel %vm279_vm1, %v310_v58, %v314_v56  ;;  %v321_v10 = vrot.slane %v319_v60, 1  ;;  %v200_v63 = vld [vmem:[%s3888_s17 + $0xe0] sm:$0xff] }
  0x23   : > { %6588 = vst [vmem:[#allocation9_spill] sm:$0xff] %v3950_v2  ;;  %832 = vrot.lane.b32.xlu1 %v3936_v54, %s3847_s19  ;;  %474 = vrot.lane.b32.xlu0 %v303_v0, %s3849_s21  ;;  %v324_v11 = vshll.u32 %v3938_v59, 16  ;;  %v3369_v12 = vrot.slane %v3959_v8, 1  ;;  %267 = vst.msk [vmem:[#allocation2 + $0x20] sm:$0xff] %vm262_vm2, %v3956_v5  ;;  %v3979_v18 = vpack.c.bf16 %v188_v14, %v187_v13  ;;  %v3371_v19 = vrot.slane %v187_v13, 1 }
  0x24   : > { %v3970_v16 = vsel %vm569_vm0, %v3366_v6, %v3367_v7  ;;  %v3372_v21 = vrot.slane %v188_v14, 1  ;;  %v322_v24 = vor.u32 %v321_v10, %v317_v4  ;;  %v3374_v26 = vrot.slane %v3982_v22, 1  ;;  %v4075_v14 = vld [vmem:[%s3888_s17 + $0xe8] sm:$0x3] }
  0x25   : > { %6589 = vst [vmem:[#allocation10_spill] sm:$0xff] %v3970_v16  ;;  %v3975_v17 = vsel %vm569_vm0, %v3367_v7, %v3369_v12  ;;  %v326_v25 = vrot.slane %v324_v11, 1  ;;  %268 = vst.msk [vmem:[#allocation2 + $0x28] sm:$0xff] %vm262_vm2, %v3979_v18  ;;  %v4002_v33 = vpack.c.bf16 %v191_v28, %v190_v27  ;;  %v3376_v34 = vrot.slane %v190_v27, 1 }
  0x26   : > { %6590 = vst [vmem:[#allocation11_spill] sm:$0xff] %v3975_v17  ;;  %v3991_v30 = vsel %vm569_vm0, %v3371_v19, %v3372_v21  ;;  %v3996_v32 = vsel %vm569_vm0, %v3372_v21, %v3374_v26  ;;  %v3377_v36 = vrot.slane %v191_v28, 1  ;;  %v579_v41 = vrot.slane %v3931_v52, 1  ;;  %v202_v19 = vld [vmem:[%s3888_s17 + $0xf0] sm:$0xff]  ;;  %v203_v21 = vld [vmem:[%s3888_s17 + $0xf8] sm:$0xff] }
  0x27   : > { %763 = vrot.lane.b32.xlu1 %v315_v9, %s3850_s24  ;;  %761 = vrot.lane.b32.xlu0 %v303_v0, %s3850_s24  ;;  %6591 = vst [vmem:[#allocation12_spill] sm:$0xff] %v3991_v30  ;;  %6592 = vst [vmem:[#allocation13_spill] sm:$0xff] %v3996_v32  ;;  %v4005_v35 = vsel %vm279_vm1, %v322_v24, %v326_v25  ;;  %v580_v42 = vrot.slane %v3938_v59, 1  ;;  %v4026_v45 = vpack.c.bf16 %v194_v39, %v193_v38  ;;  %v4058_v0 = vld [vmem:[%s3888_s17 + $0xd0] sm:$0x3] }
  0x28   : > { %269 = vst.msk [vmem:[#allocation2 + $0x30] sm:$0xff] %vm262_vm2, %v4002_v33  ;;  %v4016_v40 = vsel %vm569_vm0, %v3376_v34, %v3377_v36  ;;  %v3381_v48 = vrot.slane %v193_v38, 1  ;;  %v3382_v49 = vrot.slane %v194_v39, 1  ;;  %v3384_v53 = vrot.slane %v4031_v50, 1 }
  0x29   : > { %6593 = vst [vmem:[#allocation14_spill] sm:$0xff] %v4016_v40  ;;  %270 = vst.msk [vmem:[#allocation2 + $0x38] sm:$0xff] %vm262_vm2, %v4026_v45  ;;  %v4039_v55 = vpack.c.bf16 %v197_v47, %v196_v46  ;;  %v4045_v56 = vsel %vm569_vm0, %v579_v41, %v580_v42  ;;  %v235_v57 = vpack.c.bf16 %v3959_v8, %v3959_v8  ;;  %v331_v58 = vshll.u32 %v3956_v5, 16  ;;  %v206_v41 = vld [vmem:[%s3888_s17 + $0x110] sm:$0xff] }
  0x2a   : > { %v4036_v51 = vsel %vm569_vm0, %v3381_v48, %v3382_v49  ;;  %v4051_v59 = vsel %vm569_vm0, %v3382_v49, %v3384_v53  ;;  %v3386_v60 = vrot.slane %v196_v46, 1  ;;  %v3387_v61 = vrot.slane %v197_v47, 1  ;;  %v3830_v48 = vld [vmem:[%s6575_s1 + $0x10] ss:$0 sps:$4 sm:$0x33]  }
  0x2b   : > { %896 = vrot.lane.b32.xlu0 %v3893_v3, %s3851_s27  ;;  %898 = vrot.lane.b32.xlu1 %v3931_v52, %s3851_s27  ;;  %v3379_v3 = vrot.slane %v4008_v37, 1  ;;  %6595 = vst [vmem:[#allocation16_spill] sm:$0xff] %v4036_v51  ;;  %6596 = vst [vmem:[#allocation17_spill] sm:$0xff] %v4051_v59  ;;  %v3389_v6 = vrot.slane %v4058_v0, 1  ;;  %v329_v7 = vshrl.u32 %v3956_v5, 16  ;;  %v4069_v8 = vpack.c.bf16 %v200_v63, %v199_v62 }
  0x2c   : > { %271 = vst.msk [vmem:[#allocation2 + $0x40] sm:$0xff] %vm262_vm2, %v4039_v55  ;;  %v4061_v4 = vsel %vm569_vm0, %v3386_v60, %v3387_v61  ;;  %v336_v10 = vshll.u32 %v235_v57, 16  ;;  %v3391_v12 = vrot.slane %v199_v62, 1  ;;  %v3392_v13 = vrot.slane %v200_v63, 1  ;;  %v209_v62 = vld [vmem:[%s3888_s17 + $0x128] sm:$0xff]  ;;  %3809 = vmatprep.subr.msk.bf16.mxu0 %vm1192_vm3, %v3830_v48 }
  0x2d   : > { %v4024_v44 = vsel %vm569_vm0, %v3377_v36, %v3379_v3  ;;  %6597 = vst [vmem:[#allocation18_spill] sm:$0xff] %v4061_v4  ;;  %v4072_v11 = vsel %vm569_vm0, %v3387_v61, %v3389_v6  ;;  %272 = vst.msk [vmem:[#allocation2 + $0x48] sm:$0xff] %vm262_vm2, %v4069_v8  ;;  %v3394_v15 = vrot.slane %v4075_v14, 1  ;;  %v4092_v28 = vpack.c.bf16 %v203_v21, %v202_v19  ;;  %v4095_v36 = vld [vmem:[%s3888_s17 + $0x100] sm:$0x3]  ;;  %v205_v3 = vld [vmem:[%s3888_s17 + $0x108] sm:$0xff] }
  0x2e   : > { %6594 = vst [vmem:[#allocation15_spill] sm:$0xff] %v4024_v44  ;;  %6598 = vst [vmem:[#allocation19_spill] sm:$0xff] %v4072_v11  ;;  %v4087_v24 = vsel %vm569_vm0, %v3391_v12, %v3392_v13  ;;  %v338_v26 = vrot.slane %v336_v10, 1  ;;  %v3396_v29 = vrot.slane %v202_v19, 1  ;;  %v3397_v34 = vrot.slane %v203_v21, 1  ;;  %v208_v61 = vld [vmem:[%s3888_s17 + $0x120] sm:$0xff] }
  0x2f   : > { %973 = vrot.lane.b32.xlu0 %v315_v9, %s3852_s28  ;;  %975 = vrot.lane.b32.xlu1 %v4005_v35, %s3852_s28  ;;  %6599 = vst [vmem:[#allocation20_spill] sm:$0xff] %v4087_v24  ;;  %v4090_v27 = vsel %vm569_vm0, %v3392_v13, %v3394_v15  ;;  %v583_v38 = vrot.slane %v235_v57, 1  ;;  %273 = vst.msk [vmem:[#allocation2 + $0x50] sm:$0xff] %vm262_vm2, %v4092_v28  ;;  %v3399_v39 = vrot.slane %v4095_v36, 1  ;;  %v343_v46 = vshll.u32 %v3979_v18, 16  ;;  %v211_v21 = vld [vmem:[%s3888_s17 + $0x138] sm:$0xff] }
  0x30   : > { %6600 = vst [vmem:[#allocation21_spill] sm:$0xff] %v4090_v27  ;;  %v4112_v47 = vsel %vm569_vm0, %v3396_v29, %v3397_v34  ;;  %v4120_v53 = vpack.c.bf16 %v206_v41, %v205_v3  ;;  %v3401_v57 = vrot.slane %v205_v3, 1  ;;  %v341_v60 = vshrl.u32 %v3979_v18, 16  ;;  %v4828_v27 = vld [vmem:[#allocation3 + $0x198] sm:$0xff] }
  0x31   : > { %6601 = vst [vmem:[#allocation22_spill] sm:$0xff] %v4112_v47  ;;  %v4118_v49 = vsel %vm569_vm0, %v3397_v34, %v3399_v39  ;;  %v345_v63 = vrot.slane %v343_v46, 1  ;;  %v4140_v12 = vpack.c.bf16 %v209_v62, %v208_v61  ;;  %v3406_v13 = vrot.slane %v208_v61, 1  ;;  %v4153_v34 = vld [vmem:[%s3888_s17 + $0x130] sm:$0x3]  ;;  %6615 = vst [vmem:[#allocation36_spill] sm:$0xff] %v4828_v27 }
  0x32   : > { %6602 = vst [vmem:[#allocation23_spill] sm:$0xff] %v4118_v49  ;;  %274 = vst.msk [vmem:[#allocation2 + $0x58] sm:$0xff] %vm262_vm2, %v4120_v53  ;;  %v3407_v19 = vrot.slane %v209_v62, 1  ;;  %v3411_v3 = vrot.slane %v211_v21, 1 }
  0x33   : > { %1042 = vrot.lane.b32.xlu0 %v3936_v54, %s3853_s29  ;;  %476 = vrot.lane.b32.xlu1 %v315_v9, %s3849_s21  ;;  %v333_v9 = vrot.slane %v331_v58, 1  ;;  %v3402_v58 = vrot.slane %v206_v41, 1  ;;  %275 = vst.msk [vmem:[#allocation2 + $0x60] sm:$0xff] %vm262_vm2, %v4140_v12 }
  0x35   : > { %v334_v25 = vor.u32 %v333_v9, %v329_v7  ;;  %v4130_v7 = vsel %vm569_vm0, %v3401_v57, %v3402_v58  ;;  %v4137_v9 = vld [vmem:[%s3888_s17 + $0x118] sm:$0x3]  ;;  %v4175_v57 = vld [vmem:[%s3888_s17 + $0x148] sm:$0x3] }
  0x36   : > { %6603 = vst [vmem:[#allocation24_spill] sm:$0xff] %v4130_v7  ;;  %v3404_v10 = vrot.slane %v4137_v9, 1 }
  0x37   : > { %1044 = vrot.lane.b32.xlu0 %v4045_v56, %s3853_s29  ;;  %478 = vrot.lane.b32.xlu1 %v4005_v35, %s3849_s21  ;;  %v339_v42 = vsel %vm279_vm1, %v334_v25, %v338_v26  ;;  %v212_v25 = vld [vmem:[%s3888_s17 + $0x140] sm:$0xff]  ;;  %v346_v26 = vor.u32 %v345_v63, %v341_v60  ;;  %v239_v63 = vpack.c.bf16 %v4008_v37, %v4008_v37 }
  0x38   : > { %v4146_v15 = vsel %vm569_vm0, %v3402_v58, %v3404_v10  ;;  %v3412_v46 = vrot.slane %v212_v25, 1  ;;  %v585_v58 = vrot.slane %v3979_v18, 1 }
  0x39   : > { %6604 = vst [vmem:[#allocation25_spill] sm:$0xff] %v4146_v15  ;;  %v360_v10 = vshll.u32 %v239_v63, 16 }
  0x3b   : > { %622 = vrot.lane.b32.xlu0 %v3936_v54, %s3848_s20  ;;  %624 = vrot.lane.b32.xlu1 %v4045_v56, %s3848_s20  ;;  %v582_v54 = vrot.slane %v3956_v5, 1 }
  0x3f   : > { %688 = vrot.lane.b32.xlu0 %v3931_v52, %s3846_s18  ;;  %690 = vrot.lane.b32.xlu1 %v3956_v5, %s3846_s18  ;;  %v237_v52 = vpack.c.bf16 %v3982_v22, %v3982_v22  ;;  %v584_v22 = vsel %vm569_vm0, %v582_v54, %v583_v38  ;;  %v4156_v54 = vsel %vm569_vm0, %v3406_v13, %v3407_v19  ;;  %v214_v13 = vld [vmem:[%s3888_s17 + $0x150] sm:$0xff] }
  0x40   : > { %6605 = vst [vmem:[#allocation26_spill] sm:$0xff] %v4156_v54  ;;  %v4159_v38 = vpack.c.bf16 %v212_v25, %v211_v21  ;;  %v362_v21 = vrot.slane %v360_v10, 1  ;;  %v588_v25 = vrot.slane %v4002_v33, 1  ;;  %v218_v10 = vld [vmem:[%s3888_s17 + $0x170] sm:$0xff] }
  0x41   : > { %v348_v6 = vshll.u32 %v237_v52, 16  ;;  %v586_v60 = vrot.slane %v237_v52, 1  ;;  %v353_v52 = vshrl.u32 %v4002_v33, 16 }
  0x42   : > { %276 = vst.msk [vmem:[#allocation2 + $0x68] sm:$0xff] %vm262_vm2, %v4159_v38 }
  0x43   : > { %765 = vrot.lane.b32.xlu0 %v4005_v35, %s3850_s24  ;;  %767 = vrot.lane.b32.xlu1 %v339_v42, %s3850_s24  ;;  %v1194_v35 = vsel %vm1192_vm3, %v3830_v48, 0  ;;  %v350_v29 = vrot.slane %v348_v6, 1  ;;  %v4172_v48 = vsel %vm569_vm0, %v3411_v3, %v3412_v46  ;;  %v587_v62 = vsel %vm569_vm0, %v585_v58, %v586_v60 }
  0x44   : > { %3738 = vmatpush3.bf16.msra.mxu0 %v1194_v35  ;;  %6607 = vst [vmem:[#allocation28_spill] sm:$0xff] %v4172_v48  ;;  %v355_v6 = vshll.u32 %v4002_v33, 16  ;;  %v241_v3 = vpack.c.bf16 %v4031_v50, %v4031_v50 }
  0x45   : > { %v351_v41 = vsel %vm279_vm1, %v346_v26, %v350_v29  ;;  %v3416_v26 = vrot.slane %v214_v13, 1 }
  0x46   : > { %v357_v35 = vrot.slane %v355_v6, 1 }
  0x47   : > { %834 = vrot.lane.b32.xlu0 %v4045_v56, %s3847_s19  ;;  %836 = vrot.lane.b32.xlu1 %v584_v22, %s3847_s19  ;;  %v3409_v56 = vrot.slane %v4153_v34, 1 }
  0x48   : > { %v358_v37 = vor.u32 %v357_v35, %v353_v52  ;;  %v372_v52 = vshll.u32 %v241_v3, 16  ;;  %v217_v35 = vld [vmem:[%s3888_s17 + $0x168] sm:$0xff] }
  0x49   : > { %v4166_v39 = vsel %vm569_vm0, %v3407_v19, %v3409_v56  ;;  %v215_v19 = vld [vmem:[%s3888_s17 + $0x158] sm:$0xff]  ;;  %v589_v56 = vrot.slane %v239_v63, 1  ;;  %v365_v63 = vshrl.u32 %v4026_v45, 16 }
  0x4a   : > { %6606 = vst [vmem:[#allocation27_spill] sm:$0xff] %v4166_v39  ;;  %v363_v29 = vsel %vm279_vm1, %v358_v37, %v362_v21  ;;  %v3421_v37 = vrot.slane %v217_v35, 1  ;;  %v3422_v21 = vrot.slane %v218_v10, 1 }
  0x4b   : > { %900 = vrot.lane.b32.xlu0 %v3956_v5, %s3851_s27  ;;  %902 = vrot.lane.b32.xlu1 %v3979_v18, %s3851_s27  ;;  %v3414_v5 = vrot.slane %v4175_v57, 1  ;;  %v590_v60 = vsel %vm569_vm0, %v588_v25, %v589_v56  ;;  %v592_v56 = vrot.slane %v241_v3, 1  ;;  %v377_v3 = vshrl.u32 %v4039_v55, 16 }
  0x4d   : > { %v4182_v61 = vsel %vm569_vm0, %v3412_v46, %v3414_v5  ;;  %v367_v46 = vshll.u32 %v4026_v45, 16 }
  0x4e   : > { %6608 = vst [vmem:[#allocation29_spill] sm:$0xff] %v4182_v61 }
  0x4f   : > { %977 = vrot.lane.b32.xlu0 %v339_v42, %s3852_s28  ;;  %979 = vrot.lane.b32.xlu1 %v351_v41, %s3852_s28  ;;  %v369_v6 = vrot.slane %v367_v46, 1 }
  0x53   : > { %1046 = vrot.lane.b32.xlu0 %v584_v22, %s3853_s29  ;;  %480 = vrot.lane.b32.xlu1 %v339_v42, %s3849_s21  ;;  %v4197_v42 = vpack.c.bf16 %v215_v19, %v214_v13  ;;  %v370_v13 = vor.u32 %v369_v6, %v365_v63  ;;  %v243_v63 = vpack.c.bf16 %v4058_v0, %v4058_v0  ;;  %v379_v6 = vshll.u32 %v4039_v55, 16  ;;  %v4265_v0 = vld [vmem:[%s3888_s17 + $0x188] sm:$0xff] }
  0x55   : > { %277 = vst.msk [vmem:[#allocation2 + $0x70] sm:$0xff] %vm262_vm2, %v4197_v42 }
  0x57   : > { %1048 = vrot.lane.b32.xlu0 %v587_v62, %s3853_s29  ;;  %482 = vrot.lane.b32.xlu1 %v351_v41, %s3849_s21 }
  0x5b   : > { %626 = vrot.lane.b32.xlu0 %v584_v22, %s3848_s20  ;;  %628 = vrot.lane.b32.xlu1 %v587_v62, %s3848_s20  ;;  %v3417_v22 = vrot.slane %v215_v19, 1  ;;  %v374_v19 = vrot.slane %v372_v52, 1  ;;  %v381_v52 = vrot.slane %v379_v6, 1 }
  0x5d   : > { %v4211_v5 = vsel %vm569_vm0, %v3416_v26, %v3417_v22  ;;  %v375_v25 = vsel %vm279_vm1, %v370_v13, %v374_v19  ;;  %v4241_v26 = vld [vmem:[%s3888_s17 + $0x178] sm:$0x3]  ;;  %v4262_v13 = vld [vmem:[%s3888_s17 + $0x180] sm:$0xff]  ;;  %v594_v19 = vrot.slane %v4039_v55, 1 }
  0x5e   : > { %6609 = vst [vmem:[#allocation30_spill] sm:$0xff] %v4211_v5 }
  0x5f   : > { %692 = vrot.lane.b32.xlu0 %v3979_v18, %s3846_s18  ;;  %694 = vrot.lane.b32.xlu1 %v4002_v33, %s3846_s18  ;;  %v4214_v18 = vld [vmem:[%s3888_s17 + $0x160] sm:$0x3] }
  0x60   : > { %v3419_v58 = vrot.slane %v4214_v18, 1 }
  0x62   : > { %v4222_v50 = vsel %vm569_vm0, %v3417_v22, %v3419_v58  ;;  %v3424_v22 = vrot.slane %v4241_v26, 1 }
  0x63   : > { %769 = vrot.lane.b32.xlu0 %v351_v41, %s3850_s24  ;;  %771 = vrot.lane.b32.xlu1 %v363_v29, %s3850_s24  ;;  %6610 = vst [vmem:[#allocation31_spill] sm:$0xff] %v4222_v50  ;;  %v4228_v41 = vpack.c.bf16 %v218_v10, %v217_v35  ;;  %v384_v35 = vshll.u32 %v243_v63, 16 }
  0x64   : > { %v4248_v46 = vsel %vm569_vm0, %v3422_v21, %v3424_v22  ;;  %v595_v22 = vrot.slane %v243_v63, 1  ;;  %v389_v63 = vshrl.u32 %v4069_v8, 16 }
  0x65   : > { %278 = vst.msk [vmem:[#allocation2 + $0x78] sm:$0xff] %vm262_vm2, %v4228_v41  ;;  %6612 = vst [vmem:[#allocation33_spill] sm:$0xff] %v4248_v46  ;;  %v386_v10 = vrot.slane %v384_v35, 1 }
  0x67   : > { %838 = vrot.lane.b32.xlu0 %v587_v62, %s3847_s19  ;;  %840 = vrot.lane.b32.xlu1 %v590_v60, %s3847_s19  ;;  %v4238_v62 = vsel %vm569_vm0, %v3421_v37, %v3422_v21  ;;  %v3426_v37 = vrot.slane %v4262_v13, 1 }
  0x68   : > { %6611 = vst [vmem:[#allocation32_spill] sm:$0xff] %v4238_v62 }
  0x6b   : > { %904 = vrot.lane.b32.xlu0 %v4002_v33, %s3851_s27  ;;  %906 = vrot.lane.b32.xlu1 %v4026_v45, %s3851_s27  ;;  %v591_v33 = vrot.slane %v4026_v45, 1 }
  0x6d   : > { %v593_v58 = vsel %vm569_vm0, %v591_v33, %v592_v56  ;;  %v245_v33 = vpack.c.bf16 %v4075_v14, %v4075_v14  ;;  %v391_v56 = vshll.u32 %v4069_v8, 16 }
  0x6f   : > { %981 = vrot.lane.b32.xlu0 %v363_v29, %s3852_s28  ;;  %983 = vrot.lane.b32.xlu1 %v375_v25, %s3852_s28  ;;  %v393_v35 = vrot.slane %v391_v56, 1 }
  0x73   : > { %1050 = vrot.lane.b32.xlu0 %v590_v60, %s3853_s29  ;;  %484 = vrot.lane.b32.xlu1 %v363_v29, %s3849_s21  ;;  %v382_v29 = vor.u32 %v381_v52, %v377_v3  ;;  %v596_v52 = vsel %vm569_vm0, %v594_v19, %v595_v22 }
  0x75   : > { %v387_v21 = vsel %vm279_vm1, %v382_v29, %v386_v10  ;;  %v396_v29 = vshll.u32 %v245_v33, 16 }
  0x77   : > { %1052 = vrot.lane.b32.xlu0 %v593_v58, %s3853_s29  ;;  %486 = vrot.lane.b32.xlu1 %v375_v25, %s3849_s21 }
  0x7b   : > { %630 = vrot.lane.b32.xlu0 %v590_v60, %s3848_s20  ;;  %632 = vrot.lane.b32.xlu1 %v593_v58, %s3848_s20  ;;  %v3427_v60 = vrot.slane %v4265_v0, 1 }
  0x7d   : > { %v4279_v6 = vsel %vm569_vm0, %v3426_v37, %v3427_v60  ;;  %v394_v37 = vor.u32 %v393_v35, %v389_v63  ;;  %v247_v35 = vpack.c.bf16 %v4095_v36, %v4095_v36 }
  0x7e   : > { %6613 = vst [vmem:[#allocation34_spill] sm:$0xff] %v4279_v6 }
  0x7f   : > { %696 = vrot.lane.b32.xlu0 %v4026_v45, %s3846_s18  ;;  %698 = vrot.lane.b32.xlu1 %v4039_v55, %s3846_s18  ;;  %v4282_v45 = vld [vmem:[%s3888_s17 + $0x190] sm:$0x3]  ;;  %v408_v36 = vshll.u32 %v247_v35, 16 }
  0x80   : > { %v3429_v3 = vrot.slane %v4282_v45, 1 }
  0x82   : > { %v4290_v14 = vsel %vm569_vm0, %v3427_v60, %v3429_v3  ;;  %v598_v60 = vrot.slane %v245_v33, 1  ;;  %v403_v33 = vshll.u32 %v4092_v28, 16 }
  0x83   : > { %773 = vrot.lane.b32.xlu0 %v375_v25, %s3850_s24  ;;  %775 = vrot.lane.b32.xlu1 %v387_v21, %s3850_s24  ;;  %6614 = vst [vmem:[#allocation35_spill] sm:$0xff] %v4290_v14  ;;  %v398_v25 = vrot.slane %v396_v29, 1 }
  0x85   : > { %v399_v19 = vsel %vm279_vm1, %v394_v37, %v398_v25 }
  0x87   : > { %842 = vrot.lane.b32.xlu0 %v593_v58, %s3847_s19  ;;  %844 = vrot.lane.b32.xlu1 %v596_v52, %s3847_s19  ;;  %v597_v58 = vrot.slane %v4069_v8, 1 }
  0x88   : > { %v687_v10 = vpop.permute.xlu1 %686 }
  0x89   : > { %v685_v6 = vpop.permute.xlu0 %684 }
  0x8b   : > { %908 = vrot.lane.b32.xlu0 %v4039_v55, %s3851_s27  ;;  %910 = vrot.lane.b32.xlu1 %v4069_v8, %s3851_s27  ;;  %v599_v55 = vsel %vm569_vm0, %v597_v58, %v598_v60  ;;  %v410_v58 = vrot.slane %v408_v36, 1 }
  0x8d   : > { %v831_v22 = vpop.permute.xlu0 %830  ;;  %v619_v56 = vpop.permute.xlu1 %618 }
  0x8f   : > { %985 = vrot.lane.b32.xlu0 %v387_v21, %s3852_s28  ;;  %987 = vrot.lane.b32.xlu1 %v399_v19, %s3852_s28 }
  0x91   : > { %v621_v3 = vpop.permute.xlu1 %620  ;;  %v473_v63 = vpop.permute.xlu0 %472 }
  0x92   : > { %521 = vst.msk [vmem:[#allocation2] sm:$0xff] %vm520_vm4, %v473_v63  ;;  %v601_v63 = vrot.slane %v247_v35, 1  ;;  %v413_v35 = vshrl.u32 %v4120_v53, 16 }
  0x93   : > { %667 = vst.msk [vmem:[#allocation2] sm:$0xff] %vm666_vm5, %v619_v56  ;;  %1054 = vrot.lane.b32.xlu0 %v596_v52, %s3853_s29  ;;  %488 = vrot.lane.b32.xlu1 %v387_v21, %s3849_s21  ;;  %v401_v21 = vshrl.u32 %v4092_v28, 16 }
  0x94   : > { %733 = vst.msk [vmem:[#allocation2] sm:$0xff] %vm732_vm6, %v685_v6  ;;  %v405_v6 = vrot.slane %v403_v33, 1  ;;  %v249_v33 = vpack.c.bf16 %v4137_v9, %v4137_v9 }
  0x95   : > { %v833_v29 = vpop.permute.xlu1 %832  ;;  %v475_v37 = vpop.permute.xlu0 %474 }
  0x96   : > { %522 = vst.msk [vmem:[#allocation2 + $0x8] sm:$0xff] %vm520_vm4, %v475_v37  ;;  %v420_v36 = vshll.u32 %v249_v33, 16 }
  0x97   : > { %668 = vst.msk [vmem:[#allocation2 + $0x8] sm:$0xff] %vm666_vm5, %v621_v3  ;;  %1056 = vrot.lane.b32.xlu0 %v599_v55, %s3853_s29  ;;  %490 = vrot.lane.b32.xlu1 %v399_v19, %s3849_s21 }
  0x98   : > { %734 = vst.msk [vmem:[#allocation2 + $0x8] sm:$0xff] %vm732_vm6, %v687_v10  ;;  %v406_v10 = vor.u32 %v405_v6, %v401_v21 }
  0x99   : > { %v764_v25 = vpop.permute.xlu1 %763  ;;  %v762_v56 = vpop.permute.xlu0 %761 }
  0x9a   : > { %811 = vst.msk [vmem:[#allocation2 + $0x8] sm:$0xff] %vm809_vm7, %v764_v25  ;;  %810 = vst.msk [vmem:[#allocation2] sm:$0xff] %vm809_vm7, %v762_v56  ;;  %v422_v56 = vrot.slane %v420_v36, 1 }
  0x9b   : > { %634 = vrot.lane.b32.xlu0 %v596_v52, %s3848_s20  ;;  %636 = vrot.lane.b32.xlu1 %v599_v55, %s3848_s20  ;;  %879 = vst.msk [vmem:[#allocation2] sm:$0xff] %vm878_vm8, %v831_v22  ;;  %880 = vst.msk [vmem:[#allocation2 + $0x8] sm:$0xff] %vm878_vm8, %v833_v29  ;;  %v600_v52 = vrot.slane %v4092_v28, 1  ;;  %v411_v22 = vsel %vm279_vm1, %v406_v10, %v410_v58  ;;  %v415_v29 = vshll.u32 %v4120_v53, 16 }
  0x9d   : > { %v897_v60 = vpop.permute.xlu0 %896  ;;  %v899_v3 = vpop.permute.xlu1 %898  ;;  %v417_v6 = vrot.slane %v415_v29, 1 }
  0x9e   : > { %945 = vst.msk [vmem:[#allocation2] sm:$0xff] %vm944_vm9, %v897_v60  ;;  %946 = vst.msk [vmem:[#allocation2 + $0x8] sm:$0xff] %vm944_vm9, %v899_v3 }
  0x9f   : > { %700 = vrot.lane.b32.xlu0 %v4069_v8, %s3846_s18  ;;  %702 = vrot.lane.b32.xlu1 %v4092_v28, %s3846_s18  ;;  %v602_v8 = vsel %vm569_vm0, %v600_v52, %v601_v63  ;;  %v604_v63 = vrot.slane %v249_v33, 1  ;;  %v427_v33 = vshll.u32 %v4140_v12, 16 }
  0xa1   : > { %v974_v37 = vpop.permute.xlu0 %973  ;;  %v976_v21 = vpop.permute.xlu1 %975 }
  0xa2   : > { %1022 = vst.msk [vmem:[#allocation2] sm:$0xff] %vm1021_vm10, %v974_v37  ;;  %1023 = vst.msk [vmem:[#allocation2 + $0x8] sm:$0xff] %vm1021_vm10, %v976_v21 }
  0xa3   : > { %777 = vrot.lane.b32.xlu0 %v399_v19, %s3850_s24  ;;  %779 = vrot.lane.b32.xlu1 %v411_v22, %s3850_s24  ;;  %v418_v19 = vor.u32 %v417_v6, %v413_v35  ;;  %v251_v6 = vpack.c.bf16 %v4153_v34, %v4153_v34 }
  0xa5   : > { %v1043_v9 = vpop.permute.xlu0 %1042  ;;  %v477_v25 = vpop.permute.xlu1 %476  ;;  %v423_v60 = vsel %vm279_vm1, %v418_v19, %v422_v56  ;;  %v432_v19 = vshll.u32 %v251_v6, 16 }
  0xa6   : > { %1091 = vst.msk [vmem:[#allocation2] sm:$0xff] %vm6582_vm11, %v1043_v9 }
  0xa7   : > { %523 = vst.msk [vmem:[#allocation2 + $0x10] sm:$0xff] %vm520_vm4, %v477_v25  ;;  %846 = vrot.lane.b32.xlu0 %v599_v55, %s3847_s19  ;;  %848 = vrot.lane.b32.xlu1 %v602_v8, %s3847_s19  ;;  %v425_v25 = vshrl.u32 %v4140_v12, 16 }
  0xa9   : > { %v1045_v10 = vpop.permute.xlu0 %1044  ;;  %v479_v58 = vpop.permute.xlu1 %478 }
  0xaa   : > { %1092 = vst.msk [vmem:[#allocation2 + $0x8] sm:$0xff] %vm6582_vm11, %v1045_v10 }
  0xab   : > { %524 = vst.msk [vmem:[#allocation2 + $0x18] sm:$0xff] %vm520_vm4, %v479_v58  ;;  %912 = vrot.lane.b32.xlu0 %v4092_v28, %s3851_s27  ;;  %914 = vrot.lane.b32.xlu1 %v4120_v53, %s3851_s27  ;;  %v603_v28 = vrot.slane %v4120_v53, 1  ;;  %v434_v58 = vrot.slane %v432_v19, 1 }
  0xad   : > { %v623_v55 = vpop.permute.xlu0 %622  ;;  %v625_v3 = vpop.permute.xlu1 %624  ;;  %v1107_v52 = vld [vmem:[#allocation2] sm:$0xff]  ;;  %v605_v35 = vsel %vm569_vm0, %v603_v28, %v604_v63  ;;  %v607_v28 = vrot.slane %v251_v6, 1  ;;  %v253_v63 = vpack.c.bf16 %v4175_v57, %v4175_v57 }
  0xae   : > { %669 = vst.msk [vmem:[#allocation2 + $0x10] sm:$0xff] %vm666_vm5, %v623_v55  ;;  %670 = vst.msk [vmem:[#allocation2 + $0x18] sm:$0xff] %vm666_vm5, %v625_v3  ;;  %3739 = vmatprep.mubr.msk.bf16.mxu0 %vm6578_vm12, %v1107_v52  ;;  %v606_v52 = vrot.slane %v4140_v12, 1 }
  0xaf   : > { %989 = vrot.lane.b32.xlu0 %v411_v22, %s3852_s28  ;;  %991 = vrot.lane.b32.xlu1 %v423_v60, %s3852_s28 }
  0xb1   : > { %v689_v29 = vpop.permute.xlu0 %688  ;;  %v691_v37 = vpop.permute.xlu1 %690  ;;  %v1108_v21 = vld [vmem:[#allocation2 + $0x8] sm:$0xff] }
  0xb2   : > { %735 = vst.msk [vmem:[#allocation2 + $0x10] sm:$0xff] %vm732_vm6, %v689_v29  ;;  %736 = vst.msk [vmem:[#allocation2 + $0x18] sm:$0xff] %vm732_vm6, %v691_v37  ;;  %3740 = vmatmul.mubr.msk.bf16.vlgmr.msra.gmra.mrb[0].mxu0 %vm6578_vm12, %v1108_v21  ;;  %v439_v29 = vshll.u32 %v4159_v38, 16 }
  0xb3   : > { %1058 = vrot.lane.b32.xlu0 %v602_v8, %s3853_s29  ;;  %492 = vrot.lane.b32.xlu1 %v411_v22, %s3849_s21  ;;  %v429_v22 = vrot.slane %v427_v33, 1  ;;  %v437_v33 = vshrl.u32 %v4159_v38, 16 }
  0xb4   : > { %v441_v6 = vrot.slane %v439_v29, 1  ;;  %v451_v29 = vshll.u32 %v4197_v42, 16 }
  0xb5   : > { %v766_v36 = vpop.permute.xlu0 %765  ;;  %v768_v9 = vpop.permute.xlu1 %767  ;;  %v430_v34 = vor.u32 %v429_v22, %v425_v25 }
  0xb6   : > { %812 = vst.msk [vmem:[#allocation2 + $0x10] sm:$0xff] %vm809_vm7, %v766_v36  ;;  %813 = vst.msk [vmem:[#allocation2 + $0x18] sm:$0xff] %vm809_vm7, %v768_v9  ;;  %v444_v36 = vshll.u32 %v253_v63, 16  ;;  %v442_v25 = vor.u32 %v441_v6, %v437_v33  ;;  %v449_v33 = vshrl.u32 %v4197_v42, 16 }
  0xb7   : > { %1060 = vrot.lane.b32.xlu0 %v605_v35, %s3853_s29  ;;  %494 = vrot.lane.b32.xlu1 %v423_v60, %s3849_s21 }
  0xb9   : > { %v835_v56 = vpop.permute.xlu0 %834  ;;  %v837_v10 = vpop.permute.xlu1 %836 }
  0xba   : > { %881 = vst.msk [vmem:[#allocation2 + $0x10] sm:$0xff] %vm878_vm8, %v835_v56  ;;  %882 = vst.msk [vmem:[#allocation2 + $0x18] sm:$0xff] %vm878_vm8, %v837_v10 }
  0xbb   : > { %638 = vrot.lane.b32.xlu0 %v602_v8, %s3848_s20  ;;  %640 = vrot.lane.b32.xlu1 %v605_v35, %s3848_s20  ;;  %v435_v8 = vsel %vm279_vm1, %v430_v34, %v434_v58  ;;  %v610_v58 = vrot.slane %v253_v63, 1 }
  0xbd   : > { %v901_v55 = vpop.permute.xlu0 %900  ;;  %v903_v3 = vpop.permute.xlu1 %902 }
  0xbe   : > { %947 = vst.msk [vmem:[#allocation2 + $0x10] sm:$0xff] %vm944_vm9, %v901_v55  ;;  %948 = vst.msk [vmem:[#allocation2 + $0x18] sm:$0xff] %vm944_vm9, %v903_v3 }
  0xbf   : > { %704 = vrot.lane.b32.xlu0 %v4120_v53, %s3846_s18  ;;  %706 = vrot.lane.b32.xlu1 %v4140_v12, %s3846_s18  ;;  %v608_v53 = vsel %vm569_vm0, %v606_v52, %v607_v28  ;;  %v255_v28 = vpack.c.bf16 %v4214_v18, %v4214_v18 }
  0xc1   : > { %v978_v37 = vpop.permute.xlu0 %977  ;;  %v980_v21 = vpop.permute.xlu1 %979  ;;  %v456_v6 = vshll.u32 %v255_v28, 16 }
  0xc2   : > { %1024 = vst.msk [vmem:[#allocation2 + $0x10] sm:$0xff] %vm1021_vm10, %v978_v37  ;;  %1025 = vst.msk [vmem:[#allocation2 + $0x18] sm:$0xff] %vm1021_vm10, %v980_v21 }
  0xc3   : > { %781 = vrot.lane.b32.xlu0 %v423_v60, %s3850_s24  ;;  %783 = vrot.lane.b32.xlu1 %v435_v8, %s3850_s24  ;;  %v446_v60 = vrot.slane %v444_v36, 1 }
  0xc5   : > { %v1047_v9 = vpop.permute.xlu0 %1046  ;;  %v481_v57 = vpop.permute.xlu1 %480  ;;  %v447_v56 = vsel %vm279_vm1, %v442_v25, %v446_v60 }
  0xc6   : > { %1093 = vst.msk [vmem:[#allocation2 + $0x10] sm:$0xff] %vm6582_vm11, %v1047_v9 }
  0xc7   : > { %525 = vst.msk [vmem:[#allocation2 + $0x20] sm:$0xff] %vm520_vm4, %v481_v57  ;;  %850 = vrot.lane.b32.xlu0 %v605_v35, %s3847_s19  ;;  %852 = vrot.lane.b32.xlu1 %v608_v53, %s3847_s19  ;;  %v458_v57 = vrot.slane %v456_v6, 1  ;;  %v615_v6 = vrot.slane %v4228_v41, 1 }
  0xc9   : > { %v1049_v22 = vpop.permute.xlu0 %1048  ;;  %v483_v19 = vpop.permute.xlu1 %482 }
  0xca   : > { %1094 = vst.msk [vmem:[#allocation2 + $0x18] sm:$0xff] %vm6582_vm11, %v1049_v22 }
  0xcb   : > { %526 = vst.msk [vmem:[#allocation2 + $0x28] sm:$0xff] %vm520_vm4, %v483_v19  ;;  %916 = vrot.lane.b32.xlu0 %v4140_v12, %s3851_s27  ;;  %918 = vrot.lane.b32.xlu1 %v4159_v38, %s3851_s27  ;;  %v609_v12 = vrot.slane %v4159_v38, 1  ;;  %v613_v19 = vrot.slane %v255_v28, 1 }
  0xcd   : > { %v627_v10 = vpop.permute.xlu0 %626  ;;  %v629_v35 = vpop.permute.xlu1 %628  ;;  %v1109_v34 = vld [vmem:[#allocation2 + $0x10] sm:$0xff]  ;;  %v611_v63 = vsel %vm569_vm0, %v609_v12, %v610_v58  ;;  %v461_v58 = vshrl.u32 %v4228_v41, 16 }
  0xce   : > { %671 = vst.msk [vmem:[#allocation2 + $0x20] sm:$0xff] %vm666_vm5, %v627_v10  ;;  %672 = vst.msk [vmem:[#allocation2 + $0x28] sm:$0xff] %vm666_vm5, %v629_v35  ;;  %3743 = vmatprep.mubr.msk.bf16.mxu0 %vm6578_vm12, %v1109_v34  ;;  %v257_v10 = vpack.c.bf16 %v4241_v26, %v4241_v26  ;;  %v463_v35 = vshll.u32 %v4228_v41, 16 }
  0xcf   : > { %993 = vrot.lane.b32.xlu0 %v435_v8, %s3852_s28  ;;  %995 = vrot.lane.b32.xlu1 %v447_v56, %s3852_s28 }
  0xd1   : > { %v693_v55 = vpop.permute.xlu0 %692  ;;  %v695_v3 = vpop.permute.xlu1 %694  ;;  %v1110_v52 = vld [vmem:[#allocation2 + $0x18] sm:$0xff] }
  0xd2   : > { %737 = vst.msk [vmem:[#allocation2 + $0x20] sm:$0xff] %vm732_vm6, %v693_v55  ;;  %738 = vst.msk [vmem:[#allocation2 + $0x28] sm:$0xff] %vm732_vm6, %v695_v3  ;;  %3744 = vmatmul.mubr.msk.bf16.gmra.mrb[4].mxu0 %vm6578_vm12, %v1110_v52  ;;  %v465_v55 = vrot.slane %v463_v35, 1  ;;  %v468_v3 = vshll.u32 %v257_v10, 16 }
  0xd3   : > { %1062 = vrot.lane.b32.xlu0 %v608_v53, %s3853_s29  ;;  %496 = vrot.lane.b32.xlu1 %v435_v8, %s3849_s21  ;;  %v453_v8 = vrot.slane %v451_v29, 1 }
  0xd4   : > { %v466_v28 = vor.u32 %v465_v55, %v461_v58 }
  0xd5   : > { %v770_v37 = vpop.permute.xlu0 %769  ;;  %v772_v21 = vpop.permute.xlu1 %771  ;;  %v454_v9 = vor.u32 %v453_v8, %v449_v33 }
  0xd6   : > { %814 = vst.msk [vmem:[#allocation2 + $0x20] sm:$0xff] %vm809_vm7, %v770_v37  ;;  %815 = vst.msk [vmem:[#allocation2 + $0x28] sm:$0xff] %vm809_vm7, %v772_v21 }
  0xd7   : > { %1064 = vrot.lane.b32.xlu0 %v611_v63, %s3853_s29  ;;  %498 = vrot.lane.b32.xlu1 %v447_v56, %s3849_s21  ;;  %v459_v22 = vsel %vm279_vm1, %v454_v9, %v458_v57 }
  0xd9   : > { %v839_v36 = vpop.permute.xlu0 %838  ;;  %v841_v18 = vpop.permute.xlu1 %840 }
  0xda   : > { %883 = vst.msk [vmem:[#allocation2 + $0x20] sm:$0xff] %vm878_vm8, %v839_v36  ;;  %884 = vst.msk [vmem:[#allocation2 + $0x28] sm:$0xff] %vm878_vm8, %v841_v18  ;;  %v616_v36 = vrot.slane %v257_v10, 1 }
  0xdb   : > { %642 = vrot.lane.b32.xlu0 %v608_v53, %s3848_s20  ;;  %644 = vrot.lane.b32.xlu1 %v611_v63, %s3848_s20  ;;  %v612_v53 = vrot.slane %v4197_v42, 1 }
  0xdd   : > { %v905_v25 = vpop.permute.xlu0 %904  ;;  %v907_v60 = vpop.permute.xlu1 %906 }
  0xde   : > { %949 = vst.msk [vmem:[#allocation2 + $0x20] sm:$0xff] %vm944_vm9, %v905_v25  ;;  %950 = vst.msk [vmem:[#allocation2 + $0x28] sm:$0xff] %vm944_vm9, %v907_v60  ;;  %v617_v25 = vsel %vm569_vm0, %v615_v6, %v616_v36 }
  0xdf   : > { %708 = vrot.lane.b32.xlu0 %v4159_v38, %s3846_s18  ;;  %710 = vrot.lane.b32.xlu1 %v4197_v42, %s3846_s18  ;;  %v614_v38 = vsel %vm569_vm0, %v612_v53, %v613_v19 }
  0xe1   : > { %v982_v34 = vpop.permute.xlu0 %981  ;;  %v984_v12 = vpop.permute.xlu1 %983 }
  0xe2   : > { %1026 = vst.msk [vmem:[#allocation2 + $0x20] sm:$0xff] %vm1021_vm10, %v982_v34  ;;  %1027 = vst.msk [vmem:[#allocation2 + $0x28] sm:$0xff] %vm1021_vm10, %v984_v12  ;;  %v223_v34 = vld [vmem:[%s3888_s17 + $0x198] sm:$0xff]  ;;  %v224_v12 = vld [vmem:[%s3888_s17 + $0x1a0] sm:$0xff] }
  0xe3   : > { %785 = vrot.lane.b32.xlu0 %v447_v56, %s3850_s24  ;;  %787 = vrot.lane.b32.xlu1 %v459_v22, %s3850_s24  ;;  %v470_v56 = vrot.slane %v468_v3, 1  ;;  %v260_v3 = vpack.c.bf16 %v224_v12, %v223_v34 }
  0xe5   : > { %v1051_v52 = vpop.permute.xlu0 %1050  ;;  %v485_v26 = vpop.permute.xlu1 %484  ;;  %v471_v21 = vsel %vm279_vm1, %v466_v28, %v470_v56  ;;  %v225_v28 = vld [vmem:[%s3888_s17 + $0x1a8] sm:$0x3]  ;;  %v962_v6 = vshrl.u32 %v260_v3, 16 }
  0xe6   : > { %1095 = vst.msk [vmem:[#allocation2 + $0x20] sm:$0xff] %vm6582_vm11, %v1051_v52 }
  0xe7   : > { %527 = vst.msk [vmem:[#allocation2 + $0x30] sm:$0xff] %vm520_vm4, %v485_v26  ;;  %854 = vrot.lane.b32.xlu0 %v611_v63, %s3847_s19  ;;  %856 = vrot.lane.b32.xlu1 %v614_v38, %s3847_s19 }
  0xe9   : > { %v1053_v29 = vpop.permute.xlu0 %1052  ;;  %v487_v37 = vpop.permute.xlu1 %486 }
  0xea   : > { %1096 = vst.msk [vmem:[#allocation2 + $0x28] sm:$0xff] %vm6582_vm11, %v1053_v29 }
  0xeb   : > { %528 = vst.msk [vmem:[#allocation2 + $0x38] sm:$0xff] %vm520_vm4, %v487_v37  ;;  %920 = vrot.lane.b32.xlu0 %v4197_v42, %s3851_s27  ;;  %922 = vrot.lane.b32.xlu1 %v4228_v41, %s3851_s27  ;;  %v4462_v42 = vpack.c.bf16 %v4265_v0, %v4262_v13  ;;  %v259_v13 = vpack.c.bf16 %v4282_v45, %v4282_v45 }
  0xec   : > { %v261_v37 = vpack.c.bf16 %v225_v28, %v225_v28 }
  0xed   : > { %v631_v33 = vpop.permute.xlu0 %630  ;;  %v633_v63 = vpop.permute.xlu1 %632  ;;  %v1111_v8 = vld [vmem:[#allocation2 + $0x20] sm:$0xff]  ;;  %v752_v0 = vshll.u32 %v4462_v42, 16  ;;  %v757_v10 = vshll.u32 %v259_v13, 16  ;;  %v827_v56 = vrot.slane %v4462_v42, 1  ;;  %v828_v29 = vrot.slane %v259_v13, 1 }
  0xee   : > { %673 = vst.msk [vmem:[#allocation2 + $0x30] sm:$0xff] %vm666_vm5, %v631_v33  ;;  %674 = vst.msk [vmem:[#allocation2 + $0x38] sm:$0xff] %vm666_vm5, %v633_v63  ;;  %3747 = vmatprep.mubr.msk.bf16.mxu0 %vm6578_vm12, %v1111_v8  ;;  %v964_v33 = vshll.u32 %v260_v3, 16 }
  0xef   : > { %997 = vrot.lane.b32.xlu0 %v459_v22, %s3852_s28  ;;  %999 = vrot.lane.b32.xlu1 %v471_v21, %s3852_s28  ;;  %v754_v19 = vrot.slane %v752_v0, 1  ;;  %v759_v55 = vrot.slane %v757_v10, 1 }
  0xf0   : > { %v966_v36 = vrot.slane %v964_v33, 1 }
  0xf1   : > { %v697_v18 = vpop.permute.xlu0 %696  ;;  %v699_v9 = vpop.permute.xlu1 %698  ;;  %v1112_v57 = vld [vmem:[#allocation2 + $0x28] sm:$0xff] }
  0xf2   : > { %739 = vst.msk [vmem:[#allocation2 + $0x30] sm:$0xff] %vm732_vm6, %v697_v18  ;;  %740 = vst.msk [vmem:[#allocation2 + $0x38] sm:$0xff] %vm732_vm6, %v699_v9  ;;  %3748 = vmatmul.mubr.msk.bf16.gmra.mrb[8].mxu0 %vm6578_vm12, %v1112_v57  ;;  %v969_v18 = vshll.u32 %v261_v37, 16  ;;  %v967_v13 = vor.u32 %v966_v36, %v962_v6 }
  0xf3   : > { %1066 = vrot.lane.b32.xlu0 %v614_v38, %s3853_s29  ;;  %500 = vrot.lane.b32.xlu1 %v459_v22, %s3849_s21  ;;  %v750_v22 = vshrl.u32 %v4462_v42, 16 }
  0xf4   : > { %v971_v0 = vrot.slane %v969_v18, 1 }
  0xf5   : > { %v774_v60 = vpop.permute.xlu0 %773  ;;  %v776_v53 = vpop.permute.xlu1 %775  ;;  %v755_v58 = vor.u32 %v754_v19, %v750_v22  ;;  %v1039_v22 = vrot.slane %v260_v3, 1  ;;  %v1040_v19 = vrot.slane %v261_v37, 1 }
  0xf6   : > { %816 = vst.msk [vmem:[#allocation2 + $0x30] sm:$0xff] %vm809_vm7, %v774_v60  ;;  %817 = vst.msk [vmem:[#allocation2 + $0x38] sm:$0xff] %vm809_vm7, %v776_v53  ;;  %v972_v53 = vsel %vm279_vm1, %v967_v13, %v971_v0 }
  0xf7   : > { %1068 = vrot.lane.b32.xlu0 %v617_v25, %s3853_s29  ;;  %502 = vrot.lane.b32.xlu1 %v471_v21, %s3849_s21 }
  0xf9   : > { %v843_v45 = vpop.permute.xlu0 %842  ;;  %v845_v35 = vpop.permute.xlu1 %844 }
  0xfa   : > { %885 = vst.msk [vmem:[#allocation2 + $0x30] sm:$0xff] %vm878_vm8, %v843_v45  ;;  %886 = vst.msk [vmem:[#allocation2 + $0x38] sm:$0xff] %vm878_vm8, %v845_v35 }
  0xfb   : > { %646 = vrot.lane.b32.xlu0 %v614_v38, %s3848_s20  ;;  %648 = vrot.lane.b32.xlu1 %v617_v25, %s3848_s20  ;;  %v760_v38 = vsel %vm279_vm1, %v755_v58, %v759_v55 }
  0xfd   : > { %v909_v52 = vpop.permute.xlu0 %908  ;;  %v911_v26 = vpop.permute.xlu1 %910 }
  0xfe   : > { %951 = vst.msk [vmem:[#allocation2 + $0x30] sm:$0xff] %vm944_vm9, %v909_v52  ;;  %952 = vst.msk [vmem:[#allocation2 + $0x38] sm:$0xff] %vm944_vm9, %v911_v26 }
  0xff   : > { %712 = vrot.lane.b32.xlu0 %v4228_v41, %s3846_s18  ;;  %714 = vrot.lane.b32.xlu1 %v4462_v42, %s3846_s18  ;;  %v829_v41 = vsel %vm569_vm0, %v827_v56, %v828_v29 }
 0x101   : > { %v986_v63 = vpop.permute.xlu0 %985  ;;  %v988_v8 = vpop.permute.xlu1 %987 }
 0x102   : > { %1028 = vst.msk [vmem:[#allocation2 + $0x30] sm:$0xff] %vm1021_vm10, %v986_v63  ;;  %1029 = vst.msk [vmem:[#allocation2 + $0x38] sm:$0xff] %vm1021_vm10, %v988_v8 }
 0x103   : > { %789 = vrot.lane.b32.xlu0 %v471_v21, %s3850_s24  ;;  %791 = vrot.lane.b32.xlu1 %v760_v38, %s3850_s24 }
 0x105   : > { %v1055_v9 = vpop.permute.xlu0 %1054  ;;  %v489_v57 = vpop.permute.xlu1 %488 }
 0x106   : > { %1097 = vst.msk [vmem:[#allocation2 + $0x30] sm:$0xff] %vm6582_vm11, %v1055_v9 }
 0x107   : > { %529 = vst.msk [vmem:[#allocation2 + $0x40] sm:$0xff] %vm520_vm4, %v489_v57  ;;  %858 = vrot.lane.b32.xlu0 %v617_v25, %s3847_s19  ;;  %860 = vrot.lane.b32.xlu1 %v829_v41, %s3847_s19 }
 0x109   : > { %v1057_v21 = vpop.permute.xlu0 %1056  ;;  %v491_v60 = vpop.permute.xlu1 %490 }
 0x10a   : > { %1098 = vst.msk [vmem:[#allocation2 + $0x38] sm:$0xff] %vm6582_vm11, %v1057_v21 }
 0x10b   : > { %530 = vst.msk [vmem:[#allocation2 + $0x48] sm:$0xff] %vm520_vm4, %v491_v60  ;;  %924 = vrot.lane.b32.xlu0 %v4462_v42, %s3851_s27  ;;  %926 = vrot.lane.b32.xlu1 %v260_v3, %s3851_s27  ;;  %v1041_v42 = vsel %vm569_vm0, %v1039_v22, %v1040_v19 }
 0x10d   : > { %v635_v25 = vpop.permute.xlu0 %634  ;;  %v637_v10 = vpop.permute.xlu1 %636  ;;  %v1113_v45 = vld [vmem:[#allocation2 + $0x30] sm:$0xff] }
 0x10e   : > { %675 = vst.msk [vmem:[#allocation2 + $0x40] sm:$0xff] %vm666_vm5, %v635_v25  ;;  %676 = vst.msk [vmem:[#allocation2 + $0x48] sm:$0xff] %vm666_vm5, %v637_v10  ;;  %3751 = vmatprep.mubr.msk.bf16.mxu0 %vm6578_vm12, %v1113_v45 }
 0x10f   : > { %1001 = vrot.lane.b32.xlu0 %v760_v38, %s3852_s28  ;;  %1003 = vrot.lane.b32.xlu1 %v972_v53, %s3852_s28 }
 0x111   : > { %v701_v35 = vpop.permute.xlu0 %700  ;;  %v703_v34 = vpop.permute.xlu1 %702  ;;  %v1114_v12 = vld [vmem:[#allocation2 + $0x38] sm:$0xff] }
 0x112   : > { %741 = vst.msk [vmem:[#allocation2 + $0x40] sm:$0xff] %vm732_vm6, %v701_v35  ;;  %742 = vst.msk [vmem:[#allocation2 + $0x48] sm:$0xff] %vm732_vm6, %v703_v34  ;;  %3752 = vmatmul.mubr.msk.bf16.gmra.mrb[12].mxu0 %vm6578_vm12, %v1114_v12 }
 0x113   : > { %1070 = vrot.lane.b32.xlu0 %v829_v41, %s3853_s29  ;;  %1072 = vrot.lane.b32.xlu1 %v1041_v42, %s3853_s29 }
 0x115   : > { %v778_v58 = vpop.permute.xlu0 %777  ;;  %v780_v55 = vpop.permute.xlu1 %779 }
 0x116   : > { %818 = vst.msk [vmem:[#allocation2 + $0x40] sm:$0xff] %vm809_vm7, %v778_v58  ;;  %819 = vst.msk [vmem:[#allocation2 + $0x48] sm:$0xff] %vm809_vm7, %v780_v55 }
 0x119   : > { %v847_v3 = vpop.permute.xlu0 %846  ;;  %v849_v52 = vpop.permute.xlu1 %848 }
 0x11a   : > { %887 = vst.msk [vmem:[#allocation2 + $0x40] sm:$0xff] %vm878_vm8, %v847_v3  ;;  %888 = vst.msk [vmem:[#allocation2 + $0x48] sm:$0xff] %vm878_vm8, %v849_v52 }
 0x11d   : > { %v913_v26 = vpop.permute.xlu0 %912  ;;  %v915_v28 = vpop.permute.xlu1 %914 }
 0x11e   : > { %953 = vst.msk [vmem:[#allocation2 + $0x40] sm:$0xff] %vm944_vm9, %v913_v26  ;;  %954 = vst.msk [vmem:[#allocation2 + $0x48] sm:$0xff] %vm944_vm9, %v915_v28 }
 0x121   : > { %v990_v38 = vpop.permute.xlu0 %989  ;;  %v992_v56 = vpop.permute.xlu1 %991 }
 0x122   : > { %1030 = vst.msk [vmem:[#allocation2 + $0x40] sm:$0xff] %vm1021_vm10, %v990_v38  ;;  %1031 = vst.msk [vmem:[#allocation2 + $0x48] sm:$0xff] %vm1021_vm10, %v992_v56 }
 0x125   : > { %v1059_v29 = vpop.permute.xlu0 %1058  ;;  %v493_v37 = vpop.permute.xlu1 %492 }
 0x126   : > { %1099 = vst.msk [vmem:[#allocation2 + $0x40] sm:$0xff] %vm6582_vm11, %v1059_v29 }
 0x127   : > { %531 = vst.msk [vmem:[#allocation2 + $0x50] sm:$0xff] %vm520_vm4, %v493_v37 }
 0x129   : > { %v1061_v33 = vpop.permute.xlu0 %1060  ;;  %v495_v63 = vpop.permute.xlu1 %494 }
 0x12a   : > { %1100 = vst.msk [vmem:[#allocation2 + $0x48] sm:$0xff] %vm6582_vm11, %v1061_v33 }
 0x12b   : > { %532 = vst.msk [vmem:[#allocation2 + $0x58] sm:$0xff] %vm520_vm4, %v495_v63 }
 0x12d   : > { %v639_v8 = vpop.permute.xlu0 %638  ;;  %v641_v41 = vpop.permute.xlu1 %640  ;;  %v1115_v6 = vld [vmem:[#allocation2 + $0x40] sm:$0xff] }
 0x12e   : > { %677 = vst.msk [vmem:[#allocation2 + $0x50] sm:$0xff] %vm666_vm5, %v639_v8  ;;  %678 = vst.msk [vmem:[#allocation2 + $0x58] sm:$0xff] %vm666_vm5, %v641_v41  ;;  %3755 = vmatprep.mubr.msk.bf16.mxu0 %vm6578_vm12, %v1115_v6 }
 0x131   : > { %v705_v36 = vpop.permute.xlu0 %704  ;;  %v707_v18 = vpop.permute.xlu1 %706  ;;  %v1116_v9 = vld [vmem:[#allocation2 + $0x48] sm:$0xff] }
 0x132   : > { %743 = vst.msk [vmem:[#allocation2 + $0x50] sm:$0xff] %vm732_vm6, %v705_v36  ;;  %744 = vst.msk [vmem:[#allocation2 + $0x58] sm:$0xff] %vm732_vm6, %v707_v18  ;;  %3756 = vmatmul.mubr.msk.bf16.gmra.mrb[16].mxu0 %vm6578_vm12, %v1116_v9 }
 0x135   : > { %v782_v57 = vpop.permute.xlu0 %781  ;;  %v784_v13 = vpop.permute.xlu1 %783 }
 0x136   : > { %820 = vst.msk [vmem:[#allocation2 + $0x50] sm:$0xff] %vm809_vm7, %v782_v57  ;;  %821 = vst.msk [vmem:[#allocation2 + $0x58] sm:$0xff] %vm809_vm7, %v784_v13 }
 0x139   : > { %v851_v0 = vpop.permute.xlu0 %850  ;;  %v853_v21 = vpop.permute.xlu1 %852 }
 0x13a   : > { %889 = vst.msk [vmem:[#allocation2 + $0x50] sm:$0xff] %vm878_vm8, %v851_v0  ;;  %890 = vst.msk [vmem:[#allocation2 + $0x58] sm:$0xff] %vm878_vm8, %v853_v21 }
 0x13d   : > { %v917_v60 = vpop.permute.xlu0 %916  ;;  %v919_v53 = vpop.permute.xlu1 %918 }
 0x13e   : > { %955 = vst.msk [vmem:[#allocation2 + $0x50] sm:$0xff] %vm944_vm9, %v917_v60  ;;  %956 = vst.msk [vmem:[#allocation2 + $0x58] sm:$0xff] %vm944_vm9, %v919_v53 }
 0x141   : > { %v994_v22 = vpop.permute.xlu0 %993  ;;  %v996_v19 = vpop.permute.xlu1 %995 }
 0x142   : > { %1032 = vst.msk [vmem:[#allocation2 + $0x50] sm:$0xff] %vm1021_vm10, %v994_v22  ;;  %1033 = vst.msk [vmem:[#allocation2 + $0x58] sm:$0xff] %vm1021_vm10, %v996_v19 }
 0x145   : > { %v1063_v25 = vpop.permute.xlu0 %1062  ;;  %v497_v10 = vpop.permute.xlu1 %496 }
 0x146   : > { %1101 = vst.msk [vmem:[#allocation2 + $0x50] sm:$0xff] %vm6582_vm11, %v1063_v25 }
 0x147   : > { %533 = vst.msk [vmem:[#allocation2 + $0x60] sm:$0xff] %vm520_vm4, %v497_v10 }
 0x149   : > { %v1065_v45 = vpop.permute.xlu0 %1064  ;;  %v499_v42 = vpop.permute.xlu1 %498 }
 0x14a   : > { %1102 = vst.msk [vmem:[#allocation2 + $0x58] sm:$0xff] %vm6582_vm11, %v1065_v45 }
 0x14b   : > { %534 = vst.msk [vmem:[#allocation2 + $0x68] sm:$0xff] %vm520_vm4, %v499_v42 }
 0x14d   : > { %v643_v35 = vpop.permute.xlu0 %642  ;;  %v645_v34 = vpop.permute.xlu1 %644  ;;  %v1117_v12 = vld [vmem:[#allocation2 + $0x50] sm:$0xff] }
 0x14e   : > { %679 = vst.msk [vmem:[#allocation2 + $0x60] sm:$0xff] %vm666_vm5, %v643_v35  ;;  %680 = vst.msk [vmem:[#allocation2 + $0x68] sm:$0xff] %vm666_vm5, %v645_v34  ;;  %3759 = vmatprep.mubr.msk.bf16.mxu0 %vm6578_vm12, %v1117_v12 }
 0x151   : > { %v709_v58 = vpop.permute.xlu0 %708  ;;  %v711_v55 = vpop.permute.xlu1 %710  ;;  %v1118_v3 = vld [vmem:[#allocation2 + $0x58] sm:$0xff] }
 0x152   : > { %745 = vst.msk [vmem:[#allocation2 + $0x60] sm:$0xff] %vm732_vm6, %v709_v58  ;;  %746 = vst.msk [vmem:[#allocation2 + $0x68] sm:$0xff] %vm732_vm6, %v711_v55  ;;  %3760 = vmatmul.mubr.msk.bf16.gmra.mrb[20].mxu0 %vm6578_vm12, %v1118_v3 }
 0x155   : > { %v786_v52 = vpop.permute.xlu0 %785  ;;  %v788_v26 = vpop.permute.xlu1 %787 }
 0x156   : > { %822 = vst.msk [vmem:[#allocation2 + $0x60] sm:$0xff] %vm809_vm7, %v786_v52  ;;  %823 = vst.msk [vmem:[#allocation2 + $0x68] sm:$0xff] %vm809_vm7, %v788_v26 }
 0x159   : > { %v855_v28 = vpop.permute.xlu0 %854  ;;  %v857_v38 = vpop.permute.xlu1 %856 }
 0x15a   : > { %891 = vst.msk [vmem:[#allocation2 + $0x60] sm:$0xff] %vm878_vm8, %v855_v28  ;;  %892 = vst.msk [vmem:[#allocation2 + $0x68] sm:$0xff] %vm878_vm8, %v857_v38 }
 0x15d   : > { %v921_v56 = vpop.permute.xlu0 %920  ;;  %v923_v29 = vpop.permute.xlu1 %922 }
 0x15e   : > { %957 = vst.msk [vmem:[#allocation2 + $0x60] sm:$0xff] %vm944_vm9, %v921_v56  ;;  %958 = vst.msk [vmem:[#allocation2 + $0x68] sm:$0xff] %vm944_vm9, %v923_v29 }
 0x161   : > { %v998_v37 = vpop.permute.xlu0 %997  ;;  %v1000_v33 = vpop.permute.xlu1 %999 }
 0x162   : > { %1034 = vst.msk [vmem:[#allocation2 + $0x60] sm:$0xff] %vm1021_vm10, %v998_v37  ;;  %1035 = vst.msk [vmem:[#allocation2 + $0x68] sm:$0xff] %vm1021_vm10, %v1000_v33 }
 0x165   : > { %v1067_v63 = vpop.permute.xlu0 %1066  ;;  %v501_v8 = vpop.permute.xlu1 %500 }
 0x166   : > { %1103 = vst.msk [vmem:[#allocation2 + $0x60] sm:$0xff] %vm6582_vm11, %v1067_v63 }
 0x167   : > { %535 = vst.msk [vmem:[#allocation2 + $0x70] sm:$0xff] %vm520_vm4, %v501_v8 }
 0x169   : > { %v1069_v41 = vpop.permute.xlu0 %1068  ;;  %v503_v6 = vpop.permute.xlu1 %502 }
 0x16a   : > { %1104 = vst.msk [vmem:[#allocation2 + $0x68] sm:$0xff] %vm6582_vm11, %v1069_v41 }
 0x16b   : > { %536 = vst.msk [vmem:[#allocation2 + $0x78] sm:$0xff] %vm520_vm4, %v503_v6 }
 0x16d   : > { %v647_v36 = vpop.permute.xlu0 %646  ;;  %v649_v18 = vpop.permute.xlu1 %648  ;;  %v1119_v9 = vld [vmem:[#allocation2 + $0x60] sm:$0xff] }
 0x16e   : > { %681 = vst.msk [vmem:[#allocation2 + $0x70] sm:$0xff] %vm666_vm5, %v647_v36  ;;  %682 = vst.msk [vmem:[#allocation2 + $0x78] sm:$0xff] %vm666_vm5, %v649_v18  ;;  %3763 = vmatprep.mubr.msk.bf16.mxu0 %vm6578_vm12, %v1119_v9 }
 0x171   : > { %v713_v57 = vpop.permute.xlu0 %712  ;;  %v715_v13 = vpop.permute.xlu1 %714  ;;  %v1120_v0 = vld [vmem:[#allocation2 + $0x68] sm:$0xff] }
 0x172   : > { %747 = vst.msk [vmem:[#allocation2 + $0x70] sm:$0xff] %vm732_vm6, %v713_v57  ;;  %748 = vst.msk [vmem:[#allocation2 + $0x78] sm:$0xff] %vm732_vm6, %v715_v13  ;;  %3764 = vmatmul.mubr.msk.bf16.gmra.mrb[24].mxu0 %vm6578_vm12, %v1120_v0 }
 0x175   : > { %v790_v21 = vpop.permute.xlu0 %789  ;;  %v792_v60 = vpop.permute.xlu1 %791 }
 0x176   : > { %824 = vst.msk [vmem:[#allocation2 + $0x70] sm:$0xff] %vm809_vm7, %v790_v21  ;;  %825 = vst.msk [vmem:[#allocation2 + $0x78] sm:$0xff] %vm809_vm7, %v792_v60 }
 0x179   : > { %v859_v53 = vpop.permute.xlu0 %858  ;;  %v861_v22 = vpop.permute.xlu1 %860 }
 0x17a   : > { %893 = vst.msk [vmem:[#allocation2 + $0x70] sm:$0xff] %vm878_vm8, %v859_v53  ;;  %894 = vst.msk [vmem:[#allocation2 + $0x78] sm:$0xff] %vm878_vm8, %v861_v22 }
 0x17d   : > { %v925_v19 = vpop.permute.xlu0 %924  ;;  %v927_v25 = vpop.permute.xlu1 %926 }
 0x17e   : > { %959 = vst.msk [vmem:[#allocation2 + $0x70] sm:$0xff] %vm944_vm9, %v925_v19  ;;  %960 = vst.msk [vmem:[#allocation2 + $0x78] sm:$0xff] %vm944_vm9, %v927_v25 }
 0x181   : > { %v1002_v10 = vpop.permute.xlu0 %1001  ;;  %v1004_v45 = vpop.permute.xlu1 %1003 }
 0x182   : > { %1036 = vst.msk [vmem:[#allocation2 + $0x70] sm:$0xff] %vm1021_vm10, %v1002_v10  ;;  %1037 = vst.msk [vmem:[#allocation2 + $0x78] sm:$0xff] %vm1021_vm10, %v1004_v45 }
 0x185   : > { %v1071_v42 = vpop.permute.xlu0 %1070  ;;  %v3741_v35 = vpop.f32.mrb[0].mxu0 }
 0x186   : > { %1105 = vst.msk [vmem:[#allocation2 + $0x70] sm:$0xff] %vm6582_vm11, %v1071_v42  ;;  %v1073_v34 = vpop.permute.xlu1 %1072  ;;  %v1230_v12 = vpop.f32.mrb[1].mxu0  ;;  %v1429_v52 = vmul.f32 %v3741_v35, %v3741_v35  ;;  %v1360_v29 = vsel %vm262_vm2, %v3741_v35, 0.0 }
 0x187   : > { %1532 = vst.msk [vmem:[#allocation3 + $0x31] sm:$0xff] %vm262_vm2, %v3741_v35  ;;  %v1427_v58 = vmul.f32 %v1230_v12, %v1230_v12  ;;  %1530 = vst.msk [vmem:[#allocation3 + $0x19] sm:$0xff] %vm262_vm2, %v1230_v12  ;;  %v3742_v55 = vpop.f32.mrb[2].mxu0  ;;  %v1357_v26 = vsel %vm262_vm2, %v1230_v12, 0.0 }
 0x188   : > { %1106 = vst.msk [vmem:[#allocation2 + $0x78] sm:$0xff] %vm6582_vm11, %v1073_v34  ;;  %v1233_v3 = vpop.f32.mrb[3].mxu0  ;;  %v1430_v33 = vmul.f32 %v3742_v55, %v3742_v55  ;;  %v1462_v6 = vsel %vm262_vm2, %v1429_v52, 0.0  ;;  %v1362_v36 = vsel %vm262_vm2, %v3742_v55, 0.0  ;;  %vm1874_vm11 = vcmask 31745  }
 0x189   : > { %1533 = vst.msk [vmem:[#allocation3 + $0x39] sm:$0xff] %vm262_vm2, %v3742_v55  ;;  %v1358_v28 = vsel %vm262_vm2, %v1233_v3, 0.0  ;;  %v1428_v38 = vmul.f32 %v1233_v3, %v1233_v3  ;;  %1531 = vst.msk [vmem:[#allocation3 + $0x21] sm:$0xff] %vm262_vm2, %v1233_v3  ;;  %v1459_v37 = vsel %vm262_vm2, %v1427_v58, 0.0 }
 0x18a   : > { %v1359_v56 = vadd.f32 %v1358_v28, %v1357_v26  ;;  %v1464_v0 = vsel %vm262_vm2, %v1430_v33, 0.0 }
 0x18b   : > { %v1460_v63 = vsel %vm262_vm2, %v1428_v38, 0.0 }
 0x18c   : > { %v1361_v8 = vadd.f32 %v1360_v29, %v1359_v56  ;;  %v1461_v41 = vadd.f32 %v1460_v63, %v1459_v37 }
 0x18d   : > { %v1121_v18 = vld [vmem:[#allocation2 + $0x70] sm:$0xff] }
 0x18e   : > { %v1463_v9 = vadd.f32 %v1462_v6, %v1461_v41  ;;  %3767 = vmatprep.mubr.msk.bf16.mxu0 %vm6578_vm12, %v1121_v18  ;;  %v1363_v13 = vadd.f32 %v1362_v36, %v1361_v8 }
 0x18f   : > { %v1122_v57 = vld [vmem:[#allocation2 + $0x78] sm:$0xff] }
 0x190   : > { %3768 = vmatmul.mubr.msk.bf16.gmra.mrb[28].mxu0 %vm6578_vm12, %v1122_v57  ;;  %v1465_v21 = vadd.f32 %v1464_v0, %v1463_v9  ;;  %vm1840_vm12 = vcmask 26626  }
 0x1a5   : > { %v3745_v60 = vpop.f32.mrb[4].mxu0 }
 0x1a6   : > { %1536 = vst.msk [vmem:[#allocation3 + $0x61] sm:$0xff] %vm262_vm2, %v3745_v60  ;;  %v1246_v53 = vpop.f32.mrb[5].mxu0  ;;  %v1433_v42 = vmul.f32 %v3745_v60, %v3745_v60  ;;  %v1368_v3 = vsel %vm262_vm2, %v3745_v60, 0.0 }
 0x1a7   : > { %v1364_v22 = vsel %vm262_vm2, %v1246_v53, 0.0  ;;  %v1431_v19 = vmul.f32 %v1246_v53, %v1246_v53  ;;  %1534 = vst.msk [vmem:[#allocation3 + $0x49] sm:$0xff] %vm262_vm2, %v1246_v53  ;;  %v3746_v25 = vpop.f32.mrb[6].mxu0 }
 0x1a8   : > { %v1365_v10 = vadd.f32 %v1364_v22, %v1363_v13  ;;  %1537 = vst.msk [vmem:[#allocation3 + $0x69] sm:$0xff] %vm262_vm2, %v3746_v25  ;;  %v1249_v45 = vpop.f32.mrb[7].mxu0  ;;  %v1434_v52 = vmul.f32 %v3746_v25, %v3746_v25  ;;  %v1470_v56 = vsel %vm262_vm2, %v1433_v42, 0.0  ;;  %v1370_v29 = vsel %vm262_vm2, %v3746_v25, 0.0 }
 0x1a9   : > { %v1466_v35 = vsel %vm262_vm2, %v1431_v19, 0.0  ;;  %v1366_v34 = vsel %vm262_vm2, %v1249_v45, 0.0  ;;  %v1432_v12 = vmul.f32 %v1249_v45, %v1249_v45  ;;  %1535 = vst.msk [vmem:[#allocation3 + $0x51] sm:$0xff] %vm262_vm2, %v1249_v45 }
 0x1aa   : > { %v1467_v58 = vadd.f32 %v1466_v35, %v1465_v21  ;;  %v1367_v55 = vadd.f32 %v1366_v34, %v1365_v10  ;;  %v1472_v63 = vsel %vm262_vm2, %v1434_v52, 0.0 }
 0x1ab   : > { %v1468_v26 = vsel %vm262_vm2, %v1432_v12, 0.0 }
 0x1ac   : > { %v1369_v28 = vadd.f32 %v1368_v3, %v1367_v55  ;;  %v1469_v38 = vadd.f32 %v1468_v26, %v1467_v58 }
 0x1ae   : > { %v1471_v37 = vadd.f32 %v1470_v56, %v1469_v38  ;;  %v1371_v33 = vadd.f32 %v1370_v29, %v1369_v28 }
 0x1b0   : > { %v1473_v8 = vadd.f32 %v1472_v63, %v1471_v37 }
 0x1c5   : > { %v3749_v41 = vpop.f32.mrb[8].mxu0 }
 0x1c6   : > { %1540 = vst.msk [vmem:[#allocation3 + $0x91] sm:$0xff] %vm262_vm2, %v3749_v41  ;;  %v1262_v6 = vpop.f32.mrb[9].mxu0  ;;  %v1437_v0 = vmul.f32 %v3749_v41, %v3749_v41  ;;  %v1376_v25 = vsel %vm262_vm2, %v3749_v41, 0.0 }
 0x1c7   : > { %v1372_v36 = vsel %vm262_vm2, %v1262_v6, 0.0  ;;  %v1435_v18 = vmul.f32 %v1262_v6, %v1262_v6  ;;  %1538 = vst.msk [vmem:[#allocation3 + $0x79] sm:$0xff] %vm262_vm2, %v1262_v6  ;;  %v3750_v9 = vpop.f32.mrb[10].mxu0 }
 0x1c8   : > { %v1373_v57 = vadd.f32 %v1372_v36, %v1371_v33  ;;  %1541 = vst.msk [vmem:[#allocation3 + $0x99] sm:$0xff] %vm262_vm2, %v3750_v9  ;;  %v1265_v13 = vpop.f32.mrb[11].mxu0  ;;  %v1438_v10 = vmul.f32 %v3750_v9, %v3750_v9  ;;  %v1478_v34 = vsel %vm262_vm2, %v1437_v0, 0.0  ;;  %v1378_v12 = vsel %vm262_vm2, %v3750_v9, 0.0 }
 0x1c9   : > { %v1474_v21 = vsel %vm262_vm2, %v1435_v18, 0.0  ;;  %v1374_v60 = vsel %vm262_vm2, %v1265_v13, 0.0  ;;  %v1436_v53 = vmul.f32 %v1265_v13, %v1265_v13  ;;  %1539 = vst.msk [vmem:[#allocation3 + $0x81] sm:$0xff] %vm262_vm2, %v1265_v13 }
 0x1ca   : > { %v1475_v22 = vadd.f32 %v1474_v21, %v1473_v8  ;;  %v1375_v19 = vadd.f32 %v1374_v60, %v1373_v57  ;;  %v1480_v3 = vsel %vm262_vm2, %v1438_v10, 0.0 }
 0x1cb   : > { %v1476_v45 = vsel %vm262_vm2, %v1436_v53, 0.0 }
 0x1cc   : > { %v1377_v42 = vadd.f32 %v1376_v25, %v1375_v19  ;;  %v1477_v35 = vadd.f32 %v1476_v45, %v1475_v22 }
 0x1ce   : > { %v1479_v58 = vadd.f32 %v1478_v34, %v1477_v35  ;;  %v1379_v55 = vadd.f32 %v1378_v12, %v1377_v42 }
 0x1d0   : > { %v1481_v52 = vadd.f32 %v1480_v3, %v1479_v58 }
 0x1e5   : > { %v3753_v26 = vpop.f32.mrb[12].mxu0 }
 0x1e6   : > { %1544 = vst.msk [vmem:[#allocation3 + $0xc1] sm:$0xff] %vm262_vm2, %v3753_v26  ;;  %v1278_v28 = vpop.f32.mrb[13].mxu0  ;;  %v1441_v63 = vmul.f32 %v3753_v26, %v3753_v26  ;;  %v1384_v9 = vsel %vm262_vm2, %v3753_v26, 0.0 }
 0x1e7   : > { %v1380_v38 = vsel %vm262_vm2, %v1278_v28, 0.0  ;;  %v1439_v56 = vmul.f32 %v1278_v28, %v1278_v28  ;;  %1542 = vst.msk [vmem:[#allocation3 + $0xa9] sm:$0xff] %vm262_vm2, %v1278_v28  ;;  %v3754_v29 = vpop.f32.mrb[14].mxu0 }
 0x1e8   : > { %v1381_v37 = vadd.f32 %v1380_v38, %v1379_v55  ;;  %1545 = vst.msk [vmem:[#allocation3 + $0xc9] sm:$0xff] %vm262_vm2, %v3754_v29  ;;  %v1281_v33 = vpop.f32.mrb[15].mxu0  ;;  %v1442_v57 = vmul.f32 %v3754_v29, %v3754_v29  ;;  %v1486_v60 = vsel %vm262_vm2, %v1441_v63, 0.0  ;;  %v1386_v53 = vsel %vm262_vm2, %v3754_v29, 0.0 }
 0x1e9   : > { %v1482_v8 = vsel %vm262_vm2, %v1439_v56, 0.0  ;;  %v1382_v41 = vsel %vm262_vm2, %v1281_v33, 0.0  ;;  %v1440_v6 = vmul.f32 %v1281_v33, %v1281_v33  ;;  %1543 = vst.msk [vmem:[#allocation3 + $0xb1] sm:$0xff] %vm262_vm2, %v1281_v33 }
 0x1ea   : > { %v1483_v36 = vadd.f32 %v1482_v8, %v1481_v52  ;;  %v1383_v18 = vadd.f32 %v1382_v41, %v1381_v37  ;;  %v1488_v25 = vsel %vm262_vm2, %v1442_v57, 0.0 }
 0x1eb   : > { %v1484_v13 = vsel %vm262_vm2, %v1440_v6, 0.0 }
 0x1ec   : > { %v1385_v0 = vadd.f32 %v1384_v9, %v1383_v18  ;;  %v1485_v21 = vadd.f32 %v1484_v13, %v1483_v36 }
 0x1ee   : > { %v1487_v22 = vadd.f32 %v1486_v60, %v1485_v21  ;;  %v1387_v19 = vadd.f32 %v1386_v53, %v1385_v0 }
 0x1ef   : > { %v4778_v46 = vld [vmem:[#allocation3 + $0xd0] sm:$0x3] }
 0x1f0   : > { %v1489_v10 = vadd.f32 %v1488_v25, %v1487_v22  ;;  %v4782_v62 = vld [vmem:[#allocation3 + $0xb8] sm:$0x3] }
 0x205   : > { %v3757_v45 = vpop.f32.mrb[16].mxu0 }
 0x206   : > { %1548 = vst.msk [vmem:[#allocation3 + $0xf1] sm:$0xff] %vm262_vm2, %v3757_v45  ;;  %v1294_v42 = vpop.f32.mrb[17].mxu0  ;;  %v1445_v3 = vmul.f32 %v3757_v45, %v3757_v45  ;;  %v1392_v29 = vsel %vm262_vm2, %v3757_v45, 0.0 }
 0x207   : > { %v1388_v35 = vsel %vm262_vm2, %v1294_v42, 0.0  ;;  %v1443_v34 = vmul.f32 %v1294_v42, %v1294_v42  ;;  %1546 = vst.msk [vmem:[#allocation3 + $0xd9] sm:$0xff] %vm262_vm2, %v1294_v42  ;;  %v3758_v12 = vpop.f32.mrb[18].mxu0 }
 0x208   : > { %v1389_v58 = vadd.f32 %v1388_v35, %v1387_v19  ;;  %1549 = vst.msk [vmem:[#allocation3 + $0xf9] sm:$0xff] %vm262_vm2, %v3758_v12  ;;  %v1297_v55 = vpop.f32.mrb[19].mxu0  ;;  %v1446_v37 = vmul.f32 %v3758_v12, %v3758_v12  ;;  %v1494_v41 = vsel %vm262_vm2, %v1445_v3, 0.0  ;;  %v1394_v6 = vsel %vm262_vm2, %v3758_v12, 0.0 }
 0x209   : > { %v1490_v52 = vsel %vm262_vm2, %v1443_v34, 0.0  ;;  %v1390_v26 = vsel %vm262_vm2, %v1297_v55, 0.0  ;;  %v1444_v28 = vmul.f32 %v1297_v55, %v1297_v55  ;;  %1547 = vst.msk [vmem:[#allocation3 + $0xe1] sm:$0xff] %vm262_vm2, %v1297_v55 }
 0x20a   : > { %v1491_v38 = vadd.f32 %v1490_v52, %v1489_v10  ;;  %v1391_v56 = vadd.f32 %v1390_v26, %v1389_v58  ;;  %v1496_v9 = vsel %vm262_vm2, %v1446_v37, 0.0 }
 0x20b   : > { %v1492_v33 = vsel %vm262_vm2, %v1444_v28, 0.0 }
 0x20c   : > { %v1393_v63 = vadd.f32 %v1392_v29, %v1391_v56  ;;  %v1493_v8 = vadd.f32 %v1492_v33, %v1491_v38 }
 0x20d   : > { %v4792_v5 = vld [vmem:[#allocation3 + $0xf0] sm:$0xff] }
 0x20e   : > { %v1495_v36 = vadd.f32 %v1494_v41, %v1493_v8  ;;  %v1395_v18 = vadd.f32 %v1394_v6, %v1393_v63 }
 0x20f   : > { %v4796_v61 = vld [vmem:[#allocation3 + $0xf8] sm:$0xff]  ;;  %v4798_v48 = vld [vmem:[#allocation3 + $0x100] sm:$0x3] }
 0x210   : > { %v1497_v57 = vadd.f32 %v1496_v9, %v1495_v36  ;;  %v4808_v39 = vld [vmem:[#allocation3 + $0xe0] sm:$0xff]  ;;  %v4810_v54 = vld [vmem:[#allocation3 + $0xe8] sm:$0x3] }
 0x225   : > { %v3761_v13 = vpop.f32.mrb[20].mxu0 }
 0x226   : > { %1552 = vst.msk [vmem:[#allocation3 + $0x121] sm:$0xff] %vm262_vm2, %v3761_v13  ;;  %v1310_v0 = vpop.f32.mrb[21].mxu0  ;;  %v1449_v25 = vmul.f32 %v3761_v13, %v3761_v13  ;;  %v1400_v12 = vsel %vm262_vm2, %v3761_v13, 0.0 }
 0x227   : > { %v1396_v21 = vsel %vm262_vm2, %v1310_v0, 0.0  ;;  %v1447_v60 = vmul.f32 %v1310_v0, %v1310_v0  ;;  %1550 = vst.msk [vmem:[#allocation3 + $0x109] sm:$0xff] %vm262_vm2, %v1310_v0  ;;  %v3762_v53 = vpop.f32.mrb[22].mxu0 }
 0x228   : > { %v1397_v22 = vadd.f32 %v1396_v21, %v1395_v18  ;;  %1553 = vst.msk [vmem:[#allocation3 + $0x129] sm:$0xff] %vm262_vm2, %v3762_v53  ;;  %v1313_v19 = vpop.f32.mrb[23].mxu0  ;;  %v1450_v58 = vmul.f32 %v3762_v53, %v3762_v53  ;;  %v1502_v26 = vsel %vm262_vm2, %v1449_v25, 0.0  ;;  %v1402_v28 = vsel %vm262_vm2, %v3762_v53, 0.0 }
 0x229   : > { %v1498_v10 = vsel %vm262_vm2, %v1447_v60, 0.0  ;;  %v1398_v45 = vsel %vm262_vm2, %v1313_v19, 0.0  ;;  %v1448_v42 = vmul.f32 %v1313_v19, %v1313_v19  ;;  %1551 = vst.msk [vmem:[#allocation3 + $0x111] sm:$0xff] %vm262_vm2, %v1313_v19 }
 0x22a   : > { %v1499_v35 = vadd.f32 %v1498_v10, %v1497_v57  ;;  %v1399_v34 = vadd.f32 %v1398_v45, %v1397_v22  ;;  %v1504_v29 = vsel %vm262_vm2, %v1450_v58, 0.0 }
 0x22b   : > { %v1500_v55 = vsel %vm262_vm2, %v1448_v42, 0.0 }
 0x22c   : > { %v1401_v3 = vadd.f32 %v1400_v12, %v1399_v34  ;;  %v1501_v52 = vadd.f32 %v1500_v55, %v1499_v35 }
 0x22d   : > { %v4812_v15 = vld [vmem:[#allocation3 + $0x120] sm:$0xff] }
 0x22e   : > { %v1503_v38 = vadd.f32 %v1502_v26, %v1501_v52  ;;  %v1403_v56 = vadd.f32 %v1402_v28, %v1401_v3 }
 0x22f   : > { %v4824_v49 = vld [vmem:[#allocation3 + $0x128] sm:$0xff]  ;;  %v4826_v47 = vld [vmem:[#allocation3 + $0x130] sm:$0x3] }
 0x230   : > { %v1505_v37 = vadd.f32 %v1504_v29, %v1503_v38  ;;  %v4838_v24 = vld [vmem:[#allocation3 + $0x110] sm:$0xff]  ;;  %v4840_v11 = vld [vmem:[#allocation3 + $0x118] sm:$0x3] }
 0x245   : > { %v3765_v33 = vpop.f32.mrb[24].mxu0 }
 0x246   : > { %1556 = vst.msk [vmem:[#allocation3 + $0x151] sm:$0xff] %vm262_vm2, %v3765_v33  ;;  %v1326_v63 = vpop.f32.mrb[25].mxu0  ;;  %v1453_v9 = vmul.f32 %v3765_v33, %v3765_v33  ;;  %v1408_v53 = vsel %vm262_vm2, %v3765_v33, 0.0 }
 0x247   : > { %v1404_v8 = vsel %vm262_vm2, %v1326_v63, 0.0  ;;  %v1451_v41 = vmul.f32 %v1326_v63, %v1326_v63  ;;  %1554 = vst.msk [vmem:[#allocation3 + $0x139] sm:$0xff] %vm262_vm2, %v1326_v63  ;;  %v3766_v6 = vpop.f32.mrb[26].mxu0 }
 0x248   : > { %v1405_v36 = vadd.f32 %v1404_v8, %v1403_v56  ;;  %1557 = vst.msk [vmem:[#allocation3 + $0x159] sm:$0xff] %vm262_vm2, %v3766_v6  ;;  %v1329_v18 = vpop.f32.mrb[27].mxu0  ;;  %v1454_v22 = vmul.f32 %v3766_v6, %v3766_v6  ;;  %v1510_v45 = vsel %vm262_vm2, %v1453_v9, 0.0  ;;  %v1410_v42 = vsel %vm262_vm2, %v3766_v6, 0.0 }
 0x249   : > { %v1506_v57 = vsel %vm262_vm2, %v1451_v41, 0.0  ;;  %v1406_v13 = vsel %vm262_vm2, %v1329_v18, 0.0  ;;  %v1452_v0 = vmul.f32 %v1329_v18, %v1329_v18  ;;  %1555 = vst.msk [vmem:[#allocation3 + $0x141] sm:$0xff] %vm262_vm2, %v1329_v18 }
 0x24a   : > { %v1507_v21 = vadd.f32 %v1506_v57, %v1505_v37  ;;  %v1407_v60 = vadd.f32 %v1406_v13, %v1405_v36  ;;  %v1512_v12 = vsel %vm262_vm2, %v1454_v22, 0.0 }
 0x24b   : > { %v1508_v19 = vsel %vm262_vm2, %v1452_v0, 0.0 }
 0x24c   : > { %v1409_v25 = vadd.f32 %v1408_v53, %v1407_v60  ;;  %v1509_v10 = vadd.f32 %v1508_v19, %v1507_v21 }
 0x24d   : > { %v4842_v4 = vld [vmem:[#allocation3 + $0x150] sm:$0xff] }
 0x24e   : > { %v1511_v35 = vadd.f32 %v1510_v45, %v1509_v10  ;;  %v1411_v34 = vadd.f32 %v1410_v42, %v1409_v25 }
 0x24f   : > { %v4866_v32 = vld [vmem:[#allocation3 + $0x158] sm:$0xff]  ;;  %v4868_v14 = vld [vmem:[#allocation3 + $0x160] sm:$0x3] }
 0x250   : > { %v1513_v58 = vadd.f32 %v1512_v12, %v1511_v35  ;;  %v4854_v51 = vld [vmem:[#allocation3 + $0x140] sm:$0xff]  ;;  %v4856_v44 = vld [vmem:[#allocation3 + $0x148] sm:$0x3] }
 0x263   : > { %v3769_v55 = vpop.f32.mrb[28].mxu0 }
 0x264   : > { %1560 = vst.msk [vmem:[#allocation3 + $0x181] sm:$0xff] %vm262_vm2, %v3769_v55  ;;  %v1342_v3 = vpop.f32.mrb[29].mxu0  ;;  %v1457_v29 = vmul.f32 %v3769_v55, %v3769_v55  ;;  %v1416_v6 = vsel %vm262_vm2, %v3769_v55, 0.0 }
 0x265   : > { %v1412_v52 = vsel %vm262_vm2, %v1342_v3, 0.0  ;;  %v1455_v26 = vmul.f32 %v1342_v3, %v1342_v3  ;;  %1558 = vst.msk [vmem:[#allocation3 + $0x169] sm:$0xff] %vm262_vm2, %v1342_v3  ;;  %v3770_v28 = vpop.f32.mrb[30].mxu0 }
 0x266   : > { %v1413_v38 = vadd.f32 %v1412_v52, %v1411_v34  ;;  %1561 = vst.msk [vmem:[#allocation3 + $0x189] sm:$0xff] %vm262_vm2, %v3770_v28  ;;  %v1345_v56 = vpop.f32.mrb[31].mxu0  ;;  %v1458_v36 = vmul.f32 %v3770_v28, %v3770_v28  ;;  %v1518_v13 = vsel %vm262_vm2, %v1457_v29, 0.0  ;;  %v1418_v0 = vsel %vm262_vm2, %v3770_v28, 0.0  ;;  %v4686_v29 = vld [vmem:[#allocation3 + $0x1a0] sm:$0xff] }
 0x267   : > { %v1514_v37 = vsel %vm262_vm2, %v1455_v26, 0.0  ;;  %v1414_v33 = vsel %vm262_vm2, %v1345_v56, 0.0  ;;  %v1456_v63 = vmul.f32 %v1345_v56, %v1345_v56  ;;  %1559 = vst.msk [vmem:[#allocation3 + $0x171] sm:$0xff] %vm262_vm2, %v1345_v56 }
 0x268   : > { %v1515_v8 = vadd.f32 %v1514_v37, %v1513_v58  ;;  %v1415_v41 = vadd.f32 %v1414_v33, %v1413_v38  ;;  %v1520_v53 = vsel %vm262_vm2, %v1458_v36, 0.0  ;;  %v4688_v37 = vld [vmem:[#allocation3 + $0x1a8] sm:$0x3]  ;;  %v4690_v33 = vld [vmem:[#allocation3] sm:$0xff] }
 0x269   : > { %v1516_v18 = vsel %vm262_vm2, %v1456_v63, 0.0  ;;  %v4692_v63 = vld [vmem:[#allocation3 + $0x8] sm:$0xff] }
 0x26a   : > { %v1417_v9 = vadd.f32 %v1416_v6, %v1415_v41  ;;  %v1517_v57 = vadd.f32 %v1516_v18, %v1515_v8  ;;  %v4694_v8 = vld [vmem:[#allocation3 + $0x10] sm:$0x3]  ;;  %v4698_v6 = vld [vmem:[#allocation3 + $0x18] sm:$0xff] }
 0x26b   : > { %v4696_v41 = vld [vmem:[#allocation3 + $0x30] sm:$0xff]  ;;  %v4880_v16 = vld [vmem:[#allocation3 + $0x180] sm:$0xff] }
 0x26c   : > { %v1419_v21 = vadd.f32 %v1418_v0, %v1417_v9  ;;  %v1519_v60 = vadd.f32 %v1518_v13, %v1517_v57  ;;  %v4704_v57 = vld [vmem:[#allocation3 + $0x38] sm:$0xff]  ;;  %v4706_v13 = vld [vmem:[#allocation3 + $0x40] sm:$0x3]  ;;  %v4870_v30 = vld [vmem:[#allocation3 + $0x168] sm:$0xff] }
 0x26d   : > { %v4708_v0 = vld [vmem:[#allocation3 + $0x20] sm:$0xff]  ;;  %v4882_v50 = vld [vmem:[#allocation3 + $0x188] sm:$0xff]  ;;  %v4884_v2 = vld [vmem:[#allocation3 + $0x190] sm:$0x3] }
 0x26e   : > { %v1420_v22 = vrot.slane %v1419_v21, 4  ;;  %v1521_v19 = vadd.f32 %v1520_v53, %v1519_v60  ;;  %v4700_v18 = vld [vmem:[#allocation3 + $0x170] sm:$0xff]  ;;  %v4702_v9 = vld [vmem:[#allocation3 + $0x178] sm:$0x3]  ;;  %v4766_v53 = vld [vmem:[#allocation3 + $0xa8] sm:$0xff]  ;;  %6616 = vst [vmem:[#allocation37_spill] sm:$0xff] %v4882_v50 }
 0x26f   : > { %v4768_v60 = vld [vmem:[#allocation3 + $0xc8] sm:$0xff]  ;;  %6617 = vst [vmem:[#allocation38_spill] sm:$0xff] %v4884_v2 }
 0x270   : > { %v1421_v25 = vadd.f32 %v1420_v22, %v1419_v21  ;;  %v1522_v10 = vrot.slane %v1521_v19, 4  ;;  %v4710_v21 = vld [vmem:[#allocation3 + $0x28] sm:$0x3] }
 0x271   : > { %v4756_v22 = vld [vmem:[#allocation3 + $0x88] sm:$0x3] }
 0x272   : > { %v1422_v45 = vrot.slane %v1421_v25, 2  ;;  %v1523_v42 = vadd.f32 %v1522_v10, %v1521_v19  ;;  %v4722_v10 = vld [vmem:[#allocation3 + $0x48] sm:$0xff]  ;;  %v4754_v19 = vld [vmem:[#allocation3 + $0x80] sm:$0xff] }
 0x274   : > { %v1423_v35 = vadd.f32 %v1422_v45, %v1421_v25  ;;  %v1524_v34 = vrot.slane %v1523_v42, 2  ;;  %v4720_v25 = vld [vmem:[#allocation3 + $0x60] sm:$0xff]  ;;  %v4724_v45 = vld [vmem:[#allocation3 + $0x68] sm:$0xff] }
 0x276   : > { %v1424_v12 = vrot.slane %v1423_v35, 1  ;;  %v1525_v58 = vadd.f32 %v1524_v34, %v1523_v42  ;;  %v4750_v34 = vld [vmem:[#allocation3 + $0x98] sm:$0xff] }
 0x278   : > { %v1425_v55 = vadd.f32 %v1424_v12, %v1423_v35  ;;  %v1526_v3 = vrot.slane %v1525_v58, 1  ;;  %v4748_v12 = vld [vmem:[#allocation3 + $0x90] sm:$0xff]  ;;  %v4752_v35 = vld [vmem:[#allocation3 + $0xa0] sm:$0x3] }
 0x27a   : > { %v1527_v52 = vadd.f32 %v1526_v3, %v1525_v58  ;;  %v4682_v26 = vmul.f32 0.00390625, %v1425_v55  ;;  %v4732_v58 = vld [vmem:[#allocation3 + $0x70] sm:$0x3]  ;;  %v4736_v3 = vld [vmem:[#allocation3 + $0x58] sm:$0x3] }
 0x27b   : > { %v4734_v55 = vld [vmem:[#allocation3 + $0x50] sm:$0xff] }
 0x27c   : > { %v1563_v28 = vmul.f32 0.00390625, %v1527_v52  ;;  %v1564_v38 = vmul.f32 %v4682_v26, %v4682_v26  ;;  %v4738_v52 = vld [vmem:[#allocation3 + $0x78] sm:$0xff]  ;;  %v6618_v40 = vsub.f32 %v4700_v18, %v4682_v26  ;;  %v6619_v59 = vsub.f32 %v4702_v9, %v4682_v26 }
 0x27d   : > { %v6620_v7 = vsub.f32 %v4686_v29, %v4682_v26  ;;  %v6621_v1 = vsub.f32 %v4688_v37, %v4682_v26  ;;  %v6622_v18 = vsub.f32 %v4696_v41, %v4682_v26  ;;  %v6623_v9 = vsub.f32 %v4704_v57, %v4682_v26 }
 0x27e   : > { %v1565_v56 = vsub.f32 %v1563_v28, %v1564_v38  ;;  %v4780_v28 = vld [vmem:[#allocation3 + $0xb0] sm:$0xff]  ;;  %v4822_v38 = vld [vmem:[#allocation3 + $0x108] sm:$0xff]  ;;  %v6624_v29 = vsub.f32 %v4690_v33, %v4682_v26  ;;  %v6625_v37 = vsub.f32 %v4692_v63, %v4682_v26  ;;  %v6626_v33 = vsub.f32 %v4694_v8, %v4682_v26 }
 0x27f   : > { %v6627_v63 = vsub.f32 %v4698_v6, %v4682_v26  ;;  %v6630_v8 = vsub.f32 %v4706_v13, %v4682_v26  ;;  %v6632_v13 = vsub.f32 %v4734_v55, %v4682_v26 }
 0x280   : > { %v1566_v36 = vmax.f32 %v1565_v56, 0.0  ;;  %v4794_v56 = vld [vmem:[#allocation3 + $0xd8] sm:$0xff] }
 0x282   : > { %v1567_v42 = vadd.f32 1e-05, %v1566_v36  ;;  %v4764_v36 = vld [vmem:[#allocation3 + $0xc0] sm:$0xff] }
 0x284   : > { %3834 = vrsqrt.f32 %v1567_v42  ;;  %v4852_v42 = vld [vmem:[#allocation3 + $0x138] sm:$0xff] }
 0x28e   : > { %v4894_v43 = vpop.eup %3834 }
 0x28f   : > { %v1723_v23 = vmul.f32 %v4894_v43, %v6618_v40  ;;  %v1724_v20 = vmul.f32 %v4894_v43, %v6619_v59  ;;  %v1729_v31 = vmul.f32 %v4894_v43, %v6620_v7  ;;  %v1730_v17 = vmul.f32 %v4894_v43, %v6621_v1 }
 0x290   : > { %v1683_v40 = vmul.f32 %v4894_v43, %v6622_v18  ;;  %v1684_v59 = vmul.f32 %v4894_v43, %v6623_v9  ;;  %v4932_v7 = vmul.f32 %v4894_v43, %v6624_v29  ;;  %v4938_v1 = vmul.f32 %v4894_v43, %v6625_v37 }
 0x291   : > { %v1777_v41 = vmax.f32 %v1723_v23, 0.0  ;;  %v1778_v27 = vmax.f32 %v1724_v20, 0.0  ;;  %v1783_v18 = vmax.f32 %v1729_v31, 0.0  ;;  %v1784_v2 = vmax.f32 %v1730_v17, 0.0 }
 0x292   : > { %v4940_v50 = vmax.f32 %v1683_v40, 0.0  ;;  %v4942_v57 = vmax.f32 %v1684_v59, 0.0  ;;  %v4948_v9 = vmul.f32 %v4894_v43, %v6626_v33  ;;  %v4954_v29 = vmul.f32 %v4894_v43, %v6627_v63 }
 0x293   : > { %1832 = vst.msk [vmem:[#allocation3 + $0x170] sm:$0xff] %vm262_vm2, %v1777_v41  ;;  %1838 = vst.msk [vmem:[#allocation3 + $0x1a0] sm:$0xff] %vm262_vm2, %v1783_v18  ;;  %v6628_v20 = vsub.f32 %v4708_v0, %v4682_v26  ;;  %v6629_v31 = vsub.f32 %v4710_v21, %v4682_v26  ;;  %v4976_v6 = vmul.f32 %v4894_v43, %v6630_v8 }
 0x294   : > { %1833 = vst.msk [vmem:[#allocation3 + $0x178] sm:$0x3] %vm1787_vm13, %v1778_v27  ;;  %1839 = vst.msk [vmem:[#allocation3 + $0x1a8] sm:$0x3] %vm1787_vm13, %v1784_v2  ;;  %v6631_v2 = vsub.f32 %v4722_v10, %v4682_v26  ;;  %v4996_v21 = vmul.f32 %v4894_v43, %v6632_v13  ;;  %v6633_v10 = vsub.f32 %v4736_v3, %v4682_v26 }
 0x295   : > { %v4964_v23 = vmul.f32 %v4894_v43, %v6628_v20  ;;  %v4970_v17 = vmul.f32 %v4894_v43, %v6629_v31  ;;  %1872 = vst.msk [vmem:[#allocation3 + $0x172] sm:$0x80] %vm1857_vm14, %v1777_v41  ;;  %1886 = vst.msk [vmem:[#allocation3 + $0x1a2] sm:$0x80] %vm1857_vm14, %v1777_v41  ;;  %v6635_v37 = vsub.f32 %v4724_v45, %v4682_v26 }
 0x296   : > { %v4982_v0 = vmul.f32 %v4894_v43, %v6631_v2  ;;  %1881 = vst.msk [vmem:[#allocation3 + $0x1a0] sm:$0xff] %vm262_vm2, %v1777_v41  ;;  %1792 = vst.msk [vmem:[#allocation3 + $0x30] sm:$0xff] %vm262_vm2, %v4940_v50  ;;  %v5002_v40 = vmul.f32 %v4894_v43, %v6633_v10  ;;  %v6636_v3 = vsub.f32 %v4732_v58, %v4682_v26 }
 0x297   : > { %1882 = vst.msk [vmem:[#allocation3 + $0x1a8] sm:$0x1] %vm1877_vm15, %v1778_v27  ;;  %v6634_v27 = vsub.f32 %v4720_v25, %v4682_v26  ;;  %v5014_v55 = vmul.f32 %v4894_v43, %v6635_v37  ;;  %v6637_v25 = vsub.f32 %v4738_v52, %v4682_v26  ;;  %v6638_v45 = vsub.f32 %v4754_v19, %v4682_v26 }
 0x298   : > { %1793 = vst.msk [vmem:[#allocation3 + $0x38] sm:$0xff] %vm262_vm2, %v4942_v57  ;;  %v5022_v41 = vmul.f32 %v4894_v43, %v6636_v3  ;;  %v6639_v63 = vsub.f32 %v4756_v22, %v4682_v26  ;;  %v6640_v20 = vsub.f32 %v4748_v12, %v4682_v26  ;;  %v6641_v31 = vsub.f32 %v4750_v34, %v4682_v26 }
 0x299   : > { %v5008_v59 = vmul.f32 %v4894_v43, %v6634_v27  ;;  %1842 = vst.msk [vmem:[#allocation3 + $0x2e] sm:$0x4] %vm1840_vm12, %v4940_v50  ;;  %v5028_v18 = vmul.f32 %v4894_v43, %v6637_v25  ;;  %v5034_v33 = vmul.f32 %v4894_v43, %v6638_v45  ;;  %v6642_v8 = vsub.f32 %v4752_v35, %v4682_v26 }
 0x29a   : > { %v5040_v58 = vmul.f32 %v4894_v43, %v6639_v63  ;;  %v5046_v52 = vmul.f32 %v4894_v43, %v6640_v20  ;;  %v5052_v19 = vmul.f32 %v4894_v43, %v6641_v31  ;;  %v6643_v2 = vsub.f32 %v4766_v53, %v4682_v26 }
 0x29b   : > { %v5058_v22 = vmul.f32 %v4894_v43, %v6642_v8  ;;  %v6644_v13 = vsub.f32 %v4780_v28, %v4682_v26  ;;  %v6645_v10 = vsub.f32 %v4782_v62, %v4682_v26  ;;  %v6646_v27 = vsub.f32 %v4764_v36, %v4682_v26 }
 0x29c   : > { %v5064_v12 = vmul.f32 %v4894_v43, %v6643_v2  ;;  %v6647_v37 = vsub.f32 %v4768_v60, %v4682_v26  ;;  %v6648_v3 = vsub.f32 %v4778_v46, %v4682_v26  ;;  %v6649_v25 = vsub.f32 %v4794_v56, %v4682_v26 }
 0x29d   : > { %v5070_v34 = vmul.f32 %v4894_v43, %v6644_v13  ;;  %v5076_v35 = vmul.f32 %v4894_v43, %v6645_v10  ;;  %v5082_v53 = vmul.f32 %v4894_v43, %v6646_v27  ;;  %v6650_v45 = vsub.f32 %v4808_v39, %v4682_v26 }
 0x29e   : > { %v5088_v28 = vmul.f32 %v4894_v43, %v6647_v37  ;;  %v5094_v62 = vmul.f32 %v4894_v43, %v6648_v3  ;;  %v5100_v36 = vmul.f32 %v4894_v43, %v6649_v25  ;;  %v6651_v63 = vsub.f32 %v4810_v54, %v4682_v26 }
 0x29f   : > { %v5106_v60 = vmul.f32 %v4894_v43, %v6650_v45  ;;  %v6652_v20 = vsub.f32 %v4792_v5, %v4682_v26  ;;  %v6653_v31 = vsub.f32 %v4796_v61, %v4682_v26  ;;  %v6654_v8 = vsub.f32 %v4798_v48, %v4682_v26  ;;  %v1894_v3 = vld [vmem:[#allocation3 + $0x38] sm:$0xff] }
 0x2a0   : > { %v5112_v46 = vmul.f32 %v4894_v43, %v6651_v63  ;;  %v6655_v2 = vsub.f32 %v4822_v38, %v4682_v26  ;;  %v6656_v13 = vsub.f32 %v4838_v24, %v4682_v26  ;;  %v6657_v10 = vsub.f32 %v4840_v11, %v4682_v26 }
 0x2a1   : > { %v5118_v56 = vmul.f32 %v4894_v43, %v6652_v20  ;;  %v5124_v39 = vmul.f32 %v4894_v43, %v6653_v31  ;;  %v5130_v54 = vmul.f32 %v4894_v43, %v6654_v8  ;;  %v6658_v27 = vsub.f32 %v4812_v15, %v4682_v26  ;;  %v1893_v31 = vld [vmem:[#allocation3 + $0x30] sm:$0xff] }
 0x2a2   : > { %v5136_v5 = vmul.f32 %v4894_v43, %v6655_v2  ;;  %v5142_v61 = vmul.f32 %v4894_v43, %v6656_v13  ;;  %v5148_v48 = vmul.f32 %v4894_v43, %v6657_v10  ;;  %v6659_v37 = vsub.f32 %v4824_v49, %v4682_v26 }
 0x2a3   : > { %v5154_v38 = vmul.f32 %v4894_v43, %v6658_v27  ;;  %v6660_v25 = vsub.f32 %v4826_v47, %v4682_v26  ;;  %v6661_v45 = vsub.f32 %v4852_v42, %v4682_v26  ;;  %v6662_v63 = vsub.f32 %v4854_v51, %v4682_v26 }
 0x2a4   : > { %v5160_v24 = vmul.f32 %v4894_v43, %v6659_v37  ;;  %v6663_v20 = vsub.f32 %v4856_v44, %v4682_v26  ;;  %v6664_v8 = vsub.f32 %v4842_v4, %v4682_v26  ;;  %v6665_v2 = vsub.f32 %v4866_v32, %v4682_v26 }
 0x2a5   : > { %v5166_v11 = vmul.f32 %v4894_v43, %v6660_v25  ;;  %v5172_v15 = vmul.f32 %v4894_v43, %v6661_v45  ;;  %v5178_v49 = vmul.f32 %v4894_v43, %v6662_v63  ;;  %v6666_v13 = vsub.f32 %v4868_v14, %v4682_v26  ;;  %v6669_v25 = vld [vmem:[#allocation37_spill] sm:$0xff]  ;;  %v6671_v63 = vld [vmem:[#allocation38_spill] sm:$0xff] }
 0x2a6   : > { %v5184_v47 = vmul.f32 %v4894_v43, %v6663_v20  ;;  %v5190_v42 = vmul.f32 %v4894_v43, %v6664_v8  ;;  %v5196_v51 = vmul.f32 %v4894_v43, %v6665_v2  ;;  %v6667_v10 = vsub.f32 %v4870_v30, %v4682_v26 }
 0x2a7   : > { %v5202_v44 = vmul.f32 %v4894_v43, %v6666_v13  ;;  %v5210_v27 = vpack.c.bf16 %v1894_v3, %v1893_v31  ;;  %v6668_v32 = vsub.f32 %v4880_v16, %v4682_v26  ;;  %v6670_v14 = vsub.f32 %v6669_v25, %v4682_v26  ;;  %v6673_v3 = vld [vmem:[#allocation36_spill] sm:$0xff] }
 0x2a8   : > { %v5208_v4 = vmul.f32 %v4894_v43, %v6667_v10  ;;  %v6672_v30 = vsub.f32 %v6671_v63, %v4682_v26  ;;  %v6674_v31 = vsub.f32 %v6673_v3, %v4682_v26  ;;  %v1734_v8 = vmax.f32 %v4954_v29, 0.0 }
 0x2a9   : > { %v5216_v37 = vmul.f32 %v4894_v43, %v6668_v32  ;;  %v5222_v45 = vmul.f32 %v4894_v43, %v6670_v14  ;;  %v1735_v2 = vmax.f32 %v4964_v23, 0.0  ;;  %v1731_v13 = vmax.f32 %v4932_v7, 0.0  ;;  %2396 = vrot.lane.b32.xlu1 %v5210_v27, %s3846_s18  ;;  %1979 = vst.msk [vmem:[#allocation2 + $0x10] sm:$0xff] %vm262_vm2, %v5210_v27 }
 0x2aa   : > { %v5228_v20 = vmul.f32 %v4894_v43, %v6672_v30  ;;  %v5234_v16 = vmul.f32 %v4894_v43, %v6674_v31  ;;  %v1732_v10 = vmax.f32 %v4938_v1, 0.0  ;;  %v1733_v32 = vmax.f32 %v4948_v9, 0.0  ;;  %1789 = vst.msk [vmem:[#allocation3 + $0x18] sm:$0xff] %vm262_vm2, %v1734_v8 }
 0x2ab   : > { %v1736_v26 = vmax.f32 %v4970_v17, 0.0  ;;  %v1739_v43 = vmax.f32 %v4976_v6, 0.0  ;;  %1790 = vst.msk [vmem:[#allocation3 + $0x20] sm:$0xff] %vm262_vm2, %v1735_v2  ;;  %v1740_v7 = vmax.f32 %v4982_v0, 0.0  ;;  %v1741_v29 = vmax.f32 %v4996_v21, 0.0  ;;  %1785 = vst.msk [vmem:[#allocation3] sm:$0xff] %vm262_vm2, %v1731_v13 }
 0x2ac   : > { %v1742_v23 = vmax.f32 %v5002_v40, 0.0  ;;  %v1743_v25 = vmax.f32 %v5008_v59, 0.0  ;;  %1841 = vst.msk [vmem:[#allocation3 + $0x16] sm:$0x4] %vm1840_vm12, %v1734_v8  ;;  %v1744_v1 = vmax.f32 %v5014_v55, 0.0  ;;  %v1745_v9 = vmax.f32 %v5022_v41, 0.0 }
 0x2ad   : > { %v1746_v17 = vmax.f32 %v5028_v18, 0.0  ;;  %v1747_v6 = vmax.f32 %v5034_v33, 0.0  ;;  %1786 = vst.msk [vmem:[#allocation3 + $0x8] sm:$0xff] %vm262_vm2, %v1732_v10  ;;  %v1748_v0 = vmax.f32 %v5040_v58, 0.0  ;;  %v1749_v21 = vmax.f32 %v5046_v52, 0.0  ;;  %1795 = vst.msk [vmem:[#allocation3 + $0x48] sm:$0xff] %vm262_vm2, %v1740_v7 }
 0x2ae   : > { %1788 = vst.msk [vmem:[#allocation3 + $0x10] sm:$0x3] %vm1787_vm13, %v1733_v32  ;;  %1791 = vst.msk [vmem:[#allocation3 + $0x28] sm:$0x3] %vm1787_vm13, %v1736_v26  ;;  %v1750_v40 = vmax.f32 %v5052_v19, 0.0  ;;  %v1751_v59 = vmax.f32 %v5058_v22, 0.0 }
 0x2af   : > { %1794 = vst.msk [vmem:[#allocation3 + $0x40] sm:$0x3] %vm1787_vm13, %v1739_v43  ;;  %1797 = vst.msk [vmem:[#allocation3 + $0x58] sm:$0x3] %vm1787_vm13, %v1742_v23  ;;  %v1753_v55 = vmax.f32 %v5070_v34, 0.0  ;;  %v1754_v41 = vmax.f32 %v5076_v35, 0.0 }
 0x2b0   : > { %1875 = vst.msk [vmem:[#allocation3] sm:$0xfe] %vm1874_vm11, %v4940_v50  ;;  %v1755_v18 = vmax.f32 %v5082_v53, 0.0  ;;  %v1757_v33 = vmax.f32 %v5094_v62, 0.0  ;;  %v1758_v58 = vmax.f32 %v5100_v36, 0.0  ;;  %v1759_v52 = vmax.f32 %v5106_v60, 0.0 }
 0x2b1   : > { %1883 = vst.msk [vmem:[#allocation3 - $0x2] sm:$0x4] %vm1840_vm12, %v4940_v50  ;;  %v1752_v50 = vmax.f32 %v5064_v12, 0.0  ;;  %1843 = vst.msk [vmem:[#allocation3 + $0x46] sm:$0x4] %vm1840_vm12, %v1740_v7  ;;  %v1760_v19 = vmax.f32 %v5112_v46, 0.0 }
 0x2b2   : > { %1796 = vst.msk [vmem:[#allocation3 + $0x50] sm:$0xff] %vm262_vm2, %v1741_v29  ;;  %1798 = vst.msk [vmem:[#allocation3 + $0x60] sm:$0xff] %vm262_vm2, %v1743_v25  ;;  %v1761_v22 = vmax.f32 %v5118_v56, 0.0  ;;  %v1762_v12 = vmax.f32 %v5124_v39, 0.0  ;;  %v1763_v34 = vmax.f32 %v5130_v54, 0.0  ;;  %v1764_v35 = vmax.f32 %v5136_v5, 0.0 }
 0x2b3   : > { %1858 = vst.msk [vmem:[#allocation3 + $0x22] sm:$0x80] %vm1857_vm14, %v1735_v2  ;;  %1859 = vst.msk [vmem:[#allocation3 + $0x3a] sm:$0x80] %vm1857_vm14, %v4942_v57  ;;  %v1765_v53 = vmax.f32 %v5142_v61, 0.0  ;;  %v1767_v62 = vmax.f32 %v5154_v38, 0.0 }
 0x2b4   : > { %1876 = vst.msk [vmem:[#allocation3 + $0x8] sm:$0xff] %vm262_vm2, %v4942_v57  ;;  %1799 = vst.msk [vmem:[#allocation3 + $0x68] sm:$0xff] %vm262_vm2, %v1744_v1  ;;  %v1891_v36 = vld [vmem:[#allocation3 + $0x20] sm:$0xff]  ;;  %v1768_v60 = vmax.f32 %v5160_v24, 0.0  ;;  %v1769_v46 = vmax.f32 %v5166_v11, 0.0  ;;  %v1770_v56 = vmax.f32 %v5172_v15, 0.0 }
 0x2b5   : > { %1878 = vst.msk [vmem:[#allocation3 + $0x10] sm:$0x1] %vm1877_vm15, %v1739_v43  ;;  %v1771_v39 = vmax.f32 %v5178_v49, 0.0  ;;  %v1890_v54 = vld [vmem:[#allocation3 + $0x18] sm:$0xff]  ;;  %v1772_v5 = vmax.f32 %v5184_v47, 0.0  ;;  %v1773_v61 = vmax.f32 %v5190_v42, 0.0 }
 0x2b6   : > { %1884 = vst.msk [vmem:[#allocation3 + $0xa] sm:$0x80] %vm1857_vm14, %v4942_v57  ;;  %1860 = vst.msk [vmem:[#allocation3 + $0x52] sm:$0x80] %vm1857_vm14, %v1741_v29  ;;  %v1756_v57 = vmax.f32 %v5088_v28, 0.0  ;;  %v1766_v28 = vmax.f32 %v5148_v48, 0.0  ;;  %v5347_v24 = vpack.c.bf16 %v1891_v36, %v1890_v54 }
 0x2b7   : > { %1800 = vst.msk [vmem:[#allocation3 + $0x70] sm:$0x3] %vm1787_vm13, %v1745_v9  ;;  %1803 = vst.msk [vmem:[#allocation3 + $0x88] sm:$0x3] %vm1787_vm13, %v1748_v0  ;;  %v1774_v48 = vmax.f32 %v5196_v51, 0.0  ;;  %v1775_v38 = vmax.f32 %v5202_v44, 0.0 }
 0x2b8   : > { %1801 = vst.msk [vmem:[#allocation3 + $0x78] sm:$0xff] %vm262_vm2, %v1746_v17  ;;  %1802 = vst.msk [vmem:[#allocation3 + $0x80] sm:$0xff] %vm262_vm2, %v1747_v6  ;;  %v1776_v11 = vmax.f32 %v5208_v4, 0.0  ;;  %v1779_v15 = vmax.f32 %v5216_v37, 0.0  ;;  %v1780_v49 = vmax.f32 %v5222_v45, 0.0  ;;  %v1887_v42 = vld [vmem:[#allocation3] sm:$0xff]  ;;  %2394 = vrot.lane.b32.xlu0 %v5347_v24, %s3846_s18 }
 0x2b9   : > { %1844 = vst.msk [vmem:[#allocation3 + $0x5e] sm:$0x4] %vm1840_vm12, %v1743_v25  ;;  %1845 = vst.msk [vmem:[#allocation3 + $0x76] sm:$0x4] %vm1840_vm12, %v1746_v17  ;;  %v1897_v47 = vld [vmem:[#allocation3 + $0x50] sm:$0xff]  ;;  %v1781_v51 = vmax.f32 %v5228_v20, 0.0 }
 0x2ba   : > { %1804 = vst.msk [vmem:[#allocation3 + $0x90] sm:$0xff] %vm262_vm2, %v1749_v21  ;;  %1805 = vst.msk [vmem:[#allocation3 + $0x98] sm:$0xff] %vm262_vm2, %v1750_v40  ;;  %v1782_v44 = vmax.f32 %v5234_v16, 0.0  ;;  %v1896_v4 = vld [vmem:[#allocation3 + $0x48] sm:$0xff]  ;;  %v1933_v0 = vld [vmem:[#allocation3 + $0x170] sm:$0xff]  ;;  %vm6690_vm15 = vcmask 293888  }
 0x2bb   : > { %1806 = vst.msk [vmem:[#allocation3 + $0xa0] sm:$0x3] %vm1787_vm13, %v1751_v59  ;;  %1809 = vst.msk [vmem:[#allocation3 + $0xb8] sm:$0x3] %vm1787_vm13, %v1754_v41  ;;  %v1900_v14 = vld [vmem:[#allocation3 + $0x68] sm:$0xff]  ;;  %v5371_v45 = vpack.c.bf16 %v1897_v47, %v1896_v4 }
 0x2bc   : > { %1861 = vst.msk [vmem:[#allocation3 + $0x6a] sm:$0x80] %vm1857_vm14, %v1744_v1  ;;  %1862 = vst.msk [vmem:[#allocation3 + $0x82] sm:$0x80] %vm1857_vm14, %v1747_v6  ;;  %v1888_v2 = vld [vmem:[#allocation3 + $0x8] sm:$0xff]  ;;  %2603 = vrot.lane.b32.xlu0 %v5210_v27, %s3851_s27 }
 0x2bd   : > { %1807 = vst.msk [vmem:[#allocation3 + $0xa8] sm:$0xff] %vm262_vm2, %v1752_v50  ;;  %1808 = vst.msk [vmem:[#allocation3 + $0xb0] sm:$0xff] %vm262_vm2, %v1753_v55  ;;  %2605 = vrot.lane.b32.xlu1 %v5371_v45, %s3851_s27  ;;  %v5398_v43 = vpack.c.bf16 %v1888_v2, %v1887_v42 }
 0x2be   : > { %1810 = vst.msk [vmem:[#allocation3 + $0xc0] sm:$0xff] %vm262_vm2, %v1755_v18  ;;  %1811 = vst.msk [vmem:[#allocation3 + $0xc8] sm:$0xff] %vm262_vm2, %v1756_v57 }
 0x2bf   : > { %1846 = vst.msk [vmem:[#allocation3 + $0x8e] sm:$0x4] %vm1840_vm12, %v1749_v21  ;;  %1847 = vst.msk [vmem:[#allocation3 + $0xa6] sm:$0x4] %vm1840_vm12, %v1752_v50  ;;  %v1903_v20 = vld [vmem:[#allocation3 + $0x80] sm:$0xff] }
 0x2c0   : > { %1863 = vst.msk [vmem:[#allocation3 + $0x9a] sm:$0x80] %vm1857_vm14, %v1750_v40  ;;  %1864 = vst.msk [vmem:[#allocation3 + $0xb2] sm:$0x80] %vm1857_vm14, %v1753_v55  ;;  %v1899_v37 = vld [vmem:[#allocation3 + $0x60] sm:$0xff]  ;;  %v1902_v30 = vld [vmem:[#allocation3 + $0x78] sm:$0xff]  ;;  %2398 = vrot.lane.b32.xlu0 %v5371_v45, %s3846_s18 }
 0x2c1   : > { %1812 = vst.msk [vmem:[#allocation3 + $0xd0] sm:$0x3] %vm1787_vm13, %v1757_v33  ;;  %1815 = vst.msk [vmem:[#allocation3 + $0xe8] sm:$0x3] %vm1787_vm13, %v1760_v19  ;;  %v5379_v63 = vpack.c.bf16 %v1900_v14, %v1899_v37  ;;  %v1906_v3 = vld [vmem:[#allocation3 + $0x98] sm:$0xff]  ;;  %v5385_v31 = vpack.c.bf16 %v1903_v20, %v1902_v30 }
 0x2c2   : > { %1813 = vst.msk [vmem:[#allocation3 + $0xd8] sm:$0xff] %vm262_vm2, %v1758_v58  ;;  %1814 = vst.msk [vmem:[#allocation3 + $0xe0] sm:$0xff] %vm262_vm2, %v1759_v52 }
 0x2c3   : > { %1848 = vst.msk [vmem:[#allocation3 + $0xbe] sm:$0x4] %vm1840_vm12, %v1755_v18  ;;  %1849 = vst.msk [vmem:[#allocation3 + $0xd6] sm:$0x4] %vm1840_vm12, %v1758_v58  ;;  %2400 = vrot.lane.b32.xlu1 %v5379_v63, %s3846_s18 }
 0x2c4   : > { %1816 = vst.msk [vmem:[#allocation3 + $0xf0] sm:$0xff] %vm262_vm2, %v1761_v22  ;;  %1817 = vst.msk [vmem:[#allocation3 + $0xf8] sm:$0xff] %vm262_vm2, %v1762_v12  ;;  %v1909_v8 = vld [vmem:[#allocation3 + $0xb0] sm:$0xff]  ;;  %2607 = vrot.lane.b32.xlu0 %v5379_v63, %s3851_s27 }
 0x2c5   : > { %1818 = vst.msk [vmem:[#allocation3 + $0x100] sm:$0x3] %vm1787_vm13, %v1763_v34  ;;  %1821 = vst.msk [vmem:[#allocation3 + $0x118] sm:$0x3] %vm1787_vm13, %v1766_v28  ;;  %v1912_v26 = vld [vmem:[#allocation3 + $0xc8] sm:$0xff] }
 0x2c6   : > { %1865 = vst.msk [vmem:[#allocation3 + $0xca] sm:$0x80] %vm1857_vm14, %v1756_v57  ;;  %1866 = vst.msk [vmem:[#allocation3 + $0xe2] sm:$0x80] %vm1857_vm14, %v1759_v52  ;;  %v1905_v16 = vld [vmem:[#allocation3 + $0x90] sm:$0xff]  ;;  %v1908_v10 = vld [vmem:[#allocation3 + $0xa8] sm:$0xff] }
 0x2c7   : > { %1819 = vst.msk [vmem:[#allocation3 + $0x108] sm:$0xff] %vm262_vm2, %v1764_v35  ;;  %1820 = vst.msk [vmem:[#allocation3 + $0x110] sm:$0xff] %vm262_vm2, %v1765_v53  ;;  %v5396_v13 = vpack.c.bf16 %v1906_v3, %v1905_v16  ;;  %v5402_v7 = vpack.c.bf16 %v1909_v8, %v1908_v10  ;;  %2609 = vrot.lane.b32.xlu1 %v5385_v31, %s3851_s27  ;;  %v1907_v34 = vld [vmem:[#allocation3 + $0xa0] sm:$0x3] }
 0x2c8   : > { %1822 = vst.msk [vmem:[#allocation3 + $0x120] sm:$0xff] %vm262_vm2, %v1767_v62  ;;  %1823 = vst.msk [vmem:[#allocation3 + $0x128] sm:$0xff] %vm262_vm2, %v1768_v60  ;;  %2402 = vrot.lane.b32.xlu0 %v5385_v31, %s3846_s18 }
 0x2c9   : > { %1850 = vst.msk [vmem:[#allocation3 + $0xee] sm:$0x4] %vm1840_vm12, %v1761_v22  ;;  %1851 = vst.msk [vmem:[#allocation3 + $0x106] sm:$0x4] %vm1840_vm12, %v1764_v35  ;;  %v1915_v25 = vld [vmem:[#allocation3 + $0xe0] sm:$0xff]  ;;  %v2080_v42 = vshll.u32 %v5402_v7, 16 }
 0x2ca   : > { %1867 = vst.msk [vmem:[#allocation3 + $0xfa] sm:$0x80] %vm1857_vm14, %v1762_v12  ;;  %1868 = vst.msk [vmem:[#allocation3 + $0x112] sm:$0x80] %vm1857_vm14, %v1765_v53  ;;  %v1911_v32 = vld [vmem:[#allocation3 + $0xc0] sm:$0xff]  ;;  %v1914_v23 = vld [vmem:[#allocation3 + $0xd8] sm:$0xff]  ;;  %v5462_v53 = vpack.c.bf16 %v1907_v34, %v1907_v34 }
 0x2cb   : > { %1824 = vst.msk [vmem:[#allocation3 + $0x130] sm:$0x3] %vm1787_vm13, %v1769_v46  ;;  %1827 = vst.msk [vmem:[#allocation3 + $0x148] sm:$0x3] %vm1787_vm13, %v1772_v5  ;;  %v5404_v29 = vpack.c.bf16 %v1912_v26, %v1911_v32  ;;  %v1918_v1 = vld [vmem:[#allocation3 + $0xf8] sm:$0xff]  ;;  %v5410_v9 = vpack.c.bf16 %v1915_v25, %v1914_v23  ;;  %2404 = vrot.lane.b32.xlu1 %v5396_v13, %s3846_s18  ;;  %v2078_v3 = vshrl.u32 %v5402_v7, 16 }
 0x2cc   : > { %1825 = vst.msk [vmem:[#allocation3 + $0x138] sm:$0xff] %vm262_vm2, %v1770_v56  ;;  %1826 = vst.msk [vmem:[#allocation3 + $0x140] sm:$0xff] %vm262_vm2, %v1771_v39  ;;  %2611 = vrot.lane.b32.xlu0 %v5396_v13, %s3851_s27  ;;  %v1910_v35 = vld [vmem:[#allocation3 + $0xb8] sm:$0x3]  ;;  %v2082_v16 = vrot.slane %v2080_v42, 1  ;;  %v1994_v34 = vshrl.u32 %v5398_v43, 16 }
 0x2cd   : > { %1852 = vst.msk [vmem:[#allocation3 + $0x11e] sm:$0x4] %vm1840_vm12, %v1767_v62  ;;  %1853 = vst.msk [vmem:[#allocation3 + $0x136] sm:$0x4] %vm1840_vm12, %v1770_v56  ;;  %v1913_v28 = vld [vmem:[#allocation3 + $0xd0] sm:$0x3]  ;;  %v5466_v36 = vpack.c.bf16 %v1910_v35, %v1910_v35 }
 0x2ce   : > { %1828 = vst.msk [vmem:[#allocation3 + $0x150] sm:$0xff] %vm262_vm2, %v1773_v61  ;;  %1829 = vst.msk [vmem:[#allocation3 + $0x158] sm:$0xff] %vm262_vm2, %v1774_v48  ;;  %v1921_v6 = vld [vmem:[#allocation3 + $0x110] sm:$0xff]  ;;  %v2068_v56 = vshll.u32 %v5396_v13, 16  ;;  %v2092_v30 = vshll.u32 %v5404_v29, 16  ;;  %v2090_v32 = vshrl.u32 %v5404_v29, 16  ;;  %v2083_v25 = vor.u32 %v2082_v16, %v2078_v3 }
 0x2cf   : > { %1830 = vst.msk [vmem:[#allocation3 + $0x160] sm:$0x3] %vm1787_vm13, %v1775_v38  ;;  %1836 = vst.msk [vmem:[#allocation3 + $0x190] sm:$0x3] %vm1787_vm13, %v1781_v51  ;;  %v1924_v50 = vld [vmem:[#allocation3 + $0x128] sm:$0xff]  ;;  %2613 = vrot.lane.b32.xlu1 %v5402_v7, %s3851_s27  ;;  %v2085_v51 = vshll.u32 %v5466_v36, 16 }
 0x2d0   : > { %1869 = vst.msk [vmem:[#allocation3 + $0x12a] sm:$0x80] %vm1857_vm14, %v1768_v60  ;;  %1870 = vst.msk [vmem:[#allocation3 + $0x142] sm:$0x80] %vm1857_vm14, %v1771_v39  ;;  %v1917_v17 = vld [vmem:[#allocation3 + $0xf0] sm:$0xff]  ;;  %v1920_v40 = vld [vmem:[#allocation3 + $0x108] sm:$0xff]  ;;  %2406 = vrot.lane.b32.xlu0 %v5402_v7, %s3846_s18  ;;  %v5471_v39 = vpack.c.bf16 %v1913_v28, %v1913_v28 }
 0x2d1   : > { %1978 = vst.msk [vmem:[#allocation2 + $0x8] sm:$0xff] %vm262_vm2, %v5347_v24  ;;  %1831 = vst.msk [vmem:[#allocation3 + $0x168] sm:$0xff] %vm262_vm2, %v1776_v11  ;;  %v5418_v21 = vpack.c.bf16 %v1918_v1, %v1917_v17  ;;  %v5424_v55 = vpack.c.bf16 %v1921_v6, %v1920_v40  ;;  %v1889_v62 = vld [vmem:[#allocation3 + $0x10] sm:$0x3]  ;;  %v1916_v60 = vld [vmem:[#allocation3 + $0xe8] sm:$0x3] }
 0x2d2   : > { %1834 = vst.msk [vmem:[#allocation3 + $0x180] sm:$0xff] %vm262_vm2, %v1779_v15  ;;  %1835 = vst.msk [vmem:[#allocation3 + $0x188] sm:$0xff] %vm262_vm2, %v1780_v49  ;;  %v1919_v46 = vld [vmem:[#allocation3 + $0x100] sm:$0x3]  ;;  %v1922_v54 = vld [vmem:[#allocation3 + $0x118] sm:$0x3]  ;;  %v5473_v5 = vpack.c.bf16 %v1889_v62, %v1889_v62 }
 0x2d3   : > { %1854 = vst.msk [vmem:[#allocation3 + $0x14e] sm:$0x4] %vm1840_vm12, %v1773_v61  ;;  %1855 = vst.msk [vmem:[#allocation3 + $0x166] sm:$0x4] %vm1840_vm12, %v1776_v11  ;;  %v1927_v57 = vld [vmem:[#allocation3 + $0x140] sm:$0xff]  ;;  %2408 = vrot.lane.b32.xlu1 %v5404_v29, %s3846_s18  ;;  %v2070_v38 = vrot.slane %v2068_v56, 1 }
 0x2d4   : > { %1871 = vst.msk [vmem:[#allocation3 + $0x15a] sm:$0x80] %vm1857_vm14, %v1774_v48  ;;  %1873 = vst.msk [vmem:[#allocation3 + $0x18a] sm:$0x80] %vm1857_vm14, %v1780_v49  ;;  %v1923_v59 = vld [vmem:[#allocation3 + $0x120] sm:$0xff]  ;;  %v1926_v18 = vld [vmem:[#allocation3 + $0x138] sm:$0xff]  ;;  %2615 = vrot.lane.b32.xlu0 %v5404_v29, %s3851_s27  ;;  %v5481_v49 = vpack.c.bf16 %v1919_v46, %v1919_v46 }
 0x2d5   : > { %1837 = vst.msk [vmem:[#allocation3 + $0x198] sm:$0xff] %vm262_vm2, %v1782_v44  ;;  %1980 = vst.msk [vmem:[#allocation2 + $0x18] sm:$0xff] %vm262_vm2, %v5371_v45  ;;  %v5426_v41 = vpack.c.bf16 %v1924_v50, %v1923_v59  ;;  %v1930_v33 = vld [vmem:[#allocation3 + $0x158] sm:$0xff]  ;;  %v5430_v58 = vpack.c.bf16 %v1927_v57, %v1926_v18  ;;  %v2066_v48 = vshrl.u32 %v5396_v13, 16  ;;  %v5485_v44 = vpack.c.bf16 %v1922_v54, %v1922_v54 }
 0x2d6   : > { %1856 = vst.msk [vmem:[#allocation3 + $0x17e] sm:$0x4] %vm1840_vm12, %v1779_v15  ;;  %1885 = vst.msk [vmem:[#allocation3 + $0x196] sm:$0x4] %vm1840_vm12, %v1776_v11  ;;  %v5479_v15 = vpack.c.bf16 %v1916_v60, %v1916_v60  ;;  %v2097_v8 = vshll.u32 %v5471_v39, 16  ;;  %v2094_v26 = vrot.slane %v2092_v30, 1 }
 0x2d7   : > { %1880 = vst.msk [vmem:[#allocation3 + $0x198] sm:$0xfe] %vm1874_vm11, %v1776_v11  ;;  %2617 = vrot.lane.b32.xlu1 %v5410_v9, %s3851_s27  ;;  %v1925_v61 = vld [vmem:[#allocation3 + $0x130] sm:$0x3]  ;;  %v2073_v11 = vshll.u32 %v5462_v53, 16  ;;  %v2071_v37 = vor.u32 %v2070_v38, %v2066_v48  ;;  %v2087_v1 = vrot.slane %v2085_v51, 1 }
 0x2d8   : > { %1981 = vst.msk [vmem:[#allocation2 + $0x20] sm:$0xff] %vm262_vm2, %v5379_v63  ;;  %1982 = vst.msk [vmem:[#allocation2 + $0x28] sm:$0xff] %vm262_vm2, %v5385_v31  ;;  %v1928_v47 = vld [vmem:[#allocation3 + $0x148] sm:$0x3]  ;;  %v5490_v20 = vpack.c.bf16 %v1925_v61, %v1925_v61  ;;  %2410 = vrot.lane.b32.xlu0 %v5410_v9, %s3846_s18  ;;  %v2104_v17 = vshll.u32 %v5410_v9, 16  ;;  %v2095_v6 = vor.u32 %v2094_v26, %v2090_v32  ;;  %v2102_v40 = vshrl.u32 %v5410_v9, 16 }
 0x2d9   : > { %1983 = vst.msk [vmem:[#allocation2 + $0x30] sm:$0xff] %vm262_vm2, %v5396_v13  ;;  %1977 = vst.msk [vmem:[#allocation2] sm:$0xff] %vm262_vm2, %v5398_v43  ;;  %v2075_v14 = vrot.slane %v2073_v11, 1  ;;  %v5494_v2 = vpack.c.bf16 %v1928_v47, %v1928_v47  ;;  %v2109_v59 = vshll.u32 %v5479_v15, 16  ;;  %v5510_v50 = vsel %vm279_vm1, %v2083_v25, %v2087_v1 }
 0x2da   : > { %1984 = vst.msk [vmem:[#allocation2 + $0x38] sm:$0xff] %vm262_vm2, %v5402_v7  ;;  %1985 = vst.msk [vmem:[#allocation2 + $0x40] sm:$0xff] %vm262_vm2, %v5404_v29  ;;  %v1929_v52 = vld [vmem:[#allocation3 + $0x150] sm:$0xff]  ;;  %v1932_v22 = vld [vmem:[#allocation3 + $0x168] sm:$0xff]  ;;  %v2106_v18 = vrot.slane %v2104_v17, 1  ;;  %v1996_v57 = vshll.u32 %v5398_v43, 16 }
 0x2db   : > { %1986 = vst.msk [vmem:[#allocation2 + $0x48] sm:$0xff] %vm262_vm2, %v5410_v9  ;;  %1987 = vst.msk [vmem:[#allocation2 + $0x50] sm:$0xff] %vm262_vm2, %v5418_v21  ;;  %v5438_v19 = vpack.c.bf16 %v1930_v33, %v1929_v52  ;;  %v5442_v12 = vpack.c.bf16 %v1933_v0, %v1932_v22  ;;  %v1931_v4 = vld [vmem:[#allocation3 + $0x160] sm:$0x3]  ;;  %2412 = vrot.lane.b32.xlu1 %v5418_v21, %s3846_s18  ;;  %v5497_v10 = vsel %vm279_vm1, %v2071_v37, %v2075_v14  ;;  %v1892_v17 = vld [vmem:[#allocation3 + $0x28] sm:$0x3] }
 0x2dc   : > { %1988 = vst.msk [vmem:[#allocation2 + $0x58] sm:$0xff] %vm262_vm2, %v5424_v55  ;;  %1989 = vst.msk [vmem:[#allocation2 + $0x60] sm:$0xff] %vm262_vm2, %v5426_v41  ;;  %v5502_v23 = vpack.c.bf16 %v1931_v4, %v1931_v4  ;;  %v2099_v0 = vrot.slane %v2097_v8, 1  ;;  %v2001_v33 = vshll.u32 %v5473_v5, 16  ;;  %v2111_v22 = vrot.slane %v2109_v59, 1  ;;  %2619 = vrot.lane.b32.xlu0 %v5418_v21, %s3851_s27 }
 0x2dd   : > { %1990 = vst.msk [vmem:[#allocation2 + $0x68] sm:$0xff] %vm262_vm2, %v5430_v58  ;;  %1991 = vst.msk [vmem:[#allocation2 + $0x70] sm:$0xff] %vm262_vm2, %v5438_v19  ;;  %v2116_v35 = vshll.u32 %v5418_v21, 16  ;;  %v2107_v28 = vor.u32 %v2106_v18, %v2102_v40  ;;  %v1998_v62 = vrot.slane %v1996_v57, 1  ;;  %v2114_v60 = vshrl.u32 %v5418_v21, 16 }
 0x2de   : > { %1992 = vst.msk [vmem:[#allocation2 + $0x78] sm:$0xff] %vm262_vm2, %v5442_v12  ;;  %v5515_v52 = vsel %vm279_vm1, %v2095_v6, %v2099_v0  ;;  %v2121_v46 = vshll.u32 %v5481_v49, 16  ;;  %v2003_v56 = vrot.slane %v2001_v33, 1  ;;  %v2128_v61 = vshll.u32 %v5424_v55, 16 }
 0x2df   : > { %2621 = vrot.lane.b32.xlu1 %v5424_v55, %s3851_s27  ;;  %v2118_v54 = vrot.slane %v2116_v35, 1  ;;  %v2133_v48 = vshll.u32 %v5485_v44, 16  ;;  %v5528_v38 = vsel %vm279_vm1, %v2107_v28, %v2111_v22  ;;  %v1999_v11 = vor.u32 %v1998_v62, %v1994_v34 }
 0x2e0   : > { %v2123_v47 = vrot.slane %v2121_v46, 1  ;;  %v2126_v42 = vshrl.u32 %v5424_v55, 16  ;;  %v2130_v4 = vrot.slane %v2128_v61, 1  ;;  %v2138_v37 = vshrl.u32 %v5426_v41, 16  ;;  %2414 = vrot.lane.b32.xlu0 %v5424_v55, %s3846_s18  ;;  %v1895_v46 = vld [vmem:[#allocation3 + $0x40] sm:$0x3] }
 0x2e1   : > { %v2119_v51 = vor.u32 %v2118_v54, %v2114_v60  ;;  %v2140_v14 = vshll.u32 %v5426_v41, 16  ;;  %v5536_v30 = vsel %vm279_vm1, %v1999_v11, %v2003_v56  ;;  %v2135_v3 = vrot.slane %v2133_v48, 1 }
 0x2e2   : > { %v2145_v16 = vshll.u32 %v5490_v20, 16  ;;  %v2152_v8 = vshll.u32 %v5430_v58, 16  ;;  %v2131_v26 = vor.u32 %v2130_v4, %v2126_v42  ;;  %v2157_v1 = vshll.u32 %v5494_v2, 16 }
 0x2e3   : > { %2416 = vrot.lane.b32.xlu1 %v5426_v41, %s3846_s18  ;;  %v5541_v32 = vsel %vm279_vm1, %v2119_v51, %v2123_v47  ;;  %v2142_v25 = vrot.slane %v2140_v14, 1  ;;  %v2150_v6 = vshrl.u32 %v5430_v58, 16  ;;  %v2164_v40 = vshll.u32 %v5438_v19, 16  ;;  %v1898_v51 = vld [vmem:[#allocation3 + $0x58] sm:$0x3] }
 0x2e4   : > { %v2154_v0 = vrot.slane %v2152_v8, 1  ;;  %v5549_v59 = vsel %vm279_vm1, %v2131_v26, %v2135_v3  ;;  %v2147_v57 = vrot.slane %v2145_v16, 1  ;;  %v2169_v33 = vshll.u32 %v5502_v23, 16  ;;  %2623 = vrot.lane.b32.xlu0 %v5426_v41, %s3851_s27  ;;  %v1901_v26 = vld [vmem:[#allocation3 + $0x70] sm:$0x3] }
 0x2e5   : > { %v2143_v18 = vor.u32 %v2142_v25, %v2138_v37  ;;  %v2159_v34 = vrot.slane %v2157_v1, 1  ;;  %v2162_v35 = vshrl.u32 %v5438_v19, 16  ;;  %v2166_v28 = vrot.slane %v2164_v40, 1 }
 0x2e6   : > { %v2155_v22 = vor.u32 %v2154_v0, %v2150_v6  ;;  %v5555_v62 = vpack.c.bf16 %v1892_v17, %v1892_v17  ;;  %v2171_v61 = vrot.slane %v2169_v33, 1  ;;  %v2284_v11 = vrot.slane %v5347_v24, 1  ;;  %v1904_v6 = vld [vmem:[#allocation3 + $0x88] sm:$0x3] }
 0x2e7   : > { %2625 = vrot.lane.b32.xlu1 %v5430_v58, %s3851_s27  ;;  %v5558_v60 = vsel %vm279_vm1, %v2143_v18, %v2147_v57  ;;  %v2167_v54 = vor.u32 %v2166_v28, %v2162_v35  ;;  %v5572_v42 = vpack.c.bf16 %v1895_v46, %v1895_v46  ;;  %v2281_v4 = vrot.slane %v5398_v43, 1 }
 0x2e8   : > { %v5563_v56 = vsel %vm279_vm1, %v2155_v22, %v2159_v34  ;;  %2418 = vrot.lane.b32.xlu0 %v5430_v58, %s3846_s18  ;;  %v2285_v47 = vrot.slane %v5555_v62, 1  ;;  %v2282_v37 = vrot.slane %v5473_v5, 1  ;;  %v2287_v3 = vrot.slane %v5210_v27, 1 }
 0x2e9   : > { %v5568_v48 = vsel %vm279_vm1, %v2167_v54, %v2171_v61  ;;  %v2288_v16 = vrot.slane %v5572_v42, 1  ;;  %v5583_v8 = vpack.c.bf16 %v1898_v51, %v1898_v51  ;;  %v2290_v5 = vrot.slane %v5371_v45, 1 }
 0x2ea   : > { %v2286_v14 = vsel %vm569_vm0, %v2284_v11, %v2285_v47  ;;  %v2283_v25 = vsel %vm569_vm0, %v2281_v4, %v2282_v37  ;;  %v5591_v17 = vpack.c.bf16 %v1901_v26, %v1901_v26  ;;  %v2293_v40 = vrot.slane %v5379_v63, 1 }
 0x2eb   : > { %2420 = vrot.lane.b32.xlu1 %v5438_v19, %s3846_s18  ;;  %v2289_v43 = vsel %vm569_vm0, %v2287_v3, %v2288_v16  ;;  %v2291_v1 = vrot.slane %v5583_v8, 1  ;;  %v5598_v57 = vpack.c.bf16 %v1904_v6, %v1904_v6  ;;  %v2296_v22 = vrot.slane %v5385_v31, 1 }
 0x2ec   : > { %2627 = vrot.lane.b32.xlu0 %v5438_v19, %s3851_s27  ;;  %v2294_v18 = vrot.slane %v5591_v17, 1  ;;  %v2299_v28 = vrot.slane %v5396_v13, 1  ;;  %v2300_v46 = vrot.slane %v5462_v53, 1  ;;  %v2302_v61 = vrot.slane %v5402_v7, 1 }
 0x2ed   : > { %v2292_v0 = vsel %vm569_vm0, %v2290_v5, %v2291_v1  ;;  %v2297_v34 = vrot.slane %v5598_v57, 1  ;;  %v2303_v11 = vrot.slane %v5466_v36, 1  ;;  %v2305_v13 = vrot.slane %v5404_v29, 1 }
 0x2ee   : > { %v2295_v33 = vsel %vm569_vm0, %v2293_v40, %v2294_v18  ;;  %v2301_v54 = vsel %vm569_vm0, %v2299_v28, %v2300_v46  ;;  %v2306_v53 = vrot.slane %v5471_v39, 1  ;;  %v2308_v7 = vrot.slane %v5410_v9, 1 }
 0x2ef   : > { %2629 = vrot.lane.b32.xlu1 %v5442_v12, %s3851_s27  ;;  %v2298_v35 = vsel %vm569_vm0, %v2296_v22, %v2297_v34  ;;  %v2304_v47 = vsel %vm569_vm0, %v2302_v61, %v2303_v11  ;;  %v2309_v36 = vrot.slane %v5479_v15, 1  ;;  %v2311_v39 = vrot.slane %v5418_v21, 1 }
 0x2f0   : > { %2329 = vrot.lane.b32.xlu0 %v2283_v25, %s3848_s20  ;;  %v5623_v51 = vsel %vm569_vm0, %v2305_v13, %v2306_v53  ;;  %v2312_v4 = vrot.slane %v5481_v49, 1  ;;  %v2314_v15 = vrot.slane %v5424_v55, 1  ;;  %v2315_v37 = vrot.slane %v5485_v44, 1 }
 0x2f1   : > { %v5631_v29 = vsel %vm569_vm0, %v2308_v7, %v2309_v36  ;;  %v2317_v49 = vrot.slane %v5426_v41, 1  ;;  %v2008_v55 = vshll.u32 %v5347_v24, 16  ;;  %v2320_v3 = vrot.slane %v5430_v58, 1 }
 0x2f2   : > { %v5639_v9 = vsel %vm569_vm0, %v2311_v39, %v2312_v4  ;;  %v5647_v21 = vsel %vm569_vm0, %v2314_v15, %v2315_v37  ;;  %v2321_v16 = vrot.slane %v5494_v2, 1  ;;  %v2323_v26 = vrot.slane %v5438_v19, 1 }
 0x2f3   : > { %2331 = vrot.lane.b32.xlu1 %v2286_v14, %s3848_s20  ;;  %v2010_v41 = vrot.slane %v2008_v55, 1  ;;  %v2324_v25 = vrot.slane %v5502_v23, 1  ;;  %v2006_v58 = vshrl.u32 %v5347_v24, 16  ;;  %v2013_v2 = vshll.u32 %v5555_v62, 16 }
 0x2f4   : > { %2538 = vrot.lane.b32.xlu0 %v2286_v14, %s3847_s19  ;;  %v2318_v14 = vrot.slane %v5490_v20, 1  ;;  %v5664_v20 = vsel %vm569_vm0, %v2320_v3, %v2321_v16  ;;  %v2032_v19 = vshll.u32 %v5371_v45, 16  ;;  %v2025_v40 = vshll.u32 %v5572_v42, 16 }
 0x2f5   : > { %v5675_v5 = vsel %vm569_vm0, %v2323_v26, %v2324_v25  ;;  %v2011_v1 = vor.u32 %v2010_v41, %v2006_v58  ;;  %v2015_v23 = vrot.slane %v2013_v2, 1  ;;  %v2030_v34 = vshrl.u32 %v5371_v45, 16 }
 0x2f6   : > { %v5656_v44 = vsel %vm569_vm0, %v2317_v49, %v2318_v14  ;;  %v2034_v18 = vrot.slane %v2032_v19, 1  ;;  %v2027_v22 = vrot.slane %v2025_v40, 1  ;;  %v2056_v13 = vshll.u32 %v5385_v31, 16 }
 0x2f7   : > { %2540 = vrot.lane.b32.xlu1 %v2289_v43, %s3847_s19  ;;  %v5684_v24 = vsel %vm279_vm1, %v2011_v1, %v2015_v23  ;;  %v2042_v7 = vshrl.u32 %v5379_v63, 16  ;;  %v2049_v36 = vshll.u32 %v5591_v17, 16  ;;  %v2054_v49 = vshrl.u32 %v5385_v31, 16 }
 0x2f8   : > { %2747 = vrot.lane.b32.xlu0 %v2289_v43, %s3853_s29  ;;  %v2035_v42 = vor.u32 %v2034_v18, %v2030_v34  ;;  %v2058_v4 = vrot.slane %v2056_v13, 1  ;;  %v2061_v14 = vshll.u32 %v5598_v57, 16 }
 0x2f9   : > { %v2051_v37 = vrot.slane %v2049_v36, 1 }
 0x2fa   : > { %v2063_v3 = vrot.slane %v2061_v14, 1 }
 0x2fb   : > { %2335 = vrot.lane.b32.xlu1 %v2292_v0, %s3848_s20 }
 0x2fc   : > { %2749 = vrot.lane.b32.xlu0 %v2292_v0, %s3853_s29 }
 0x2ff   : > { %2544 = vrot.lane.b32.xlu1 %v2295_v33, %s3847_s19 }
 0x300   : > { %2333 = vrot.lane.b32.xlu0 %v2289_v43, %s3848_s20  ;;  %v2020_v43 = vshll.u32 %v5210_v27, 16 }
 0x302   : > { %v2022_v6 = vrot.slane %v2020_v43, 1 }
 0x303   : > { %2339 = vrot.lane.b32.xlu1 %v2298_v35, %s3848_s20 }
 0x304   : > { %2542 = vrot.lane.b32.xlu0 %v2292_v0, %s3847_s19  ;;  %v2018_v0 = vshrl.u32 %v5210_v27, 16 }
 0x306   : > { %v2023_v62 = vor.u32 %v2022_v6, %v2018_v0  ;;  %v1934_v6 = vld [vmem:[#allocation3 + $0x178] sm:$0x3] }
 0x307   : > { %2548 = vrot.lane.b32.xlu1 %v2301_v54, %s3847_s19  ;;  %v5796_v23 = vpack.c.bf16 %v1934_v6, %v1934_v6  ;;  %v2176_v6 = vshll.u32 %v5442_v12, 16 }
 0x308   : > { %2751 = vrot.lane.b32.xlu0 %v2295_v33, %s3853_s29  ;;  %v5695_v27 = vsel %vm279_vm1, %v2023_v62, %v2027_v22 }
 0x309   : > { %v2327_v62 = vrot.slane %v5796_v23, 1 }
 0x30b   : > { %2343 = vrot.lane.b32.xlu1 %v2304_v47, %s3848_s20 }
 0x30c   : > { %2753 = vrot.lane.b32.xlu0 %v2298_v35, %s3853_s29 }
 0x30f   : > { %2552 = vrot.lane.b32.xlu1 %v5623_v51, %s3847_s19 }
 0x310   : > { %2337 = vrot.lane.b32.xlu0 %v2295_v33, %s3848_s20 }
 0x313   : > { %2347 = vrot.lane.b32.xlu1 %v5631_v29, %s3848_s20 }
 0x314   : > { %2546 = vrot.lane.b32.xlu0 %v2298_v35, %s3847_s19  ;;  %v2037_v35 = vshll.u32 %v5583_v8, 16  ;;  %v2044_v8 = vshll.u32 %v5379_v63, 16 }
 0x316   : > { %v2039_v46 = vrot.slane %v2037_v35, 1 }
 0x317   : > { %2556 = vrot.lane.b32.xlu1 %v5639_v9, %s3847_s19 }
 0x318   : > { %2755 = vrot.lane.b32.xlu0 %v2301_v54, %s3853_s29  ;;  %v5706_v45 = vsel %vm279_vm1, %v2035_v42, %v2039_v46  ;;  %v3832_v42 = vld [vmem:[%s6576_s2 + $0x8] sm:$0xff]  }
 0x31b   : > { %2351 = vrot.lane.b32.xlu1 %v5647_v21, %s3848_s20  ;;  %v5688_v33 = vpop.permute.xlu1 %2396 }
 0x31c   : > { %2757 = vrot.lane.b32.xlu0 %v2304_v47, %s3853_s29 }
 0x31f   : > { %2560 = vrot.lane.b32.xlu1 %v5656_v44, %s3847_s19 }
 0x320   : > { %2341 = vrot.lane.b32.xlu0 %v2301_v54, %s3848_s20 }
 0x323   : > { %2355 = vrot.lane.b32.xlu1 %v5664_v20, %s3848_s20 }
 0x324   : > { %2550 = vrot.lane.b32.xlu0 %v2304_v47, %s3847_s19  ;;  %v2046_v47 = vrot.slane %v2044_v8, 1 }
 0x327   : > { %2564 = vrot.lane.b32.xlu1 %v5675_v5, %s3847_s19 }
 0x328   : > { %2759 = vrot.lane.b32.xlu0 %v5623_v51, %s3853_s29 }
 0x32a   : > { %v5697_v28 = vpop.permute.xlu0 %2394 }
 0x32b   : > { %2187 = vrot.lane.b32.xlu1 %v5684_v24, %s3849_s21 }
 0x32c   : > { %2761 = vrot.lane.b32.xlu0 %v5631_v29, %s3853_s29 }
 0x32e   : > { %v5709_v61 = vpop.permute.xlu0 %2603 }
 0x32f   : > { %2472 = vrot.lane.b32.xlu1 %v5695_v27, %s3850_s24  ;;  %v5703_v54 = vpop.permute.xlu1 %2605 }
 0x330   : > { %2345 = vrot.lane.b32.xlu0 %v5623_v51, %s3848_s20  ;;  %v2047_v51 = vor.u32 %v2046_v47, %v2042_v7  ;;  %v3833_v47 = vld [vmem:[%s6576_s2 + $0x10] ss:$0 sps:$4 sm:$0x33]  }
 0x331   : > { %v2896_v7 = vsel %vm1192_vm3, %v3833_v47, 0 }
 0x332   : > { %v5718_v53 = vpop.permute.xlu0 %2398  ;;  %v5739_v17 = vsel %vm279_vm1, %v2047_v51, %v2051_v37 }
 0x333   : > { %2681 = vrot.lane.b32.xlu1 %v5706_v45, %s3852_s28 }
 0x334   : > { %2554 = vrot.lane.b32.xlu0 %v5631_v29, %s3847_s19  ;;  %v2059_v29 = vor.u32 %v2058_v4, %v2054_v49 }
 0x335   : > { %v5715_v11 = vpop.permute.xlu1 %2400 }
 0x336   : > { %v5728_v15 = vpop.permute.xlu0 %2607  ;;  %v5750_v57 = vsel %vm279_vm1, %v2059_v29, %v2063_v3 }
 0x337   : > { %2189 = vrot.lane.b32.xlu1 %v5695_v27, %s3849_s21 }
 0x338   : > { %2763 = vrot.lane.b32.xlu0 %v5639_v9, %s3853_s29 }
 0x339   : > { %v5726_v39 = vpop.permute.xlu1 %2609 }
 0x33a   : > { %v5741_v55 = vpop.permute.xlu0 %2402 }
 0x33b   : > { %2191 = vrot.lane.b32.xlu1 %v5706_v45, %s3849_s21 }
 0x33c   : > { %2765 = vrot.lane.b32.xlu0 %v5647_v21, %s3853_s29 }
 0x33d   : > { %v5736_v63 = vpop.permute.xlu1 %2404 }
 0x33e   : > { %v5752_v16 = vpop.permute.xlu0 %2611 }
 0x33f   : > { %2476 = vrot.lane.b32.xlu1 %v5739_v17, %s3850_s24 }
 0x340   : > { %2349 = vrot.lane.b32.xlu0 %v5639_v9, %s3848_s20 }
 0x341   : > { %v5747_v31 = vpop.permute.xlu1 %2613 }
 0x342   : > { %v5760_v26 = vpop.permute.xlu0 %2406 }
 0x343   : > { %2685 = vrot.lane.b32.xlu1 %v5750_v57, %s3852_s28 }
 0x344   : > { %2558 = vrot.lane.b32.xlu0 %v5647_v21, %s3847_s19 }
 0x345   : > { %v5758_v41 = vpop.permute.xlu1 %2408 }
 0x346   : > { %v5768_v43 = vpop.permute.xlu0 %2615 }
 0x347   : > { %2193 = vrot.lane.b32.xlu1 %v5739_v17, %s3849_s21 }
 0x348   : > { %2767 = vrot.lane.b32.xlu0 %v5656_v44, %s3853_s29 }
 0x349   : > { %v5766_v25 = vpop.permute.xlu1 %2617 }
 0x34a   : > { %v5776_v58 = vpop.permute.xlu0 %2410 }
 0x34b   : > { %2195 = vrot.lane.b32.xlu1 %v5750_v57, %s3849_s21 }
 0x34c   : > { %2769 = vrot.lane.b32.xlu0 %v5664_v20, %s3853_s29 }
 0x34d   : > { %v5774_v9 = vpop.permute.xlu1 %2412 }
 0x34e   : > { %v5784_v2 = vpop.permute.xlu0 %2619 }
 0x34f   : > { %2480 = vrot.lane.b32.xlu1 %v5497_v10, %s3850_s24  ;;  %6675 = vst [vmem:[#allocation37_spill] sm:$0xff] %v5784_v2 }
 0x350   : > { %2353 = vrot.lane.b32.xlu0 %v5656_v44, %s3848_s20  ;;  %v2326_v44 = vrot.slane %v5442_v12, 1 }
 0x351   : > { %v5782_v21 = vpop.permute.xlu1 %2621 }
 0x352   : > { %v5792_v19 = vpop.permute.xlu0 %2414  ;;  %v5820_v34 = vsel %vm569_vm0, %v2326_v44, %v2327_v62  ;;  %v2178_v62 = vrot.slane %v2176_v6, 1 }
 0x353   : > { %2689 = vrot.lane.b32.xlu1 %v5510_v50, %s3852_s28 }
 0x354   : > { %2562 = vrot.lane.b32.xlu0 %v5664_v20, %s3847_s19  ;;  %v3831_v20 = vld [vmem:[%s6576_s2] sm:$0xff]  }
 0x355   : > { %v5790_v1 = vpop.permute.xlu1 %2416  ;;  %3771 = vmatprep.subr.bf16.mxu1 %v3831_v20 }
 0x356   : > { %v5802_v40 = vpop.permute.xlu0 %2623  ;;  %3772 = vmatpush3.bf16.msra.mxu1 %v3831_v20 }
 0x357   : > { %2197 = vrot.lane.b32.xlu1 %v5497_v10, %s3849_s21  ;;  %6676 = vst [vmem:[#allocation38_spill] sm:$0xff] %v5802_v40  ;;  %3773 = vmatprep.subr.bf16.mxu1 %v3832_v42 }
 0x358   : > { %2771 = vrot.lane.b32.xlu0 %v5675_v5, %s3853_s29 }
 0x359   : > { %v5800_v0 = vpop.permute.xlu1 %2625 }
 0x35a   : > { %v5815_v22 = vpop.permute.xlu0 %2418  ;;  %3774 = vmatpush3.bf16.msra.mxu1 %v3832_v42  ;;  %v2181_v42 = vshll.u32 %v5796_v23, 16 }
 0x35b   : > { %2199 = vrot.lane.b32.xlu1 %v5510_v50, %s3849_s21  ;;  %6678 = vst [vmem:[#allocation39_spill] sm:$0xff] %v5815_v22  ;;  %3810 = vmatprep.subr.msk.bf16.mxu1 %vm1192_vm3, %v3833_v47  ;;  %v1940_v22 = vld [vmem:[#allocation3 + $0x1a8] sm:$0x3]  ;;  %vm6683_vm3 = vcmask 294144  }
 0x35c   : > { %2773 = vrot.lane.b32.xlu0 %v5820_v34, %s3853_s29 }
 0x35d   : > { %v5810_v18 = vpop.permute.xlu1 %2420 }
 0x35e   : > { %6677 = vst [vmem:[#allocation36_spill] sm:$0xff] %v5810_v18  ;;  %v5829_v46 = vpop.permute.xlu0 %2627  ;;  %3776 = vmatpush3.bf16.msra.mxu1 %v2896_v7 }
 0x35f   : > { %2484 = vrot.lane.b32.xlu1 %v5515_v52, %s3850_s24  ;;  %6680 = vst [vmem:[#allocation41_spill] sm:$0xff] %v5829_v46 }
 0x360   : > { %2185 = vrot.lane.b32.xlu0 %v5536_v30, %s3849_s21 }
 0x361   : > { %v5824_v35 = vpop.permute.xlu1 %2629 }
 0x362   : > { %6679 = vst [vmem:[#allocation40_spill] sm:$0xff] %v5824_v35  ;;  %v5840_v13 = vpop.permute.xlu0 %2329  ;;  %v1936_v35 = vld [vmem:[#allocation3 + $0x188] sm:$0xff] }
 0x363   : > { %2693 = vrot.lane.b32.xlu1 %v5528_v38, %s3852_s28 }
 0x364   : > { %2470 = vrot.lane.b32.xlu0 %v5684_v24, %s3850_s24 }
 0x365   : > { %v5835_v8 = vpop.permute.xlu1 %2331 }
 0x366   : > { %v5850_v36 = vpop.permute.xlu0 %2538 }
 0x367   : > { %2201 = vrot.lane.b32.xlu1 %v5515_v52, %s3849_s21 }
 0x368   : > { %2679 = vrot.lane.b32.xlu0 %v5695_v27, %s3852_s28 }
 0x369   : > { %v5848_v30 = vpop.permute.xlu1 %2540 }
 0x36a   : > { %v5858_v4 = vpop.permute.xlu0 %2747 }
 0x36b   : > { %2203 = vrot.lane.b32.xlu1 %v5528_v38, %s3849_s21 }
 0x36c   : > { %2474 = vrot.lane.b32.xlu0 %v5706_v45, %s3850_s24 }
 0x36d   : > { %v5856_v51 = vpop.permute.xlu1 %2335 }
 0x36e   : > { %v5866_v37 = vpop.permute.xlu0 %2749 }
 0x36f   : > { %2488 = vrot.lane.b32.xlu1 %v5541_v32, %s3850_s24 }
 0x370   : > { %2683 = vrot.lane.b32.xlu0 %v5739_v17, %s3852_s28 }
 0x371   : > { %v5864_v24 = vpop.permute.xlu1 %2544 }
 0x372   : > { %v5874_v49 = vpop.permute.xlu0 %2333 }
 0x373   : > { %2697 = vrot.lane.b32.xlu1 %v5549_v59, %s3852_s28 }
 0x374   : > { %2478 = vrot.lane.b32.xlu0 %v5750_v57, %s3850_s24 }
 0x375   : > { %v5872_v27 = vpop.permute.xlu1 %2339 }
 0x376   : > { %v5882_v14 = vpop.permute.xlu0 %2542 }
 0x377   : > { %2205 = vrot.lane.b32.xlu1 %v5541_v32, %s3849_s21 }
 0x378   : > { %2687 = vrot.lane.b32.xlu0 %v5497_v10, %s3852_s28 }
 0x379   : > { %v5880_v45 = vpop.permute.xlu1 %2548 }
 0x37a   : > { %v5890_v29 = vpop.permute.xlu0 %2751 }
 0x37b   : > { %2207 = vrot.lane.b32.xlu1 %v5549_v59, %s3849_s21 }
 0x37c   : > { %2482 = vrot.lane.b32.xlu0 %v5510_v50, %s3850_s24 }
 0x37d   : > { %v5888_v17 = vpop.permute.xlu1 %2343 }
 0x37e   : > { %v5898_v57 = vpop.permute.xlu0 %2753 }
 0x37f   : > { %2492 = vrot.lane.b32.xlu1 %v5558_v60, %s3850_s24 }
 0x380   : > { %2691 = vrot.lane.b32.xlu0 %v5515_v52, %s3852_s28  ;;  %v2174_v52 = vshrl.u32 %v5442_v12, 16 }
 0x381   : > { %v5896_v3 = vpop.permute.xlu1 %2552 }
 0x382   : > { %v5907_v44 = vpop.permute.xlu0 %2337  ;;  %v2179_v7 = vor.u32 %v2178_v62, %v2174_v52 }
 0x383   : > { %2701 = vrot.lane.b32.xlu1 %v5563_v56, %s3852_s28 }
 0x384   : > { %2486 = vrot.lane.b32.xlu0 %v5528_v38, %s3850_s24  ;;  %v2183_v38 = vrot.slane %v2181_v42, 1 }
 0x385   : > { %v5904_v10 = vpop.permute.xlu1 %2347 }
 0x386   : > { %v5915_v20 = vpop.permute.xlu0 %2546  ;;  %v2184_v40 = vsel %vm279_vm1, %v2179_v7, %v2183_v38  ;;  %v1937_v7 = vld [vmem:[#allocation3 + $0x190] sm:$0x3] }
 0x387   : > { %2209 = vrot.lane.b32.xlu1 %v5558_v60, %s3849_s21 }
 0x388   : > { %2695 = vrot.lane.b32.xlu0 %v5541_v32, %s3852_s28  ;;  %v1935_v32 = vld [vmem:[#allocation3 + $0x180] sm:$0xff] }
 0x389   : > { %v5913_v50 = vpop.permute.xlu1 %2556  ;;  %v5941_v52 = vpack.c.bf16 %v1936_v35, %v1935_v32 }
 0x38a   : > { %v5925_v46 = vpop.permute.xlu0 %2755 }
 0x38b   : > { %2211 = vrot.lane.b32.xlu1 %v5563_v56, %s3849_s21  ;;  %v2461_v38 = vshll.u32 %v5941_v52, 16 }
 0x38c   : > { %2490 = vrot.lane.b32.xlu0 %v5549_v59, %s3850_s24 }
 0x38d   : > { %v5923_v47 = vpop.permute.xlu1 %2351  ;;  %v2463_v32 = vrot.slane %v2461_v38, 1 }
 0x38e   : > { %v5934_v23 = vpop.permute.xlu0 %2757 }
 0x38f   : > { %2496 = vrot.lane.b32.xlu1 %v5568_v48, %s3850_s24 }
 0x390   : > { %2699 = vrot.lane.b32.xlu0 %v5558_v60, %s3852_s28  ;;  %v1974_v60 = vpack.c.bf16 %v1937_v7, %v1937_v7  ;;  %v2459_v7 = vshrl.u32 %v5941_v52, 16 }
 0x391   : > { %v5931_v6 = vpop.permute.xlu1 %2560 }
 0x392   : > { %v5943_v42 = vpop.permute.xlu0 %2341 }
 0x393   : > { %2705 = vrot.lane.b32.xlu1 %v2184_v40, %s3852_s28 }
 0x394   : > { %2494 = vrot.lane.b32.xlu0 %v5563_v56, %s3850_s24 }
 0x395   : > { %v5939_v62 = vpop.permute.xlu1 %2355 }
 0x396   : > { %6681 = vst [vmem:[#allocation42_spill] sm:$0xff] %v5939_v62  ;;  %v5952_v18 = vpop.permute.xlu0 %2550  ;;  %v1939_v62 = vld [vmem:[#allocation3 + $0x1a0] sm:$0xff] }
 0x397   : > { %2213 = vrot.lane.b32.xlu1 %v5568_v48, %s3849_s21 }
 0x398   : > { %2703 = vrot.lane.b32.xlu0 %v5568_v48, %s3852_s28  ;;  %v2466_v48 = vshll.u32 %v1974_v60, 16 }
 0x399   : > { %v5949_v59 = vpop.permute.xlu1 %2564 }
 0x39a   : > { %6682 = vst [vmem:[#allocation43_spill] sm:$0xff] %v5949_v59  ;;  %v5960_v56 = vpop.permute.xlu0 %2759  ;;  %v1938_v59 = vld [vmem:[#allocation3 + $0x198] sm:$0xff] }
 0x39b   : > { %2215 = vrot.lane.b32.xlu1 %v2184_v40, %s3849_s21 }
 0x39c   : > { %2357 = vrot.lane.b32.xlu0 %v5675_v5, %s3848_s20 }
 0x39d   : > { %v2188_v35 = vpop.permute.xlu1 %2187 }
 0x39e   : > { %2234 = vst.msk [vmem:[#allocation2 + $0x8] sm:$0xff] %vm520_vm4, %v2188_v35  ;;  %v1975_v35 = vpack.c.bf16 %v1939_v62, %v1938_v59  ;;  %v5972_v2 = vpop.permute.xlu0 %2761  ;;  %v2536_v59 = vrot.slane %v1974_v60, 1 }
 0x39f   : > { %2378 = vst.msk [vmem:[#allocation2 + $0x8] sm:$0xff] %vm666_vm5, %v5835_v8  ;;  %2359 = vrot.lane.b32.xlu1 %v5820_v34, %s3848_s20  ;;  %v2464_v8 = vor.u32 %v2463_v32, %v2459_v7 }
 0x3a0   : > { %2443 = vst.msk [vmem:[#allocation2 + $0x8] sm:$0xff] %vm732_vm6, %v5688_v33  ;;  %v2468_v33 = vrot.slane %v2466_v48, 1  ;;  %2422 = vrot.lane.b32.xlu0 %v5442_v12, %s3846_s18  ;;  %v2670_v32 = vshll.u32 %v1975_v35, 16 }
 0x3a1   : > { %v2473_v38 = vpop.permute.xlu1 %2472 }
 0x3a2   : > { %2519 = vst.msk [vmem:[#allocation2 + $0x8] sm:$0xff] %vm809_vm7, %v2473_v38  ;;  %v2469_v62 = vsel %vm279_vm1, %v2464_v8, %v2468_v33  ;;  %v5985_v7 = vpop.permute.xlu0 %2345  ;;  %v2672_v38 = vrot.slane %v2670_v32, 1 }
 0x3a3   : > { %2587 = vst.msk [vmem:[#allocation2 + $0x8] sm:$0xff] %vm878_vm8, %v5848_v30  ;;  %2424 = vrot.lane.b32.xlu1 %v5941_v52, %s3846_s18  ;;  %v2535_v30 = vrot.slane %v5941_v52, 1 }
 0x3a4   : > { %2652 = vst.msk [vmem:[#allocation2 + $0x8] sm:$0xff] %vm944_vm9, %v5703_v54  ;;  %v1976_v54 = vpack.c.bf16 %v1940_v22, %v1940_v22  ;;  %2498 = vrot.lane.b32.xlu0 %v2184_v40, %s3850_s24 }
 0x3a5   : > { %v2682_v5 = vpop.permute.xlu1 %2681  ;;  %v2537_v48 = vsel %vm569_vm0, %v2535_v30, %v2536_v59 }
 0x3a6   : > { %2728 = vst.msk [vmem:[#allocation2 + $0x8] sm:$0xff] %vm1021_vm10, %v2682_v5  ;;  %v5993_v60 = vpop.permute.xlu0 %2554  ;;  %v2675_v22 = vshll.u32 %v1976_v54, 16  ;;  %v2744_v5 = vrot.slane %v1975_v35, 1  ;;  %v2745_v30 = vrot.slane %v1976_v54, 1  ;;  %v6702_v54 = vld [vmem:[#allocation36_spill] sm:$0xff] }
 0x3a7   : > { %2796 = vst.msk [vmem:[#allocation2 + $0x8] sm:$0xff] %vm6683_vm3, %v5866_v37  ;;  %2500 = vrot.lane.b32.xlu1 %v2469_v62, %s3850_s24  ;;  %v2668_v37 = vshrl.u32 %v1975_v35, 16 }
 0x3a8   : > { %2566 = vrot.lane.b32.xlu0 %v5820_v34, %s3847_s19 }
 0x3a9   : > { %v2190_v12 = vpop.permute.xlu1 %2189  ;;  %v2673_v8 = vor.u32 %v2672_v38, %v2668_v37 }
 0x3aa   : > { %2235 = vst.msk [vmem:[#allocation2 + $0x10] sm:$0xff] %vm520_vm4, %v2190_v12 }
 0x3ab   : > { %2379 = vst.msk [vmem:[#allocation2 + $0x10] sm:$0xff] %vm666_vm5, %v5874_v49  ;;  %2568 = vrot.lane.b32.xlu1 %v2537_v48, %s3847_s19  ;;  %v6003_v49 = vpop.permute.xlu0 %2763 }
 0x3ac   : > { %2444 = vst.msk [vmem:[#allocation2 + $0x10] sm:$0xff] %vm732_vm6, %v5718_v53  ;;  %v2677_v53 = vrot.slane %v2675_v22, 1  ;;  %2631 = vrot.lane.b32.xlu0 %v5941_v52, %s3851_s27  ;;  %v2746_v52 = vsel %vm569_vm0, %v2744_v5, %v2745_v30  ;;  %v6706_v22 = vld [vmem:[#allocation40_spill] sm:$0xff] }
 0x3ad   : > { %v2192_v40 = vpop.permute.xlu1 %2191 }
 0x3ae   : > { %2236 = vst.msk [vmem:[#allocation2 + $0x18] sm:$0xff] %vm520_vm4, %v2192_v40  ;;  %v2678_v34 = vsel %vm279_vm1, %v2673_v8, %v2677_v53  ;;  %vm6684_vm1 = vmmov %vm6683_vm3  ;;  %v6707_v8 = vld [vmem:[#allocation38_spill] sm:$0xff] }
 0x3af   : > { %2380 = vst.msk [vmem:[#allocation2 + $0x18] sm:$0xff] %vm666_vm5, %v5856_v51  ;;  %2633 = vrot.lane.b32.xlu1 %v1975_v35, %s3851_s27  ;;  %v6014_v51 = vpop.permute.xlu0 %2765  ;;  %vm6685_vm0 = vmmov %vm6684_vm1 }
 0x3b0   : > { %2445 = vst.msk [vmem:[#allocation2 + $0x18] sm:$0xff] %vm732_vm6, %v5715_v11  ;;  %2707 = vrot.lane.b32.xlu0 %v2469_v62, %s3852_s28  ;;  %vm6686_vm11 = vmmov %vm6685_vm0 }
 0x3b1   : > { %v2477_v33 = vpop.permute.xlu1 %2476  ;;  %vm6687_vm12 = vmmov %vm6685_vm0 }
 0x3b2   : > { %2521 = vst.msk [vmem:[#allocation2 + $0x18] sm:$0xff] %vm809_vm7, %v2477_v33  ;;  %vm6688_vm13 = vmmov %vm6685_vm0 }
 0x3b3   : > { %2589 = vst.msk [vmem:[#allocation2 + $0x18] sm:$0xff] %vm878_vm8, %v5864_v24  ;;  %2709 = vrot.lane.b32.xlu1 %v2678_v34, %s3852_s28  ;;  %v6024_v35 = vpop.permute.xlu0 %2349  ;;  %vm6689_vm14 = vmmov %vm6685_vm0 }
 0x3b4   : > { %2654 = vst.msk [vmem:[#allocation2 + $0x18] sm:$0xff] %vm944_vm9, %v5726_v39  ;;  %2775 = vrot.lane.b32.xlu0 %v2537_v48, %s3853_s29  ;;  %vm6691_vm3 = vmmov %vm6690_vm15 }
 0x3b5   : > { %v2686_v11 = vpop.permute.xlu1 %2685 }
 0x3b6   : > { %2730 = vst.msk [vmem:[#allocation2 + $0x18] sm:$0xff] %vm1021_vm10, %v2686_v11 }
 0x3b7   : > { %2798 = vst.msk [vmem:[#allocation2 + $0x18] sm:$0xff] %vm6684_vm1, %v5898_v57  ;;  %2777 = vrot.lane.b32.xlu1 %v2746_v52, %s3853_s29  ;;  %v6031_v39 = vpop.permute.xlu0 %2558  ;;  %vm6692_vm1 = vmmov %vm6685_vm0 }
 0x3b9   : > { %v2194_v24 = vpop.permute.xlu1 %2193 }
 0x3ba   : > { %2237 = vst.msk [vmem:[#allocation2 + $0x20] sm:$0xff] %vm520_vm4, %v2194_v24 }
 0x3bb   : > { %2381 = vst.msk [vmem:[#allocation2 + $0x20] sm:$0xff] %vm666_vm5, %v5907_v44  ;;  %v6038_v57 = vpop.permute.xlu0 %2767 }
 0x3bc   : > { %2446 = vst.msk [vmem:[#allocation2 + $0x20] sm:$0xff] %vm732_vm6, %v5741_v55 }
 0x3bd   : > { %v2196_v62 = vpop.permute.xlu1 %2195 }
 0x3be   : > { %2238 = vst.msk [vmem:[#allocation2 + $0x28] sm:$0xff] %vm520_vm4, %v2196_v62 }
 0x3bf   : > { %2382 = vst.msk [vmem:[#allocation2 + $0x28] sm:$0xff] %vm666_vm5, %v5872_v27  ;;  %v6045_v44 = vpop.permute.xlu0 %2769 }
 0x3c0   : > { %2447 = vst.msk [vmem:[#allocation2 + $0x28] sm:$0xff] %vm732_vm6, %v5736_v63 }
 0x3c1   : > { %v2481_v59 = vpop.permute.xlu1 %2480 }
 0x3c2   : > { %2523 = vst.msk [vmem:[#allocation2 + $0x28] sm:$0xff] %vm809_vm7, %v2481_v59 }
 0x3c3   : > { %2591 = vst.msk [vmem:[#allocation2 + $0x28] sm:$0xff] %vm878_vm8, %v5880_v45  ;;  %v6052_v27 = vpop.permute.xlu0 %2353 }
 0x3c4   : > { %2656 = vst.msk [vmem:[#allocation2 + $0x28] sm:$0xff] %vm944_vm9, %v5747_v31 }
 0x3c5   : > { %v2690_v55 = vpop.permute.xlu1 %2689 }
 0x3c6   : > { %2732 = vst.msk [vmem:[#allocation2 + $0x28] sm:$0xff] %vm1021_vm10, %v2690_v55 }
 0x3c7   : > { %2800 = vst.msk [vmem:[#allocation2 + $0x28] sm:$0xff] %vm6685_vm0, %v5934_v23  ;;  %v6057_v45 = vpop.permute.xlu0 %2562  ;;  %vm6693_vm0 = vmmov %vm6691_vm3 }
 0x3c9   : > { %v2198_v63 = vpop.permute.xlu1 %2197 }
 0x3ca   : > { %2239 = vst.msk [vmem:[#allocation2 + $0x30] sm:$0xff] %vm520_vm4, %v2198_v63 }
 0x3cb   : > { %2383 = vst.msk [vmem:[#allocation2 + $0x30] sm:$0xff] %vm666_vm5, %v5943_v42  ;;  %v6064_v23 = vpop.permute.xlu0 %2771 }
 0x3cc   : > { %2448 = vst.msk [vmem:[#allocation2 + $0x30] sm:$0xff] %vm732_vm6, %v5760_v26 }
 0x3cd   : > { %v2200_v31 = vpop.permute.xlu1 %2199 }
 0x3ce   : > { %2240 = vst.msk [vmem:[#allocation2 + $0x38] sm:$0xff] %vm520_vm4, %v2200_v31 }
 0x3cf   : > { %2384 = vst.msk [vmem:[#allocation2 + $0x38] sm:$0xff] %vm666_vm5, %v5888_v17  ;;  %v6071_v42 = vpop.permute.xlu0 %2773 }
 0x3d0   : > { %2449 = vst.msk [vmem:[#allocation2 + $0x38] sm:$0xff] %vm732_vm6, %v5758_v41 }
 0x3d1   : > { %v2485_v32 = vpop.permute.xlu1 %2484 }
 0x3d2   : > { %2525 = vst.msk [vmem:[#allocation2 + $0x38] sm:$0xff] %vm809_vm7, %v2485_v32 }
 0x3d3   : > { %2593 = vst.msk [vmem:[#allocation2 + $0x38] sm:$0xff] %vm878_vm8, %v5896_v3  ;;  %v2186_v17 = vpop.permute.xlu0 %2185  ;;  %v2814_v3 = vld [vmem:[#allocation2 + $0x18] sm:$0xff] }
 0x3d4   : > { %2658 = vst.msk [vmem:[#allocation2 + $0x38] sm:$0xff] %vm944_vm9, %v5766_v25 }
 0x3d5   : > { %v2694_v26 = vpop.permute.xlu1 %2693  ;;  %2233 = vst.msk [vmem:[#allocation2] sm:$0xff] %vm520_vm4, %v2186_v17 }
 0x3d6   : > { %2734 = vst.msk [vmem:[#allocation2 + $0x38] sm:$0xff] %vm1021_vm10, %v2694_v26 }
 0x3d7   : > { %2802 = vst.msk [vmem:[#allocation2 + $0x38] sm:$0xff] %vm6686_vm11, %v5972_v2  ;;  %v2471_v25 = vpop.permute.xlu0 %2470  ;;  %vm6694_vm11 = vmmov %vm6693_vm0 }
 0x3d8   : > { %2377 = vst.msk [vmem:[#allocation2] sm:$0xff] %vm666_vm5, %v5840_v13 }
 0x3d9   : > { %v2202_v41 = vpop.permute.xlu1 %2201  ;;  %2442 = vst.msk [vmem:[#allocation2] sm:$0xff] %vm732_vm6, %v5697_v28 }
 0x3da   : > { %2241 = vst.msk [vmem:[#allocation2 + $0x40] sm:$0xff] %vm520_vm4, %v2202_v41 }
 0x3db   : > { %2385 = vst.msk [vmem:[#allocation2 + $0x40] sm:$0xff] %vm666_vm5, %v5985_v7  ;;  %v2680_v28 = vpop.permute.xlu0 %2679 }
 0x3dc   : > { %2450 = vst.msk [vmem:[#allocation2 + $0x40] sm:$0xff] %vm732_vm6, %v5776_v58 }
 0x3dd   : > { %2518 = vst.msk [vmem:[#allocation2] sm:$0xff] %vm809_vm7, %v2471_v25  ;;  %v2204_v2 = vpop.permute.xlu1 %2203 }
 0x3de   : > { %2586 = vst.msk [vmem:[#allocation2] sm:$0xff] %vm878_vm8, %v5850_v36  ;;  %v2818_v48 = vld [vmem:[#allocation2 + $0x38] sm:$0xff] }
 0x3df   : > { %2651 = vst.msk [vmem:[#allocation2] sm:$0xff] %vm944_vm9, %v5709_v61  ;;  %v2475_v61 = vpop.permute.xlu0 %2474 }
 0x3e0   : > { %2242 = vst.msk [vmem:[#allocation2 + $0x48] sm:$0xff] %vm520_vm4, %v2204_v2 }
 0x3e1   : > { %2386 = vst.msk [vmem:[#allocation2 + $0x48] sm:$0xff] %vm666_vm5, %v5904_v10  ;;  %v2489_v58 = vpop.permute.xlu1 %2488 }
 0x3e2   : > { %2451 = vst.msk [vmem:[#allocation2 + $0x48] sm:$0xff] %vm732_vm6, %v5774_v9 }
 0x3e3   : > { %2727 = vst.msk [vmem:[#allocation2] sm:$0xff] %vm1021_vm10, %v2680_v28  ;;  %v2684_v13 = vpop.permute.xlu0 %2683 }
 0x3e4   : > { %2795 = vst.msk [vmem:[#allocation2] sm:$0xff] %vm6687_vm12, %v5858_v4  ;;  %vm6695_vm12 = vmmov %vm6692_vm1 }
 0x3e5   : > { %2527 = vst.msk [vmem:[#allocation2 + $0x48] sm:$0xff] %vm809_vm7, %v2489_v58  ;;  %2520 = vst.msk [vmem:[#allocation2 + $0x10] sm:$0xff] %vm809_vm7, %v2475_v61  ;;  %v2698_v9 = vpop.permute.xlu1 %2697 }
 0x3e6   : > { %2595 = vst.msk [vmem:[#allocation2 + $0x48] sm:$0xff] %vm878_vm8, %v5913_v50  ;;  %2588 = vst.msk [vmem:[#allocation2 + $0x10] sm:$0xff] %vm878_vm8, %v5882_v14 }
 0x3e7   : > { %2660 = vst.msk [vmem:[#allocation2 + $0x48] sm:$0xff] %vm944_vm9, %v5782_v21  ;;  %2653 = vst.msk [vmem:[#allocation2 + $0x10] sm:$0xff] %vm944_vm9, %v5728_v15  ;;  %v2812_v21 = vld [vmem:[#allocation2 + $0x8] sm:$0xff]  ;;  %v2479_v15 = vpop.permute.xlu0 %2478 }
 0x3e8   : > { %2736 = vst.msk [vmem:[#allocation2 + $0x48] sm:$0xff] %vm1021_vm10, %v2698_v9  ;;  %2729 = vst.msk [vmem:[#allocation2 + $0x10] sm:$0xff] %vm1021_vm10, %v2684_v13 }
 0x3e9   : > { %2804 = vst.msk [vmem:[#allocation2 + $0x48] sm:$0xff] %vm6688_vm13, %v6014_v51  ;;  %v2206_v4 = vpop.permute.xlu1 %2205  ;;  %vm6696_vm13 = vmmov %vm6692_vm1  ;;  %v6712_v51 = vld [vmem:[#allocation41_spill] sm:$0xff] }
 0x3ea   : > { %2797 = vst.msk [vmem:[#allocation2 + $0x10] sm:$0xff] %vm6689_vm14, %v5890_v29  ;;  %vm6697_vm14 = vmmov %vm6693_vm0 }
 0x3eb   : > { %v2811_v36 = vld [vmem:[#allocation2] sm:$0xff]  ;;  %2243 = vst.msk [vmem:[#allocation2 + $0x50] sm:$0xff] %vm520_vm4, %v2206_v4  ;;  %v2688_v29 = vpop.permute.xlu0 %2687 }
 0x3ec   : > { %3777 = vmatprep.mubr.msk.bf16.mxu1 %vm6690_vm15, %v2811_v36  ;;  %2387 = vst.msk [vmem:[#allocation2 + $0x50] sm:$0xff] %vm666_vm5, %v6024_v35  ;;  %vm6698_vm15 = vmmov %vm6693_vm0 }
 0x3ed   : > { %3778 = vmatmul.mubr.msk.bf16.vlgmr.msra.gmra.mrb[0].mxu1 %vm6691_vm3, %v2812_v21  ;;  %2452 = vst.msk [vmem:[#allocation2 + $0x50] sm:$0xff] %vm732_vm6, %v5792_v19  ;;  %v2208_v14 = vpop.permute.xlu1 %2207  ;;  %vm6703_vm3 = vmmov %vm6692_vm1 }
 0x3ee   : > { %2522 = vst.msk [vmem:[#allocation2 + $0x20] sm:$0xff] %vm809_vm7, %v2479_v15 }
 0x3ef   : > { %2590 = vst.msk [vmem:[#allocation2 + $0x20] sm:$0xff] %vm878_vm8, %v5915_v20  ;;  %v6699_v20 = vld [vmem:[#allocation39_spill] sm:$0xff] }
 0x3f0   : > { %2655 = vst.msk [vmem:[#allocation2 + $0x20] sm:$0xff] %vm944_vm9, %v5752_v16  ;;  %v2483_v16 = vpop.permute.xlu0 %2482  ;;  %v2820_v33 = vld [vmem:[#allocation2 + $0x48] sm:$0xff] }
 0x3f1   : > { %2244 = vst.msk [vmem:[#allocation2 + $0x58] sm:$0xff] %vm520_vm4, %v2208_v14  ;;  %v2813_v19 = vld [vmem:[#allocation2 + $0x10] sm:$0xff]  ;;  %v2493_v10 = vpop.permute.xlu1 %2492 }
 0x3f2   : > { %2388 = vst.msk [vmem:[#allocation2 + $0x58] sm:$0xff] %vm666_vm5, %v5923_v47  ;;  %3781 = vmatprep.mubr.msk.bf16.mxu1 %vm6693_vm0, %v2813_v19 }
 0x3f3   : > { %2453 = vst.msk [vmem:[#allocation2 + $0x58] sm:$0xff] %vm732_vm6, %v5790_v1 }
 0x3f4   : > { %2731 = vst.msk [vmem:[#allocation2 + $0x20] sm:$0xff] %vm1021_vm10, %v2688_v29 }
 0x3f5   : > { %2799 = vst.msk [vmem:[#allocation2 + $0x20] sm:$0xff] %vm6692_vm1, %v5925_v46  ;;  %3782 = vmatmul.mubr.msk.bf16.gmra.mrb[4].mxu1 %vm6694_vm11, %v2814_v3  ;;  %v2702_v1 = vpop.permute.xlu1 %2701  ;;  %v2692_v46 = vpop.permute.xlu0 %2691  ;;  %vm6704_vm1 = vmmov %vm6693_vm0 }
 0x3f6   : > { %2529 = vst.msk [vmem:[#allocation2 + $0x58] sm:$0xff] %vm809_vm7, %v2493_v10  ;;  %2524 = vst.msk [vmem:[#allocation2 + $0x30] sm:$0xff] %vm809_vm7, %v2483_v16 }
 0x3f7   : > { %2597 = vst.msk [vmem:[#allocation2 + $0x58] sm:$0xff] %vm878_vm8, %v5931_v6  ;;  %2592 = vst.msk [vmem:[#allocation2 + $0x30] sm:$0xff] %vm878_vm8, %v5952_v18  ;;  %v6700_v6 = vld [vmem:[#allocation37_spill] sm:$0xff] }
 0x3f8   : > { %2662 = vst.msk [vmem:[#allocation2 + $0x58] sm:$0xff] %vm944_vm9, %v5800_v0  ;;  %2657 = vst.msk [vmem:[#allocation2 + $0x30] sm:$0xff] %vm944_vm9, %v5768_v43  ;;  %v2816_v0 = vld [vmem:[#allocation2 + $0x28] sm:$0xff] }
 0x3f9   : > { %2738 = vst.msk [vmem:[#allocation2 + $0x58] sm:$0xff] %vm1021_vm10, %v2702_v1  ;;  %2733 = vst.msk [vmem:[#allocation2 + $0x30] sm:$0xff] %vm1021_vm10, %v2692_v46  ;;  %v2210_v18 = vpop.permute.xlu1 %2209  ;;  %v2487_v43 = vpop.permute.xlu0 %2486 }
 0x3fa   : > { %2806 = vst.msk [vmem:[#allocation2 + $0x58] sm:$0xff] %vm6695_vm12, %v6045_v44  ;;  %vm6708_vm11 = vmmov %vm6703_vm3 }
 0x3fb   : > { %2801 = vst.msk [vmem:[#allocation2 + $0x30] sm:$0xff] %vm6696_vm13, %v5960_v56  ;;  %v6701_v56 = vld [vmem:[#allocation42_spill] sm:$0xff]  ;;  %vm6709_vm12 = vmmov %vm6703_vm3 }
 0x3fc   : > { %v2815_v50 = vld [vmem:[#allocation2 + $0x20] sm:$0xff]  ;;  %2245 = vst.msk [vmem:[#allocation2 + $0x60] sm:$0xff] %vm520_vm4, %v2210_v18  ;;  %vm6710_vm13 = vmmov %vm6693_vm0 }
 0x3fd   : > { %3785 = vmatprep.mubr.msk.bf16.mxu1 %vm6697_vm14, %v2815_v50  ;;  %2389 = vst.msk [vmem:[#allocation2 + $0x60] sm:$0xff] %vm666_vm5, %v6052_v27  ;;  %v2212_v47 = vpop.permute.xlu1 %2211  ;;  %v2696_v7 = vpop.permute.xlu0 %2695  ;;  %vm6711_vm14 = vmmov %vm6693_vm0 }
 0x3fe   : > { %3786 = vmatmul.mubr.msk.bf16.gmra.mrb[8].mxu1 %vm6698_vm15, %v2816_v0  ;;  %2454 = vst.msk [vmem:[#allocation2 + $0x60] sm:$0xff] %vm732_vm6, %v6699_v20  ;;  %vm6713_vm15 = vmmov %vm6703_vm3 }
 0x3ff   : > { %2526 = vst.msk [vmem:[#allocation2 + $0x40] sm:$0xff] %vm809_vm7, %v2487_v43 }
 0x400   : > { %2594 = vst.msk [vmem:[#allocation2 + $0x40] sm:$0xff] %vm878_vm8, %v5993_v60  ;;  %v6705_v60 = vld [vmem:[#allocation43_spill] sm:$0xff] }
 0x401   : > { %2659 = vst.msk [vmem:[#allocation2 + $0x40] sm:$0xff] %vm944_vm9, %v6700_v6  ;;  %v2497_v38 = vpop.permute.xlu1 %2496  ;;  %v2491_v37 = vpop.permute.xlu0 %2490  ;;  %v2822_v35 = vld [vmem:[#allocation2 + $0x58] sm:$0xff] }
 0x402   : > { %2246 = vst.msk [vmem:[#allocation2 + $0x68] sm:$0xff] %vm520_vm4, %v2212_v47  ;;  %v2817_v12 = vld [vmem:[#allocation2 + $0x30] sm:$0xff] }
 0x403   : > { %2390 = vst.msk [vmem:[#allocation2 + $0x68] sm:$0xff] %vm666_vm5, %v6701_v56  ;;  %3789 = vmatprep.mubr.msk.bf16.mxu1 %vm6704_vm1, %v2817_v12  ;;  %vm6715_vm1 = vmmov %vm6693_vm0 }
 0x404   : > { %2455 = vst.msk [vmem:[#allocation2 + $0x68] sm:$0xff] %vm732_vm6, %v6702_v54 }
 0x405   : > { %2735 = vst.msk [vmem:[#allocation2 + $0x40] sm:$0xff] %vm1021_vm10, %v2696_v7  ;;  %v2706_v40 = vpop.permute.xlu1 %2705 }
 0x406   : > { %2803 = vst.msk [vmem:[#allocation2 + $0x40] sm:$0xff] %vm6703_vm3, %v6003_v49  ;;  %3790 = vmatmul.mubr.msk.bf16.gmra.mrb[12].mxu1 %vm6693_vm0, %v2818_v48  ;;  %v2700_v49 = vpop.permute.xlu0 %2699  ;;  %vm6714_vm3 = vmmov %vm6693_vm0 }
 0x407   : > { %2531 = vst.msk [vmem:[#allocation2 + $0x68] sm:$0xff] %vm809_vm7, %v2497_v38  ;;  %2528 = vst.msk [vmem:[#allocation2 + $0x50] sm:$0xff] %vm809_vm7, %v2491_v37 }
 0x408   : > { %2599 = vst.msk [vmem:[#allocation2 + $0x68] sm:$0xff] %vm878_vm8, %v6705_v60  ;;  %2596 = vst.msk [vmem:[#allocation2 + $0x50] sm:$0xff] %vm878_vm8, %v6031_v39 }
 0x409   : > { %2664 = vst.msk [vmem:[#allocation2 + $0x68] sm:$0xff] %vm944_vm9, %v6706_v22  ;;  %2661 = vst.msk [vmem:[#allocation2 + $0x50] sm:$0xff] %vm944_vm9, %v6707_v8  ;;  %v2214_v34 = vpop.permute.xlu1 %2213 }
 0x40a   : > { %2740 = vst.msk [vmem:[#allocation2 + $0x68] sm:$0xff] %vm1021_vm10, %v2706_v40  ;;  %2737 = vst.msk [vmem:[#allocation2 + $0x50] sm:$0xff] %vm1021_vm10, %v2700_v49  ;;  %v2495_v5 = vpop.permute.xlu0 %2494 }
 0x40b   : > { %2808 = vst.msk [vmem:[#allocation2 + $0x68] sm:$0xff] %vm6708_vm11, %v6071_v42 }
 0x40c   : > { %2805 = vst.msk [vmem:[#allocation2 + $0x50] sm:$0xff] %vm6709_vm12, %v6038_v57 }
 0x40d   : > { %v2819_v53 = vld [vmem:[#allocation2 + $0x40] sm:$0xff]  ;;  %2247 = vst.msk [vmem:[#allocation2 + $0x70] sm:$0xff] %vm520_vm4, %v2214_v34  ;;  %v2216_v30 = vpop.permute.xlu1 %2215 }
 0x40e   : > { %3793 = vmatprep.mubr.msk.bf16.mxu1 %vm6710_vm13, %v2819_v53  ;;  %2530 = vst.msk [vmem:[#allocation2 + $0x60] sm:$0xff] %vm809_vm7, %v2495_v5  ;;  %v2704_v11 = vpop.permute.xlu0 %2703 }
 0x40f   : > { %3794 = vmatmul.mubr.msk.bf16.gmra.mrb[16].mxu1 %vm6711_vm14, %v2820_v33  ;;  %2598 = vst.msk [vmem:[#allocation2 + $0x60] sm:$0xff] %vm878_vm8, %v6057_v45 }
 0x410   : > { %2663 = vst.msk [vmem:[#allocation2 + $0x60] sm:$0xff] %vm944_vm9, %v6712_v51 }
 0x411   : > { %2248 = vst.msk [vmem:[#allocation2 + $0x78] sm:$0xff] %vm520_vm4, %v2216_v30  ;;  %v2360_v24 = vpop.permute.xlu1 %2359  ;;  %vm6716_vm4 = vmmov %vm6693_vm0 }
 0x412   : > { %2739 = vst.msk [vmem:[#allocation2 + $0x60] sm:$0xff] %vm1021_vm10, %v2704_v11  ;;  %v2358_v39 = vpop.permute.xlu0 %2357  ;;  %v2824_v44 = vld [vmem:[#allocation2 + $0x68] sm:$0xff] }
 0x413   : > { %v2821_v52 = vld [vmem:[#allocation2 + $0x50] sm:$0xff]  ;;  %2807 = vst.msk [vmem:[#allocation2 + $0x60] sm:$0xff] %vm6713_vm15, %v6064_v23 }
 0x414   : > { %3797 = vmatprep.mubr.msk.bf16.mxu1 %vm6714_vm3, %v2821_v52  ;;  %2392 = vst.msk [vmem:[#allocation2 + $0x78] sm:$0xff] %vm666_vm5, %v2360_v24  ;;  %2391 = vst.msk [vmem:[#allocation2 + $0x70] sm:$0xff] %vm666_vm5, %v2358_v39 }
 0x415   : > { %v2425_v62 = vpop.permute.xlu1 %2424  ;;  %vm6717_vm5 = vmmov %vm6708_vm11 }
 0x416   : > { %2457 = vst.msk [vmem:[#allocation2 + $0x78] sm:$0xff] %vm732_vm6, %v2425_v62  ;;  %v2423_v57 = vpop.permute.xlu0 %2422 }
 0x417   : > { %3798 = vmatmul.mubr.msk.bf16.gmra.mrb[20].mxu1 %vm6715_vm1, %v2822_v35  ;;  %2456 = vst.msk [vmem:[#allocation2 + $0x70] sm:$0xff] %vm732_vm6, %v2423_v57  ;;  %vm6718_vm6 = vmmov %vm6717_vm5 }
 0x419   : > { %v2501_v55 = vpop.permute.xlu1 %2500 }
 0x41a   : > { %v2823_v59 = vld [vmem:[#allocation2 + $0x60] sm:$0xff]  ;;  %2533 = vst.msk [vmem:[#allocation2 + $0x78] sm:$0xff] %vm809_vm7, %v2501_v55  ;;  %v2499_v27 = vpop.permute.xlu0 %2498 }
 0x41b   : > { %3801 = vmatprep.mubr.msk.bf16.mxu1 %vm6716_vm4, %v2823_v59  ;;  %2532 = vst.msk [vmem:[#allocation2 + $0x70] sm:$0xff] %vm809_vm7, %v2499_v27  ;;  %vm6719_vm7 = vmmov %vm6693_vm0 }
 0x41d   : > { %v2569_v63 = vpop.permute.xlu1 %2568 }
 0x41e   : > { %2601 = vst.msk [vmem:[#allocation2 + $0x78] sm:$0xff] %vm878_vm8, %v2569_v63  ;;  %v2567_v45 = vpop.permute.xlu0 %2566 }
 0x41f   : > { %3802 = vmatmul.mubr.msk.bf16.gmra.mrb[24].mxu1 %vm6693_vm0, %v2824_v44  ;;  %2600 = vst.msk [vmem:[#allocation2 + $0x70] sm:$0xff] %vm878_vm8, %v2567_v45  ;;  %vm6720_vm8 = vmmov %vm6693_vm0 }
 0x421   : > { %v2634_v31 = vpop.permute.xlu1 %2633 }
 0x422   : > { %2666 = vst.msk [vmem:[#allocation2 + $0x78] sm:$0xff] %vm944_vm9, %v2634_v31  ;;  %v2632_v23 = vpop.permute.xlu0 %2631 }
 0x423   : > { %2665 = vst.msk [vmem:[#allocation2 + $0x70] sm:$0xff] %vm944_vm9, %v2632_v23 }
 0x425   : > { %v2710_v32 = vpop.permute.xlu1 %2709 }
 0x426   : > { %2742 = vst.msk [vmem:[#allocation2 + $0x78] sm:$0xff] %vm1021_vm10, %v2710_v32  ;;  %v2708_v42 = vpop.permute.xlu0 %2707 }
 0x427   : > { %2741 = vst.msk [vmem:[#allocation2 + $0x70] sm:$0xff] %vm1021_vm10, %v2708_v42 }
 0x429   : > { %v2778_v26 = vpop.permute.xlu1 %2777 }
 0x42a   : > { %2810 = vst.msk [vmem:[#allocation2 + $0x78] sm:$0xff] %vm6717_vm5, %v2778_v26  ;;  %v2776_v17 = vpop.permute.xlu0 %2775 }
 0x42b   : > { %2809 = vst.msk [vmem:[#allocation2 + $0x70] sm:$0xff] %vm6718_vm6, %v2776_v17 }
 0x431   : > { %v2826_v41 = vld [vmem:[#allocation2 + $0x78] sm:$0xff] }
 0x432   : > { %v2825_v25 = vld [vmem:[#allocation2 + $0x70] sm:$0xff] }
 0x433   : > { %3805 = vmatprep.mubr.msk.bf16.mxu1 %vm6719_vm7, %v2825_v25 }
 0x434   : > { %3806 = vmatmul.mubr.msk.bf16.gmra.mrb[28].mxu1 %vm6720_vm8, %v2826_v41 }
 0x4c0   : > { %v3779_v2 = vpop.f32.mrb[0].mxu1 }
 0x4c1   : > { %3233 = vst.msk [vmem:[%s6229_s16 + $0x10] sm:$0xff] %vm262_vm2, %v3779_v2  ;;  %v2932_v28 = vpop.f32.mrb[1].mxu1  ;;  %v3131_v13 = vmul.f32 %v3779_v2, %v3779_v2  ;;  %v3062_v14 = vsel %vm262_vm2, %v3779_v2, 0.0 }
 0x4c2   : > { %v3129_v58 = vmul.f32 %v2932_v28, %v2932_v28  ;;  %3231 = vst.msk [vmem:[%s6229_s16] sm:$0xff] %vm262_vm2, %v2932_v28  ;;  %v3780_v61 = vpop.f32.mrb[2].mxu1  ;;  %v3059_v36 = vsel %vm262_vm2, %v2932_v28, 0.0 }
 0x4c3   : > { %3234 = vst.msk [vmem:[%s6229_s16 + $0x18] sm:$0xff] %vm262_vm2, %v3780_v61  ;;  %v2935_v9 = vpop.f32.mrb[3].mxu1  ;;  %v3132_v19 = vmul.f32 %v3780_v61, %v3780_v61  ;;  %v3164_v1 = vsel %vm262_vm2, %v3131_v13, 0.0  ;;  %v3064_v46 = vsel %vm262_vm2, %v3780_v61, 0.0 }
 0x4c4   : > { %v3060_v21 = vsel %vm262_vm2, %v2935_v9, 0.0  ;;  %v3130_v4 = vmul.f32 %v2935_v9, %v2935_v9  ;;  %3232 = vst.msk [vmem:[%s6229_s16 + $0x8] sm:$0xff] %vm262_vm2, %v2935_v9  ;;  %v3161_v29 = vsel %vm262_vm2, %v3129_v58, 0.0 }
 0x4c5   : > { %v3061_v15 = vadd.f32 %v3060_v21, %v3059_v36  ;;  %v3166_v20 = vsel %vm262_vm2, %v3132_v19, 0.0 }
 0x4c6   : > { %v3162_v3 = vsel %vm262_vm2, %v3130_v4, 0.0 }
 0x4c7   : > { %v3063_v10 = vadd.f32 %v3062_v14, %v3061_v15  ;;  %v3163_v16 = vadd.f32 %v3162_v3, %v3161_v29 }
 0x4c8   : > { %v3783_v50 = vpop.f32.mrb[4].mxu1 }
 0x4c9   : > { %v3165_v0 = vadd.f32 %v3164_v1, %v3163_v16  ;;  %3237 = vst.msk [vmem:[%s6229_s16 + $0x30] sm:$0xff] %vm262_vm2, %v3783_v50  ;;  %v2948_v18 = vpop.f32.mrb[5].mxu1  ;;  %v3065_v43 = vadd.f32 %v3064_v46, %v3063_v10  ;;  %v3135_v48 = vmul.f32 %v3783_v50, %v3783_v50  ;;  %v3070_v8 = vsel %vm262_vm2, %v3783_v50, 0.0 }
 0x4ca   : > { %v3066_v47 = vsel %vm262_vm2, %v2948_v18, 0.0  ;;  %v3133_v6 = vmul.f32 %v2948_v18, %v2948_v18  ;;  %3235 = vst.msk [vmem:[%s6229_s16 + $0x20] sm:$0xff] %vm262_vm2, %v2948_v18  ;;  %v3784_v56 = vpop.f32.mrb[6].mxu1 }
 0x4cb   : > { %v3067_v7 = vadd.f32 %v3066_v47, %v3065_v43  ;;  %v3167_v54 = vadd.f32 %v3166_v20, %v3165_v0  ;;  %3238 = vst.msk [vmem:[%s6229_s16 + $0x38] sm:$0xff] %vm262_vm2, %v3784_v56  ;;  %v2951_v12 = vpop.f32.mrb[7].mxu1  ;;  %v3136_v49 = vmul.f32 %v3784_v56, %v3784_v56  ;;  %v3172_v5 = vsel %vm262_vm2, %v3135_v48, 0.0 }
 0x4cc   : > { %v3168_v38 = vsel %vm262_vm2, %v3133_v6, 0.0  ;;  %v3068_v60 = vsel %vm262_vm2, %v2951_v12, 0.0  ;;  %v3134_v37 = vmul.f32 %v2951_v12, %v2951_v12  ;;  %3236 = vst.msk [vmem:[%s6229_s16 + $0x28] sm:$0xff] %vm262_vm2, %v2951_v12  ;;  %v3072_v30 = vsel %vm262_vm2, %v3784_v56, 0.0 }
 0x4cd   : > { %v3169_v22 = vadd.f32 %v3168_v38, %v3167_v54  ;;  %v3069_v40 = vadd.f32 %v3068_v60, %v3067_v7  ;;  %v3174_v24 = vsel %vm262_vm2, %v3136_v49, 0.0 }
 0x4ce   : > { %v3170_v53 = vsel %vm262_vm2, %v3134_v37, 0.0 }
 0x4cf   : > { %v3071_v33 = vadd.f32 %v3070_v8, %v3069_v40  ;;  %v3171_v34 = vadd.f32 %v3170_v53, %v3169_v22 }
 0x4d1   : > { %v3787_v51 = vpop.f32.mrb[8].mxu1  ;;  %v3173_v11 = vadd.f32 %v3172_v5, %v3171_v34  ;;  %v3073_v35 = vadd.f32 %v3072_v30, %v3071_v33 }
 0x4d2   : > { %3241 = vst.msk [vmem:[%s6229_s16 + $0x50] sm:$0xff] %vm262_vm2, %v3787_v51  ;;  %v2964_v52 = vpop.f32.mrb[9].mxu1  ;;  %v3139_v27 = vmul.f32 %v3787_v51, %v3787_v51  ;;  %v3078_v42 = vsel %vm262_vm2, %v3787_v51, 0.0 }
 0x4d3   : > { %v3074_v39 = vsel %vm262_vm2, %v2964_v52, 0.0  ;;  %v3137_v62 = vmul.f32 %v2964_v52, %v2964_v52  ;;  %3239 = vst.msk [vmem:[%s6229_s16 + $0x40] sm:$0xff] %vm262_vm2, %v2964_v52  ;;  %v3788_v57 = vpop.f32.mrb[10].mxu1  ;;  %v3175_v44 = vadd.f32 %v3174_v24, %v3173_v11 }
 0x4d4   : > { %v3075_v59 = vadd.f32 %v3074_v39, %v3073_v35  ;;  %3242 = vst.msk [vmem:[%s6229_s16 + $0x58] sm:$0xff] %vm262_vm2, %v3788_v57  ;;  %v2967_v55 = vpop.f32.mrb[11].mxu1  ;;  %v3140_v26 = vmul.f32 %v3788_v57, %v3788_v57  ;;  %v3180_v2 = vsel %vm262_vm2, %v3139_v27, 0.0  ;;  %v3080_v28 = vsel %vm262_vm2, %v3788_v57, 0.0 }
 0x4d5   : > { %v3176_v63 = vsel %vm262_vm2, %v3137_v62, 0.0  ;;  %v3076_v45 = vsel %vm262_vm2, %v2967_v55, 0.0  ;;  %v3138_v31 = vmul.f32 %v2967_v55, %v2967_v55  ;;  %3240 = vst.msk [vmem:[%s6229_s16 + $0x48] sm:$0xff] %vm262_vm2, %v2967_v55 }
 0x4d6   : > { %v3177_v23 = vadd.f32 %v3176_v63, %v3175_v44  ;;  %v3077_v32 = vadd.f32 %v3076_v45, %v3075_v59  ;;  %v3182_v36 = vsel %vm262_vm2, %v3140_v26, 0.0 }
 0x4d7   : > { %v3178_v17 = vsel %vm262_vm2, %v3138_v31, 0.0 }
 0x4d8   : > { %v3079_v41 = vadd.f32 %v3078_v42, %v3077_v32  ;;  %v3179_v25 = vadd.f32 %v3178_v17, %v3177_v23 }
 0x4d9   : > { %v3791_v58 = vpop.f32.mrb[12].mxu1 }
 0x4da   : > { %v3181_v61 = vadd.f32 %v3180_v2, %v3179_v25  ;;  %3245 = vst.msk [vmem:[%s6229_s16 + $0x70] sm:$0xff] %vm262_vm2, %v3791_v58  ;;  %v2980_v9 = vpop.f32.mrb[13].mxu1  ;;  %v3081_v13 = vadd.f32 %v3080_v28, %v3079_v41  ;;  %v3143_v3 = vmul.f32 %v3791_v58, %v3791_v58  ;;  %v3086_v0 = vsel %vm262_vm2, %v3791_v58, 0.0 }
 0x4db   : > { %v3082_v21 = vsel %vm262_vm2, %v2980_v9, 0.0  ;;  %v3141_v4 = vmul.f32 %v2980_v9, %v2980_v9  ;;  %3243 = vst.msk [vmem:[%s6229_s16 + $0x60] sm:$0xff] %vm262_vm2, %v2980_v9  ;;  %v3792_v15 = vpop.f32.mrb[14].mxu1 }
 0x4dc   : > { %v3083_v14 = vadd.f32 %v3082_v21, %v3081_v13  ;;  %v3183_v29 = vadd.f32 %v3182_v36, %v3181_v61  ;;  %3246 = vst.msk [vmem:[%s6229_s16 + $0x78] sm:$0xff] %vm262_vm2, %v3792_v15  ;;  %v2983_v19 = vpop.f32.mrb[15].mxu1  ;;  %v3144_v18 = vmul.f32 %v3792_v15, %v3792_v15  ;;  %v3188_v6 = vsel %vm262_vm2, %v3143_v3, 0.0 }
 0x4dd   : > { %v3184_v10 = vsel %vm262_vm2, %v3141_v4, 0.0  ;;  %v3084_v16 = vsel %vm262_vm2, %v2983_v19, 0.0  ;;  %v3142_v1 = vmul.f32 %v2983_v19, %v2983_v19  ;;  %3244 = vst.msk [vmem:[%s6229_s16 + $0x68] sm:$0xff] %vm262_vm2, %v2983_v19  ;;  %v3088_v56 = vsel %vm262_vm2, %v3792_v15, 0.0 }
 0x4de   : > { %v3185_v46 = vadd.f32 %v3184_v10, %v3183_v29  ;;  %v3085_v50 = vadd.f32 %v3084_v16, %v3083_v14  ;;  %v3190_v38 = vsel %vm262_vm2, %v3144_v18, 0.0 }
 0x4df   : > { %v3186_v43 = vsel %vm262_vm2, %v3142_v1, 0.0 }
 0x4e0   : > { %v3087_v20 = vadd.f32 %v3086_v0, %v3085_v50  ;;  %v3187_v47 = vadd.f32 %v3186_v43, %v3185_v46 }
 0x4e2   : > { %v3795_v7 = vpop.f32.mrb[16].mxu1  ;;  %v3189_v54 = vadd.f32 %v3188_v6, %v3187_v47  ;;  %v3089_v48 = vadd.f32 %v3088_v56, %v3087_v20 }
 0x4e3   : > { %3249 = vst.msk [vmem:[%s6229_s16 + $0x90] sm:$0xff] %vm262_vm2, %v3795_v7  ;;  %v2996_v12 = vpop.f32.mrb[17].mxu1  ;;  %v3147_v53 = vmul.f32 %v3795_v7, %v3795_v7  ;;  %v3094_v11 = vsel %vm262_vm2, %v3795_v7, 0.0 }
 0x4e4   : > { %v3090_v60 = vsel %vm262_vm2, %v2996_v12, 0.0  ;;  %v3145_v37 = vmul.f32 %v2996_v12, %v2996_v12  ;;  %3247 = vst.msk [vmem:[%s6229_s16 + $0x80] sm:$0xff] %vm262_vm2, %v2996_v12  ;;  %v3796_v22 = vpop.f32.mrb[18].mxu1  ;;  %v3191_v8 = vadd.f32 %v3190_v38, %v3189_v54 }
 0x4e5   : > { %v3091_v40 = vadd.f32 %v3090_v60, %v3089_v48  ;;  %3250 = vst.msk [vmem:[%s6229_s16 + $0x98] sm:$0xff] %vm262_vm2, %v3796_v22  ;;  %v2999_v49 = vpop.f32.mrb[19].mxu1  ;;  %v3148_v52 = vmul.f32 %v3796_v22, %v3796_v22  ;;  %v3196_v62 = vsel %vm262_vm2, %v3147_v53, 0.0  ;;  %v3096_v57 = vsel %vm262_vm2, %v3796_v22, 0.0 }
 0x4e6   : > { %v3192_v33 = vsel %vm262_vm2, %v3145_v37, 0.0  ;;  %v3092_v34 = vsel %vm262_vm2, %v2999_v49, 0.0  ;;  %v3146_v5 = vmul.f32 %v2999_v49, %v2999_v49  ;;  %3248 = vst.msk [vmem:[%s6229_s16 + $0x88] sm:$0xff] %vm262_vm2, %v2999_v49 }
 0x4e7   : > { %v3193_v30 = vadd.f32 %v3192_v33, %v3191_v8  ;;  %v3093_v51 = vadd.f32 %v3092_v34, %v3091_v40  ;;  %v3198_v63 = vsel %vm262_vm2, %v3148_v52, 0.0 }
 0x4e8   : > { %v3194_v35 = vsel %vm262_vm2, %v3146_v5, 0.0 }
 0x4e9   : > { %v3095_v24 = vadd.f32 %v3094_v11, %v3093_v51  ;;  %v3195_v39 = vadd.f32 %v3194_v35, %v3193_v30 }
 0x4ea   : > { %v3799_v59 = vpop.f32.mrb[20].mxu1 }
 0x4eb   : > { %v3197_v44 = vadd.f32 %v3196_v62, %v3195_v39  ;;  %3253 = vst.msk [vmem:[%s6229_s16 + $0xb0] sm:$0xff] %vm262_vm2, %v3799_v59  ;;  %v3012_v55 = vpop.f32.mrb[21].mxu1  ;;  %v3097_v27 = vadd.f32 %v3096_v57, %v3095_v24  ;;  %v3151_v17 = vmul.f32 %v3799_v59, %v3799_v59  ;;  %v3102_v61 = vsel %vm262_vm2, %v3799_v59, 0.0 }
 0x4ec   : > { %v3098_v45 = vsel %vm262_vm2, %v3012_v55, 0.0  ;;  %v3149_v31 = vmul.f32 %v3012_v55, %v3012_v55  ;;  %3251 = vst.msk [vmem:[%s6229_s16 + $0xa0] sm:$0xff] %vm262_vm2, %v3012_v55  ;;  %v3800_v23 = vpop.f32.mrb[22].mxu1 }
 0x4ed   : > { %v3099_v32 = vadd.f32 %v3098_v45, %v3097_v27  ;;  %v3199_v42 = vadd.f32 %v3198_v63, %v3197_v44  ;;  %3254 = vst.msk [vmem:[%s6229_s16 + $0xb8] sm:$0xff] %vm262_vm2, %v3800_v23  ;;  %v3015_v26 = vpop.f32.mrb[23].mxu1  ;;  %v3152_v9 = vmul.f32 %v3800_v23, %v3800_v23  ;;  %v3204_v4 = vsel %vm262_vm2, %v3151_v17, 0.0 }
 0x4ee   : > { %v3200_v41 = vsel %vm262_vm2, %v3149_v31, 0.0  ;;  %v3100_v25 = vsel %vm262_vm2, %v3015_v26, 0.0  ;;  %v3150_v2 = vmul.f32 %v3015_v26, %v3015_v26  ;;  %3252 = vst.msk [vmem:[%s6229_s16 + $0xa8] sm:$0xff] %vm262_vm2, %v3015_v26  ;;  %v3104_v15 = vsel %vm262_vm2, %v3800_v23, 0.0 }
 0x4ef   : > { %v3201_v28 = vadd.f32 %v3200_v41, %v3199_v42  ;;  %v3101_v58 = vadd.f32 %v3100_v25, %v3099_v32  ;;  %v3206_v10 = vsel %vm262_vm2, %v3152_v9, 0.0 }
 0x4f0   : > { %v3202_v13 = vsel %vm262_vm2, %v3150_v2, 0.0 }
 0x4f1   : > { %v3103_v36 = vadd.f32 %v3102_v61, %v3101_v58  ;;  %v3203_v21 = vadd.f32 %v3202_v13, %v3201_v28 }
 0x4f2   : > { %v3803_v14 = vpop.f32.mrb[24].mxu1 }
 0x4f3   : > { %v3205_v29 = vadd.f32 %v3204_v4, %v3203_v21  ;;  %3257 = vst.msk [vmem:[%s6229_s16 + $0xd0] sm:$0xff] %vm262_vm2, %v3803_v14  ;;  %v3028_v19 = vpop.f32.mrb[25].mxu1  ;;  %v3105_v3 = vadd.f32 %v3104_v15, %v3103_v36  ;;  %v3155_v43 = vmul.f32 %v3803_v14, %v3803_v14  ;;  %v3110_v54 = vsel %vm262_vm2, %v3803_v14, 0.0 }
 0x4f4   : > { %v3106_v16 = vsel %vm262_vm2, %v3028_v19, 0.0  ;;  %v3153_v1 = vmul.f32 %v3028_v19, %v3028_v19  ;;  %3255 = vst.msk [vmem:[%s6229_s16 + $0xc0] sm:$0xff] %vm262_vm2, %v3028_v19  ;;  %v3804_v46 = vpop.f32.mrb[26].mxu1 }
 0x4f5   : > { %v3107_v50 = vadd.f32 %v3106_v16, %v3105_v3  ;;  %v3207_v0 = vadd.f32 %v3206_v10, %v3205_v29  ;;  %3258 = vst.msk [vmem:[%s6229_s16 + $0xd8] sm:$0xff] %vm262_vm2, %v3804_v46  ;;  %v3031_v18 = vpop.f32.mrb[27].mxu1  ;;  %v3156_v12 = vmul.f32 %v3804_v46, %v3804_v46  ;;  %v3212_v37 = vsel %vm262_vm2, %v3155_v43, 0.0  ;;  %v6379_v43 = vld [vmem:[%s6229_s16 + $0x20] sm:$0xff] }
 0x4f6   : > { %v3208_v20 = vsel %vm262_vm2, %v3153_v1, 0.0  ;;  %v3108_v47 = vsel %vm262_vm2, %v3031_v18, 0.0  ;;  %v3154_v6 = vmul.f32 %v3031_v18, %v3031_v18  ;;  %3256 = vst.msk [vmem:[%s6229_s16 + $0xc8] sm:$0xff] %vm262_vm2, %v3031_v18  ;;  %v3112_v22 = vsel %vm262_vm2, %v3804_v46, 0.0  ;;  %v6364_v1 = vld [vmem:[%s6229_s16 + $0x10] sm:$0xff]  ;;  %v6367_v46 = vld [vmem:[%s6229_s16] sm:$0xff] }
 0x4f7   : > { %v3209_v56 = vadd.f32 %v3208_v20, %v3207_v0  ;;  %v3109_v7 = vadd.f32 %v3108_v47, %v3107_v50  ;;  %v3214_v49 = vsel %vm262_vm2, %v3156_v12, 0.0  ;;  %v6370_v50 = vld [vmem:[%s6229_s16 + $0x18] sm:$0xff]  ;;  %v6373_v0 = vld [vmem:[%s6229_s16 + $0x8] sm:$0xff]  ;;  %v6376_v18 = vld [vmem:[%s6229_s16 + $0x30] sm:$0xff] }
 0x4f8   : > { %v3210_v48 = vsel %vm262_vm2, %v3154_v6, 0.0  ;;  %v6382_v20 = vld [vmem:[%s6229_s16 + $0x38] sm:$0xff]  ;;  %v6385_v47 = vld [vmem:[%s6229_s16 + $0x28] sm:$0xff]  ;;  %v6388_v6 = vld [vmem:[%s6229_s16 + $0x50] sm:$0xff] }
 0x4f9   : > { %v3111_v38 = vadd.f32 %v3110_v54, %v3109_v7  ;;  %v3211_v60 = vadd.f32 %v3210_v48, %v3209_v56  ;;  %v6391_v56 = vld [vmem:[%s6229_s16 + $0x40] sm:$0xff]  ;;  %v6394_v7 = vld [vmem:[%s6229_s16 + $0x58] sm:$0xff]  ;;  %v6397_v54 = vld [vmem:[%s6229_s16 + $0x48] sm:$0xff] }
 0x4fa   : > { %v6400_v12 = vld [vmem:[%s6229_s16 + $0x70] sm:$0xff]  ;;  %v6403_v48 = vld [vmem:[%s6229_s16 + $0x60] sm:$0xff] }
 0x4fb   : > { %v3213_v40 = vadd.f32 %v3212_v37, %v3211_v60  ;;  %v3113_v8 = vadd.f32 %v3112_v22, %v3111_v38 }
 0x4fd   : > { %v3215_v53 = vadd.f32 %v3214_v49, %v3213_v40  ;;  %v6414_v40 = vld [vmem:[%s6229_s16 + $0x78] sm:$0xff]  ;;  %v6418_v49 = vld [vmem:[%s6229_s16 + $0x90] sm:$0xff] }
 0x507   : > { %v3807_v33 = vpop.f32.mrb[28].mxu1 }
 0x508   : > { %3261 = vst.msk [vmem:[%s6229_s16 + $0xf0] sm:$0xff] %vm262_vm2, %v3807_v33  ;;  %v3044_v34 = vpop.f32.mrb[29].mxu1  ;;  %v3159_v35 = vmul.f32 %v3807_v33, %v3807_v33  ;;  %v3118_v44 = vsel %vm262_vm2, %v3807_v33, 0.0 }
 0x509   : > { %v3114_v5 = vsel %vm262_vm2, %v3044_v34, 0.0  ;;  %v3157_v30 = vmul.f32 %v3044_v34, %v3044_v34  ;;  %3259 = vst.msk [vmem:[%s6229_s16 + $0xe0] sm:$0xff] %vm262_vm2, %v3044_v34  ;;  %v3808_v51 = vpop.f32.mrb[30].mxu1 }
 0x50a   : > { %v3115_v11 = vadd.f32 %v3114_v5, %v3113_v8  ;;  %3262 = vst.msk [vmem:[%s6229_s16 + $0xf8] sm:$0xff] %vm262_vm2, %v3808_v51  ;;  %v3047_v52 = vpop.f32.mrb[31].mxu1  ;;  %v3160_v55 = vmul.f32 %v3808_v51, %v3808_v51  ;;  %v3220_v31 = vsel %vm262_vm2, %v3159_v35, 0.0  ;;  %v3120_v23 = vsel %vm262_vm2, %v3808_v51, 0.0  ;;  %v3283_v8 = vld [vmem:[%s6229_s16 + $0x68] sm:$0xff]  ;;  %v3289_v51 = vld [vmem:[%s6229_s16 + $0x98] sm:$0xff] }
 0x50b   : > { %v3216_v24 = vsel %vm262_vm2, %v3157_v30, 0.0  ;;  %v3116_v39 = vsel %vm262_vm2, %v3047_v52, 0.0  ;;  %v3158_v62 = vmul.f32 %v3047_v52, %v3047_v52  ;;  %3260 = vst.msk [vmem:[%s6229_s16 + $0xe8] sm:$0xff] %vm262_vm2, %v3047_v52  ;;  %v3286_v30 = vld [vmem:[%s6229_s16 + $0x80] sm:$0xff] }
 0x50c   : > { %v3217_v57 = vadd.f32 %v3216_v24, %v3215_v53  ;;  %v3117_v59 = vadd.f32 %v3116_v39, %v3115_v11  ;;  %v3222_v26 = vsel %vm262_vm2, %v3160_v55, 0.0  ;;  %v3287_v11 = vld [vmem:[%s6229_s16 + $0x88] sm:$0xff] }
 0x50d   : > { %v3218_v27 = vsel %vm262_vm2, %v3158_v62, 0.0  ;;  %v3292_v62 = vld [vmem:[%s6229_s16 + $0xb0] sm:$0xff] }
 0x50e   : > { %v3119_v63 = vadd.f32 %v3118_v44, %v3117_v59  ;;  %v3219_v45 = vadd.f32 %v3218_v27, %v3217_v57  ;;  %v3290_v57 = vld [vmem:[%s6229_s16 + $0xa0] sm:$0xff]  ;;  %v3293_v59 = vld [vmem:[%s6229_s16 + $0xb8] sm:$0xff] }
 0x510   : > { %v3121_v32 = vadd.f32 %v3120_v23, %v3119_v63  ;;  %v3221_v42 = vadd.f32 %v3220_v31, %v3219_v45  ;;  %v3291_v45 = vld [vmem:[%s6229_s16 + $0xa8] sm:$0xff]  ;;  %v3296_v31 = vld [vmem:[%s6229_s16 + $0xd0] sm:$0xff]  ;;  %v3294_v23 = vld [vmem:[%s6229_s16 + $0xc0] sm:$0xff] }
 0x512   : > { %v3122_v17 = vrot.slane %v3121_v32, 4  ;;  %v3223_v41 = vadd.f32 %v3222_v26, %v3221_v42 }
 0x514   : > { %v3123_v25 = vadd.f32 %v3122_v17, %v3121_v32  ;;  %v3224_v2 = vrot.slane %v3223_v41, 4 }
 0x516   : > { %v3124_v28 = vrot.slane %v3123_v25, 2  ;;  %v3225_v58 = vadd.f32 %v3224_v2, %v3223_v41  ;;  %v3297_v41 = vld [vmem:[%s6229_s16 + $0xd8] sm:$0xff]  ;;  %v3300_v2 = vld [vmem:[%s6229_s16 + $0xf0] sm:$0xff] }
 0x518   : > { %v3125_v61 = vadd.f32 %v3124_v28, %v3123_v25  ;;  %v3226_v9 = vrot.slane %v3225_v58, 2  ;;  %v3295_v25 = vld [vmem:[%s6229_s16 + $0xc8] sm:$0xff] }
 0x51a   : > { %v3126_v13 = vrot.slane %v3125_v61, 1  ;;  %v3227_v36 = vadd.f32 %v3226_v9, %v3225_v58 }
 0x51c   : > { %v3127_v21 = vadd.f32 %v3126_v13, %v3125_v61  ;;  %v3228_v4 = vrot.slane %v3227_v36, 1  ;;  %v3298_v13 = vld [vmem:[%s6229_s16 + $0xe0] sm:$0xff] }
 0x51e   : > { %v3229_v15 = vadd.f32 %v3228_v4, %v3227_v36  ;;  %v6359_v14 = vmul.f32 0.00390625, %v3127_v21  ;;  %v3301_v36 = vld [vmem:[%s6229_s16 + $0xf8] sm:$0xff]  ;;  %v3299_v21 = vld [vmem:[%s6229_s16 + $0xe8] sm:$0xff] }
 0x520   : > { %v3264_v29 = vmul.f32 0.00390625, %v3229_v15  ;;  %v3265_v19 = vmul.f32 %v6359_v14, %v6359_v14  ;;  %v3463_v38 = vsub.f32 %v6367_v46, %v6359_v14  ;;  %v3464_v60 = vsub.f32 %v6373_v0, %v6359_v14 }
 0x521   : > { %v3465_v37 = vsub.f32 %v6364_v1, %v6359_v14  ;;  %v3466_v22 = vsub.f32 %v6370_v50, %v6359_v14  ;;  %v3467_v53 = vsub.f32 %v6379_v43, %v6359_v14  ;;  %v3468_v33 = vsub.f32 %v6385_v47, %v6359_v14 }
 0x522   : > { %v3266_v3 = vsub.f32 %v3264_v29, %v3265_v19  ;;  %v3469_v34 = vsub.f32 %v6376_v18, %v6359_v14  ;;  %v3470_v5 = vsub.f32 %v6382_v20, %v6359_v14  ;;  %v3471_v52 = vsub.f32 %v6391_v56, %v6359_v14 }
 0x523   : > { %v3472_v35 = vsub.f32 %v6397_v54, %v6359_v14  ;;  %v3473_v24 = vsub.f32 %v6388_v6, %v6359_v14  ;;  %v3474_v39 = vsub.f32 %v6394_v7, %v6359_v14  ;;  %v3475_v44 = vsub.f32 %v6403_v48, %v6359_v14 }
 0x524   : > { %v3267_v10 = vmax.f32 %v3266_v3, 0.0  ;;  %v3476_v55 = vsub.f32 %v3283_v8, %v6359_v14  ;;  %v3477_v27 = vsub.f32 %v6400_v12, %v6359_v14  ;;  %v3478_v63 = vsub.f32 %v6414_v40, %v6359_v14 }
 0x525   : > { %v3479_v32 = vsub.f32 %v3286_v30, %v6359_v14  ;;  %v3480_v42 = vsub.f32 %v3287_v11, %v6359_v14  ;;  %v3481_v26 = vsub.f32 %v6418_v49, %v6359_v14  ;;  %v3482_v17 = vsub.f32 %v3289_v51, %v6359_v14 }
 0x526   : > { %v3268_v16 = vadd.f32 1e-05, %v3267_v10  ;;  %v3483_v28 = vsub.f32 %v3290_v57, %v6359_v14  ;;  %v3484_v58 = vsub.f32 %v3291_v45, %v6359_v14  ;;  %v3485_v61 = vsub.f32 %v3292_v62, %v6359_v14  ;;  %v6721_v57 = vld [vmem:[#allocation4_spill] sm:$0xff]  ;;  %v6724_v45 = vld [vmem:[#allocation7_spill] sm:$0xff] }
 0x527   : > { %v3486_v9 = vsub.f32 %v3293_v59, %v6359_v14  ;;  %v3487_v4 = vsub.f32 %v3294_v23, %v6359_v14  ;;  %v3488_v15 = vsub.f32 %v3295_v25, %v6359_v14  ;;  %v3489_v29 = vsub.f32 %v3296_v31, %v6359_v14  ;;  %v6725_v23 = vld [vmem:[#allocation8_spill] sm:$0xff]  ;;  %v6728_v25 = vld [vmem:[#allocation11_spill] sm:$0xff] }
 0x528   : > { %3836 = vrsqrt.f32 %v3268_v16  ;;  %v3490_v19 = vsub.f32 %v3297_v41, %v6359_v14  ;;  %v3491_v10 = vsub.f32 %v3298_v13, %v6359_v14  ;;  %v3492_v16 = vsub.f32 %v3299_v21, %v6359_v14  ;;  %v6731_v13 = vld [vmem:[#allocation14_spill] sm:$0xff]  ;;  %v6732_v21 = vld [vmem:[#allocation15_spill] sm:$0xff] }
 0x529   : > { %v3493_v1 = vsub.f32 %v3300_v2, %v6359_v14  ;;  %v3494_v46 = vsub.f32 %v3301_v36, %v6359_v14 }
 0x532   : > { %v3837_v3 = vpop.eup %3836 }
 0x533   : > { %v3495_v50 = vmul.f32 %v3837_v3, %v3463_v38  ;;  %v3496_v0 = vmul.f32 %v3837_v3, %v3464_v60  ;;  %v3497_v18 = vmul.f32 %v3837_v3, %v3465_v37  ;;  %v3498_v43 = vmul.f32 %v3837_v3, %v3466_v22 }
 0x534   : > { %v3499_v20 = vmul.f32 %v3837_v3, %v3467_v53  ;;  %v3500_v47 = vmul.f32 %v3837_v3, %v3468_v33  ;;  %v3501_v6 = vmul.f32 %v3837_v3, %v3469_v34  ;;  %v3502_v56 = vmul.f32 %v3837_v3, %v3470_v5 }
 0x535   : > { %v3503_v7 = vmul.f32 %v3837_v3, %v3471_v52  ;;  %v3504_v54 = vmul.f32 %v3837_v3, %v3472_v35  ;;  %v3505_v12 = vmul.f32 %v3837_v3, %v3473_v24  ;;  %v3506_v48 = vmul.f32 %v3837_v3, %v3474_v39 }
 0x536   : > { %v3507_v40 = vmul.f32 %v3837_v3, %v3475_v44  ;;  %v3508_v8 = vmul.f32 %v3837_v3, %v3476_v55  ;;  %v3509_v49 = vmul.f32 %v3837_v3, %v3477_v27  ;;  %v3510_v30 = vmul.f32 %v3837_v3, %v3478_v63  ;;  %v6722_v44 = vld [vmem:[#allocation5_spill] sm:$0xff]  ;;  %v6723_v27 = vld [vmem:[#allocation6_spill] sm:$0xff] }
 0x537   : > { %v3511_v51 = vmul.f32 %v3837_v3, %v3479_v32  ;;  %v3512_v11 = vmul.f32 %v3837_v3, %v3480_v42  ;;  %v3513_v62 = vmul.f32 %v3837_v3, %v3481_v26  ;;  %v3514_v14 = vmul.f32 %v3837_v3, %v3482_v17  ;;  %v6726_v42 = vld [vmem:[#allocation9_spill] sm:$0xff]  ;;  %v6727_v17 = vld [vmem:[#allocation10_spill] sm:$0xff] }
 0x538   : > { %v3515_v38 = vmul.f32 %v3837_v3, %v3483_v28  ;;  %v3516_v60 = vmul.f32 %v3837_v3, %v3484_v58  ;;  %v3517_v37 = vmul.f32 %v3837_v3, %v3485_v61  ;;  %v3518_v22 = vmul.f32 %v3837_v3, %v3486_v9  ;;  %v6729_v28 = vld [vmem:[#allocation12_spill] sm:$0xff]  ;;  %v6730_v61 = vld [vmem:[#allocation13_spill] sm:$0xff] }
 0x539   : > { %v3519_v53 = vmul.f32 %v3837_v3, %v3487_v4  ;;  %v3520_v33 = vmul.f32 %v3837_v3, %v3488_v15  ;;  %v3521_v34 = vmul.f32 %v3837_v3, %v3489_v29  ;;  %v3522_v5 = vmul.f32 %v3837_v3, %v3490_v19  ;;  %v6733_v15 = vld [vmem:[#allocation16_spill] sm:$0xff]  ;;  %v6734_v19 = vld [vmem:[#allocation17_spill] sm:$0xff] }
 0x53a   : > { %v3523_v52 = vmul.f32 %v3837_v3, %v3491_v10  ;;  %v3524_v35 = vmul.f32 %v3837_v3, %v3492_v16  ;;  %v3525_v24 = vmul.f32 %v3837_v3, %v3493_v1  ;;  %v3526_v39 = vmul.f32 %v3837_v3, %v3494_v46  ;;  %v6735_v10 = vld [vmem:[#allocation18_spill] sm:$0xff]  ;;  %v6736_v1 = vld [vmem:[#allocation19_spill] sm:$0xff] }
 0x53b   : > { %v3527_v59 = vadd.f32 %v3495_v50, %v6721_v57  ;;  %v3528_v55 = vadd.f32 %v3496_v0, %v6722_v44  ;;  %v3529_v63 = vadd.f32 %v3497_v18, %v6723_v27  ;;  %v3530_v31 = vadd.f32 %v3498_v43, %v6724_v45  ;;  %v6737_v50 = vld [vmem:[#allocation20_spill] sm:$0xff]  ;;  %v6738_v18 = vld [vmem:[#allocation21_spill] sm:$0xff] }
 0x53c   : > { %v3531_v32 = vadd.f32 %v3499_v20, %v6725_v23  ;;  %v3532_v26 = vadd.f32 %v3500_v47, %v6726_v42  ;;  %v3533_v41 = vadd.f32 %v3501_v6, %v6727_v17  ;;  %v3534_v2 = vadd.f32 %v3502_v56, %v6728_v25  ;;  %v6739_v20 = vld [vmem:[#allocation22_spill] sm:$0xff]  ;;  %v6740_v6 = vld [vmem:[#allocation23_spill] sm:$0xff]  ;;  %v6750_v57 = vld [vmem:[#allocation33_spill] sm:$0xff] }
 0x53d   : > { %v3535_v58 = vadd.f32 %v3503_v7, %v6729_v28  ;;  %v3536_v9 = vadd.f32 %v3504_v54, %v6730_v61  ;;  %v3537_v36 = vadd.f32 %v3505_v12, %v6731_v13  ;;  %v3538_v4 = vadd.f32 %v3506_v48, %v6732_v21  ;;  %3559 = vst.msk [vmem:[%s6229_s16] sm:$0xff] %vm262_vm2, %v3527_v59  ;;  %v6741_v7 = vld [vmem:[#allocation24_spill] sm:$0xff]  ;;  %v6742_v12 = vld [vmem:[#allocation25_spill] sm:$0xff]  ;;  %v6751_v59 = vld [vmem:[#allocation34_spill] sm:$0xff] }
 0x53e   : > { %3560 = vst.msk [vmem:[%s6229_s16 + $0x8] sm:$0xff] %vm262_vm2, %v3528_v55  ;;  %3561 = vst.msk [vmem:[%s6229_s16 + $0x10] sm:$0xff] %vm262_vm2, %v3529_v63  ;;  %v3539_v29 = vadd.f32 %v3507_v40, %v6733_v15  ;;  %v3540_v3 = vadd.f32 %v3508_v8, %v6734_v19  ;;  %v3541_v16 = vadd.f32 %v3509_v49, %v6735_v10  ;;  %v6743_v40 = vld [vmem:[#allocation26_spill] sm:$0xff]  ;;  %v6744_v49 = vld [vmem:[#allocation27_spill] sm:$0xff] }
 0x53f   : > { %3562 = vst.msk [vmem:[%s6229_s16 + $0x18] sm:$0xff] %vm262_vm2, %v3530_v31  ;;  %v3542_v46 = vadd.f32 %v3510_v30, %v6736_v1  ;;  %3563 = vst.msk [vmem:[%s6229_s16 + $0x20] sm:$0xff] %vm262_vm2, %v3531_v32  ;;  %v3543_v0 = vadd.f32 %v3511_v51, %v6737_v50  ;;  %v3544_v43 = vadd.f32 %v3512_v11, %v6738_v18  ;;  %v6745_v51 = vld [vmem:[#allocation28_spill] sm:$0xff] }
 0x540   : > { %3564 = vst.msk [vmem:[%s6229_s16 + $0x28] sm:$0xff] %vm262_vm2, %v3532_v26  ;;  %3565 = vst.msk [vmem:[%s6229_s16 + $0x30] sm:$0xff] %vm262_vm2, %v3533_v41  ;;  %v3545_v47 = vadd.f32 %v3513_v62, %v6739_v20  ;;  %v3546_v56 = vadd.f32 %v3514_v14, %v6740_v6  ;;  %v3547_v54 = vadd.f32 %v3515_v38, %v6741_v7  ;;  %v6746_v62 = vld [vmem:[#allocation29_spill] sm:$0xff]  ;;  %v6747_v38 = vld [vmem:[#allocation30_spill] sm:$0xff] }
 0x541   : > { %3566 = vst.msk [vmem:[%s6229_s16 + $0x38] sm:$0xff] %vm262_vm2, %v3534_v2  ;;  %3567 = vst.msk [vmem:[%s6229_s16 + $0x40] sm:$0xff] %vm262_vm2, %v3535_v58  ;;  %v3548_v48 = vadd.f32 %v3516_v60, %v6742_v12  ;;  %v3549_v8 = vadd.f32 %v3517_v37, %v6743_v40  ;;  %v3550_v30 = vadd.f32 %v3518_v22, %v6744_v49  ;;  %v6748_v37 = vld [vmem:[#allocation31_spill] sm:$0xff] }
 0x542   : > { %3568 = vst.msk [vmem:[%s6229_s16 + $0x48] sm:$0xff] %vm262_vm2, %v3536_v9  ;;  %3569 = vst.msk [vmem:[%s6229_s16 + $0x50] sm:$0xff] %vm262_vm2, %v3537_v36  ;;  %v3551_v11 = vadd.f32 %v3519_v53, %v6745_v51  ;;  %v3552_v14 = vadd.f32 %v3520_v33, %v6746_v62  ;;  %v3553_v60 = vadd.f32 %v3521_v34, %v6747_v38  ;;  %v6749_v53 = vld [vmem:[#allocation32_spill] sm:$0xff] }
 0x543   : > { %3570 = vst.msk [vmem:[%s6229_s16 + $0x58] sm:$0xff] %vm262_vm2, %v3538_v4  ;;  %3571 = vst.msk [vmem:[%s6229_s16 + $0x60] sm:$0xff] %vm262_vm2, %v3539_v29  ;;  %v3554_v22 = vadd.f32 %v3522_v5, %v6748_v37  ;;  %v3555_v33 = vadd.f32 %v3523_v52, %v6749_v53  ;;  %v3556_v34 = vadd.f32 %v3524_v35, %v6750_v57  ;;  %v6752_v5 = vld [vmem:[#allocation35_spill] sm:$0xff] }
 0x544   : > { %3572 = vst.msk [vmem:[%s6229_s16 + $0x68] sm:$0xff] %vm262_vm2, %v3540_v3  ;;  %3573 = vst.msk [vmem:[%s6229_s16 + $0x70] sm:$0xff] %vm262_vm2, %v3541_v16  ;;  %v3557_v44 = vadd.f32 %v3525_v24, %v6751_v59  ;;  %v3558_v55 = vadd.f32 %v3526_v39, %v6752_v5 }
 0x545   : > { %3574 = vst.msk [vmem:[%s6229_s16 + $0x78] sm:$0xff] %vm262_vm2, %v3542_v46  ;;  %3575 = vst.msk [vmem:[%s6229_s16 + $0x80] sm:$0xff] %vm262_vm2, %v3543_v0 }
 0x546   : > { %3576 = vst.msk [vmem:[%s6229_s16 + $0x88] sm:$0xff] %vm262_vm2, %v3544_v43  ;;  %3577 = vst.msk [vmem:[%s6229_s16 + $0x90] sm:$0xff] %vm262_vm2, %v3545_v47 }
 0x547   : > { %3578 = vst.msk [vmem:[%s6229_s16 + $0x98] sm:$0xff] %vm262_vm2, %v3546_v56  ;;  %3579 = vst.msk [vmem:[%s6229_s16 + $0xa0] sm:$0xff] %vm262_vm2, %v3547_v54 }
 0x548   : > { %3580 = vst.msk [vmem:[%s6229_s16 + $0xa8] sm:$0xff] %vm262_vm2, %v3548_v48  ;;  %3581 = vst.msk [vmem:[%s6229_s16 + $0xb0] sm:$0xff] %vm262_vm2, %v3549_v8 }
 0x549   : > { %3582 = vst.msk [vmem:[%s6229_s16 + $0xb8] sm:$0xff] %vm262_vm2, %v3550_v30  ;;  %3583 = vst.msk [vmem:[%s6229_s16 + $0xc0] sm:$0xff] %vm262_vm2, %v3551_v11 }
 0x54a   : > { %3584 = vst.msk [vmem:[%s6229_s16 + $0xc8] sm:$0xff] %vm262_vm2, %v3552_v14  ;;  %3585 = vst.msk [vmem:[%s6229_s16 + $0xd0] sm:$0xff] %vm262_vm2, %v3553_v60 }
 0x54b   : > { %3586 = vst.msk [vmem:[%s6229_s16 + $0xd8] sm:$0xff] %vm262_vm2, %v3554_v22  ;;  %3587 = vst.msk [vmem:[%s6229_s16 + $0xe0] sm:$0xff] %vm262_vm2, %v3555_v33 }
 0x54c   : > { %3588 = vst.msk [vmem:[%s6229_s16 + $0xe8] sm:$0xff] %vm262_vm2, %v3556_v34  ;;  %3589 = vst.msk [vmem:[%s6229_s16 + $0xf0] sm:$0xff] %vm262_vm2, %v3557_v44 }
 0x54d   : > { %3590 = vst.msk [vmem:[%s6229_s16 + $0xf8] sm:$0xff] %vm262_vm2, %v3558_v55 }
 0x54e PF: > { %s13_s12 = sadd.s32 1, %s3844_s12  }
 0x54f   : > { %p10_p4 = scmp.ge.s32.totalorder %s13_s12, 4  }
 0x551   :  { %12 = sbr.rel (!%p10_p4) target bundleno = 1 (0x1), region = 64 }

</bundles_post_ra>
